<compile_context>
chip_gen: v6e
topology: v6e:2x2x1
jax: 0.10.0
libtpu: 0.0.40
codegen_flags: <defaults>
</compile_context>

<pallas_src>
import functools

import jax
import jax.numpy as jnp
from jax.experimental import pallas as pl
from jax.experimental.pallas import tpu as pltpu


# --------------------------- generation-aware knobs ---------------------------
def _elementwise_dtype():
    """bf16 bias/ReLU chains only on chips whose VPU supports bf16 (v6e/v7x);
    f32 elsewhere (v5e and older have f32-only VALUs)."""
    try:
        kind = jax.devices()[0].device_kind.lower()
    except Exception:
        return jnp.float32
    if ("v6" in kind) or ("v7" in kind) or ("7x" in kind):
        return jnp.bfloat16
    return jnp.float32


def _pick_point_chunk(n_pad):
    """Point-chunk (lane-axis) size.  <= 2048 keeps the per-step working set
    ~5 MiB: under the *default* scoped-VMEM limit of every generation
    (v5e 16 MiB, v6e 32 MiB, v7x 32-of-64 MiB), independent of N."""
    max_nc = 2048
    if n_pad <= max_nc:
        return n_pad
    for c in range(max_nc, 0, -128):      # n_pad is a multiple of 128 -> always hits
        if n_pad % c == 0:
            return c
    return 128


def _pick_head_tile(bp):
    """Batch tile for the FC-head kernel (bp is a multiple of 8)."""
    if bp <= 1024:
        return bp
    for bh in (1024, 512, 256, 128, 64, 32, 16, 8):
        if bp % bh == 0:
            return bh
    return bp


# ------------------------------ Pallas kernels --------------------------------
def _point_mlp_kernel(x_ref, w1_ref, b1_ref, w2_ref, b2_ref, w3_ref, b3_ref,
                      out_ref, acc_ref, *, ew_dtype, n_groups):
    """Channel-major per-point MLP + running max-pool.

    Grid = (batch, point_chunk).  One step sees x (1, 8, nc) -- channels padded
    3->8 with zeros -- and folds relu-MLP features (256, nc) into a (256, 128)
    running-max accumulator.  The pooled (256, 1) column is written once, at
    the last point chunk.
    """
    p = pl.program_id(1)

    @pl.when(p == 0)
    def _init():
        acc_ref[...] = jnp.zeros_like(acc_ref)      # ReLU outputs are >= 0

    x = x_ref[0]                                                     # (8, nc) f32

    # layer 1: 3 -> 64, channel-major (64,8)@(8,nc) MXU matmul (zero-padded K).
    h = jnp.dot(w1_ref[...], x, preferred_element_type=jnp.float32)
    h = jnp.maximum(h.astype(ew_dtype) + b1_ref[...], 0.0)           # (64, nc)

    # layer 2: 64 -> 128 (bf16 in / f32 acc)
    h = jnp.dot(w2_ref[...], h.astype(jnp.bfloat16),
                preferred_element_type=jnp.float32)
    h = jnp.maximum(h.astype(ew_dtype) + b2_ref[...], 0.0)           # (128, nc)

    # layer 3: 128 -> 256
    h = jnp.dot(w3_ref[...], h.astype(jnp.bfloat16),
                preferred_element_type=jnp.float32)
    h = jnp.maximum(h.astype(ew_dtype) + b3_ref[...], 0.0)           # (256, nc)

    # Fold this chunk into the running max: pure VPU elementwise max over
    # 128-lane groups (static slices at vreg boundaries, no XLU work).
    acc = acc_ref[...]
    for q in range(n_groups):
        acc = jnp.maximum(acc, h[:, q * 128:(q + 1) * 128])
    acc_ref[...] = acc

    @pl.when(p == pl.num_programs(1) - 1)
    def _finalize():
        pooled = jnp.max(acc_ref[...], axis=-1, keepdims=True)       # (256, 1)
        out_ref[...] = pooled.astype(out_ref.dtype).reshape(1, 256, 1)


def _fc_head_kernel(g_ref, wf1_ref, bf1_ref, wf2_ref, bf2_ref, out_ref):
    """FC head 256 -> 128 -> 9 (padded to 128 lanes), run once with M = batch.
    Elementwise stays f32: the 9 outputs feed an SVD downstream."""
    f = jnp.dot(g_ref[...].astype(jnp.bfloat16), wf1_ref[...],
                preferred_element_type=jnp.float32)
    f = jnp.maximum(f + bf1_ref[...], 0.0)
    o = jnp.dot(f.astype(jnp.bfloat16), wf2_ref[...],
                preferred_element_type=jnp.float32) + bf2_ref[...]
    out_ref[...] = o                                  # (bh, 128) lane-dense store


# ------------------------------- JAX wrapper -----------------------------------
def pointnet_backbone(x_bcn, params):
    """(B, 3, N) float32 points in native NCW layout -> (B, 9) features."""
    B, C, N = x_bcn.shape
    assert C == 3
    w1, b1, w2, b2, w3, b3, wf1, bf1, wf2, bf2 = params

    ew = _elementwise_dtype()

    # --- point-axis padding to a multiple of 128 (edge-replicate the last
    #     point: invariant under the max pool) ---
    n_pad = max(128, ((N + 127) // 128) * 128)
    if n_pad != N:
        tail = jnp.broadcast_to(x_bcn[:, :, N - 1:N], (B, 3, n_pad - N))
        x_bcn = jnp.concatenate([x_bcn, tail], axis=2)

    # --- channel padding 3 -> 8 (zero rows) so layer 1 is an aligned K=8
    #     MXU matmul and the x tile is a fully dense (8, nc) VMEM slab ---
    x_pad = jnp.concatenate(
        [x_bcn, jnp.zeros((B, 5, n_pad), x_bcn.dtype)], axis=1)      # (B, 8, n_pad)

    nc = _pick_point_chunk(n_pad)
    n_chunks = n_pad // nc
    n_groups = nc // 128

    # channel-major weights (w.T) / column biases for the per-point MLP
    w1t8 = jnp.zeros((64, 8), jnp.float32).at[:, :3].set(jnp.transpose(w1))
    mlp_params = (
        w1t8,                                         # (64, 8)  f32 (input precision)
        jnp.transpose(b1).astype(ew),                 # (64, 1)
        jnp.transpose(w2).astype(jnp.bfloat16),       # (128, 64)
        jnp.transpose(b2).astype(ew),                 # (128, 1)
        jnp.transpose(w3).astype(jnp.bfloat16),       # (256, 128)
        jnp.transpose(b3).astype(ew),                 # (256, 1)
    )

    kernel = functools.partial(_point_mlp_kernel, ew_dtype=ew, n_groups=n_groups)

    flops = 2 * B * n_pad * (8 * 64 + 64 * 128 + 128 * 256)
    bytes_accessed = int(x_pad.size) * 4 + B * 256 * 4 + sum(
        int(p.size) * p.dtype.itemsize for p in mlp_params)

    pooled = pl.pallas_call(
        kernel,
        out_shape=jax.ShapeDtypeStruct((B, 256, 1), jnp.float32),
        grid_spec=pltpu.PrefetchScalarGridSpec(
            num_scalar_prefetch=0,
            grid=(B, n_chunks),                       # batch parallel, points reduced
            in_specs=[pl.BlockSpec((1, 8, nc), lambda b, q: (b, 0, q))] +
                     [pl.BlockSpec(p.shape, lambda b, q: (0, 0))
                      for p in mlp_params],
            out_specs=pl.BlockSpec((1, 256, 1), lambda b, q: (b, 0, 0)),
            scratch_shapes=[pltpu.VMEM((256, 128), ew)],   # running max accumulator
        ),
        compiler_params=pltpu.CompilerParams(
            dimension_semantics=("parallel", "arbitrary"),
            vmem_limit_bytes=32 * 1024 * 1024),
        cost_estimate=pl.CostEstimate(flops=flops, transcendentals=0,
                                      bytes_accessed=bytes_accessed),
    )(x_pad, *mlp_params)

    g = pooled.reshape(B, 256)                        # pooled global features

    # ---------------- FC head: one pass with M = B (not per grid step) ----------
    out_pad = 128
    wf2_p = jnp.zeros((wf2.shape[0], out_pad), jnp.float32).at[:, :wf2.shape[1]].set(wf2)
    bf2_p = jnp.zeros((1, out_pad), jnp.float32).at[:, :bf2.shape[1]].set(bf2)
    head_params = (wf1.astype(jnp.bfloat16), bf1.astype(jnp.float32),
                   wf2_p.astype(jnp.bfloat16), bf2_p.astype(jnp.float32))

    bp = ((B + 7) // 8) * 8
    g_p = g if bp == B else jnp.concatenate(
        [g, jnp.zeros((bp - B, 256), g.dtype)], axis=0)
    bh = _pick_head_tile(bp)

    out = pl.pallas_call(
        _fc_head_kernel,
        out_shape=jax.ShapeDtypeStruct((bp, out_pad), jnp.float32),
        grid_spec=pltpu.PrefetchScalarGridSpec(
            num_scalar_prefetch=0,
            grid=(bp // bh,),
            in_specs=[pl.BlockSpec((bh, 256), lambda i: (i, 0))] +
                     [pl.BlockSpec(p.shape, lambda i: (0, 0))
                      for p in head_params],
            out_specs=pl.BlockSpec((bh, out_pad), lambda i: (i, 0)),
        ),
        compiler_params=pltpu.CompilerParams(dimension_semantics=("parallel",)),
    )(g_p, *head_params)

    return out[:B, :9]


def symmetric_orthogonalization(x9):
    """Maps (B, 9) -> (B, 3, 3) in SO(3).  Mirrors the reference torch.svd path."""
    m = x9.reshape(-1, 3, 3)
    u, _, vh = jnp.linalg.svd(m, full_matrices=False)      # vh == V^T (batched)
    det = jnp.linalg.det(jnp.matmul(u, vh))[:, None, None]
    vt = jnp.concatenate([vh[:, :2, :], vh[:, 2:, :] * det], axis=1)
    return jnp.matmul(u, vt)


def make_params(key):
    """Deterministic synthetic weights for the backbone (shapes are what matter)."""
    dims = [
        ("w1", (3, 64)), ("b1", (1, 64)),
        ("w2", (64, 128)), ("b2", (1, 128)),
        ("w3", (128, 256)), ("b3", (1, 256)),
        ("wf1", (256, 128)), ("bf1", (1, 128)),
        ("wf2", (128, 9)), ("bf2", (1, 9)),
    ]
    params = []
    for _, shape in dims:
        key, sub = jax.random.split(key)
        fan_in = shape[0] if (len(shape) == 2 and shape[0] > 1) else 1.0
        scale = 1.0 / jnp.sqrt(jnp.asarray(fan_in, jnp.float32))
        params.append(scale * jax.random.normal(sub, shape, dtype=jnp.float32))
    return params


@jax.jit
def model_forward(x_ncw, params):
    """Full Model.forward: (B, 3, N) point cloud -> (B, 3, 3) rotation matrices.
    The native NCW layout is fed straight to the kernel (no transpose pass)."""
    feat9 = pointnet_backbone(x_ncw.astype(jnp.float32), params)     # (B, 9)
    return symmetric_orthogonalization(feat9)                        # (B, 3, 3)


# ----------------------------------- main --------------------------------------
if __name__ == "__main__":
    key = jax.random.PRNGKey(0)
    kx, kp = jax.random.split(key)

    B, N = 2, 128
    x = jax.random.normal(kx, (B, 3, N), dtype=jnp.float32)          # PyTorch NCW layout
    params = make_params(kp)

    rot = model_forward(x, params)
    rot = jax.block_until_ready(rot)

    assert rot.shape == (B, 3, 3)
    # sanity: outputs should be (near) orthonormal rotations, det ~ +1
    dets = jax.block_until_ready(jnp.linalg.det(rot))
    assert bool(jnp.all(jnp.abs(dets - 1.0) < 1e-3))

    print("KERNEL_OK")
</pallas_src>

<mosaic_0001>
module attributes {stable_mosaic.version = 11 : i64} {
  func.func @_point_mlp_kernel(%arg0: i32, %arg1: i32, %arg2: memref<1x8x128xf32, #tpu.memory_space<vmem>>, %arg3: memref<64x8xf32, #tpu.memory_space<vmem>>, %arg4: memref<64x1xf32, #tpu.memory_space<vmem>>, %arg5: memref<128x64xbf16, #tpu.memory_space<vmem>>, %arg6: memref<128x1xf32, #tpu.memory_space<vmem>>, %arg7: memref<256x128xbf16, #tpu.memory_space<vmem>>, %arg8: memref<256x1xf32, #tpu.memory_space<vmem>>, %arg9: memref<1x256x1xf32, #tpu.memory_space<vmem>>, %arg10: memref<256x128xf32, #tpu.memory_space<vmem>>) attributes {dimension_semantics = [#tpu.dimension_semantics<parallel>, #tpu.dimension_semantics<arbitrary>], iteration_bounds = array<i64: 2, 1>, scalar_prefetch = 0 : i64, scratch_operands = 1 : i64, tpu.core_type = #tpu.core_type<tc>, window_params = [{transform_indices = @transform_0, window_bounds = array<i64: 1, 8, 128>}, {pipeline_mode = #tpu.pipeline_mode<synchronous>, transform_indices = @transform_1, window_bounds = array<i64: 64, 8>}, {pipeline_mode = #tpu.pipeline_mode<synchronous>, transform_indices = @transform_2, window_bounds = array<i64: 64, 1>}, {pipeline_mode = #tpu.pipeline_mode<synchronous>, transform_indices = @transform_3, window_bounds = array<i64: 128, 64>}, {pipeline_mode = #tpu.pipeline_mode<synchronous>, transform_indices = @transform_4, window_bounds = array<i64: 128, 1>}, {pipeline_mode = #tpu.pipeline_mode<synchronous>, transform_indices = @transform_5, window_bounds = array<i64: 256, 128>}, {pipeline_mode = #tpu.pipeline_mode<synchronous>, transform_indices = @transform_6, window_bounds = array<i64: 256, 1>}, {transform_indices = @transform_7, window_bounds = array<i64: 1, 256, 1>}]} {
    %c0_i32 = arith.constant 0 : i32
    %0 = arith.cmpi eq, %arg1, %c0_i32 : i32
    %1 = arith.extui %0 : i1 to i32
    %c0_i32_0 = arith.constant 0 : i32
    %2 = arith.cmpi ne, %1, %c0_i32_0 : i32
    scf.if %2 {
      %cst_26 = arith.constant 0.000000e+00 : f32
      %34 = vector.broadcast %cst_26 : f32 to vector<256x128xf32>
      %c0_27 = arith.constant 0 : index
      %c0_28 = arith.constant 0 : index
      %35 = vector.load %arg10[%c0_27, %c0_28] : memref<256x128xf32, #tpu.memory_space<vmem>>, vector<256x128xf32>
      tpu.vector_store %arg10[%c0_27, %c0_28], %34 {strides = array<i32>} : memref<256x128xf32, #tpu.memory_space<vmem>>, vector<256x128xf32>,
    } else {
    }
    %c0 = arith.constant 0 : index
    %c0_1 = arith.constant 0 : index
    %c0_2 = arith.constant 0 : index
    %3 = vector.load %arg2[%c0, %c0_1, %c0_2] : memref<1x8x128xf32, #tpu.memory_space<vmem>>, vector<1x8x128xf32>
    %4 = vector.shape_cast %3 : vector<1x8x128xf32> to vector<8x128xf32>
    %c0_3 = arith.constant 0 : index
    %c0_4 = arith.constant 0 : index
    %5 = vector.load %arg3[%c0_3, %c0_4] : memref<64x8xf32, #tpu.memory_space<vmem>>, vector<64x8xf32>
    %cst = arith.constant dense<0.000000e+00> : vector<64x128xf32>
    %6 = tpu.matmul %5, %4, %cst {dimension_numbers = #tpu.dot_dimension_numbers<[1], [0], [0], [1], [0, 0, 1, 1], [], []>} : vector<64x8xf32>, vector<8x128xf32>, vector<64x128xf32> -> vector<64x128xf32>
    %c0_5 = arith.constant 0 : index
    %c0_6 = arith.constant 0 : index
    %7 = vector.load %arg4[%c0_5, %c0_6] : memref<64x1xf32, #tpu.memory_space<vmem>>, vector<64x1xf32>
    %8 = vector.broadcast %7 : vector<64x1xf32> to vector<64x128xf32>
    %9 = arith.addf %6, %8 : vector<64x128xf32>
    %cst_7 = arith.constant 0.000000e+00 : f32
    %10 = vector.broadcast %cst_7 : f32 to vector<64x128xf32>
    %11 = arith.maximumf %9, %10 : vector<64x128xf32>
    %c0_8 = arith.constant 0 : index
    %c0_9 = arith.constant 0 : index
    %12 = vector.load %arg5[%c0_8, %c0_9] : memref<128x64xbf16, #tpu.memory_space<vmem>>, vector<128x64xbf16>
    %13 = arith.truncf %11 : vector<64x128xf32> to vector<64x128xbf16>
    %cst_10 = arith.constant dense<0.000000e+00> : vector<128x128xf32>
    %14 = tpu.matmul %12, %13, %cst_10 {dimension_numbers = #tpu.dot_dimension_numbers<[1], [0], [0], [1], [0, 0, 1, 1], [], []>} : vector<128x64xbf16>, vector<64x128xbf16>, vector<128x128xf32> -> vector<128x128xf32>
    %c0_11 = arith.constant 0 : index
    %c0_12 = arith.constant 0 : index
    %15 = vector.load %arg6[%c0_11, %c0_12] : memref<128x1xf32, #tpu.memory_space<vmem>>, vector<128x1xf32>
    %16 = vector.broadcast %15 : vector<128x1xf32> to vector<128x128xf32>
    %17 = arith.addf %14, %16 : vector<128x128xf32>
    %cst_13 = arith.constant 0.000000e+00 : f32
    %18 = vector.broadcast %cst_13 : f32 to vector<128x128xf32>
    %19 = arith.maximumf %17, %18 : vector<128x128xf32>
    %c0_14 = arith.constant 0 : index
    %c0_15 = arith.constant 0 : index
    %20 = vector.load %arg7[%c0_14, %c0_15] : memref<256x128xbf16, #tpu.memory_space<vmem>>, vector<256x128xbf16>
    %21 = arith.truncf %19 : vector<128x128xf32> to vector<128x128xbf16>
    %cst_16 = arith.constant dense<0.000000e+00> : vector<256x128xf32>
    %22 = tpu.matmul %20, %21, %cst_16 {dimension_numbers = #tpu.dot_dimension_numbers<[1], [0], [0], [1], [0, 0, 1, 1], [], []>} : vector<256x128xbf16>, vector<128x128xbf16>, vector<256x128xf32> -> vector<256x128xf32>
    %c0_17 = arith.constant 0 : index
    %c0_18 = arith.constant 0 : index
    %23 = vector.load %arg8[%c0_17, %c0_18] : memref<256x1xf32, #tpu.memory_space<vmem>>, vector<256x1xf32>
    %24 = vector.broadcast %23 : vector<256x1xf32> to vector<256x128xf32>
    %25 = arith.addf %22, %24 : vector<256x128xf32>
    %cst_19 = arith.constant 0.000000e+00 : f32
    %26 = vector.broadcast %cst_19 : f32 to vector<256x128xf32>
    %27 = arith.maximumf %25, %26 : vector<256x128xf32>
    %c0_20 = arith.constant 0 : index
    %c0_21 = arith.constant 0 : index
    %28 = vector.load %arg10[%c0_20, %c0_21] : memref<256x128xf32, #tpu.memory_space<vmem>>, vector<256x128xf32>
    %29 = arith.maximumf %28, %27 : vector<256x128xf32>
    %c0_22 = arith.constant 0 : index
    %c0_23 = arith.constant 0 : index
    %30 = vector.load %arg10[%c0_22, %c0_23] : memref<256x128xf32, #tpu.memory_space<vmem>>, vector<256x128xf32>
    tpu.vector_store %arg10[%c0_22, %c0_23], %29 {strides = array<i32>} : memref<256x128xf32, #tpu.memory_space<vmem>>, vector<256x128xf32>,
    %c0_i32_24 = arith.constant 0 : i32
    %31 = arith.cmpi eq, %arg1, %c0_i32_24 : i32
    %32 = arith.extui %31 : i1 to i32
    %c0_i32_25 = arith.constant 0 : i32
    %33 = arith.cmpi ne, %32, %c0_i32_25 : i32
    scf.if %33 {
      %c0_26 = arith.constant 0 : index
      %c0_27 = arith.constant 0 : index
      %34 = vector.load %arg10[%c0_26, %c0_27] : memref<256x128xf32, #tpu.memory_space<vmem>>, vector<256x128xf32>
      %cst_28 = arith.constant dense<0xFF800000> : vector<256xf32>
      %35 = vector.multi_reduction <maximumf>, %34, %cst_28 [1] : vector<256x128xf32> to vector<256xf32>
      %36 = vector.shape_cast %35 : vector<256xf32> to vector<256x1xf32>
      %37 = vector.shape_cast %36 : vector<256x1xf32> to vector<1x256x1xf32>
      %c0_29 = arith.constant 0 : index
      %c0_30 = arith.constant 0 : index
      %c0_31 = arith.constant 0 : index
      %38 = vector.load %arg9[%c0_29, %c0_30, %c0_31] : memref<1x256x1xf32, #tpu.memory_space<vmem>>, vector<1x256x1xf32>
      tpu.vector_store %arg9[%c0_29, %c0_30, %c0_31], %37 {strides = array<i32>} : memref<1x256x1xf32, #tpu.memory_space<vmem>>, vector<1x256x1xf32>,
    } else {
    }
    return
  }
  func.func @transform_0(%arg0: i32, %arg1: i32) -> (i32, i32, i32) {
    %c0_i32 = arith.constant 0 : i32
    %c0_i32_0 = arith.constant 0 : i32
    return %arg0, %c0_i32, %arg1 : i32, i32, i32
  }
  func.func @transform_1(%arg0: i32, %arg1: i32) -> (i32, i32) {
    %c0_i32 = arith.constant 0 : i32
    %c0_i32_0 = arith.constant 0 : i32
    %c0_i32_1 = arith.constant 0 : i32
    return %c0_i32, %c0_i32_0 : i32, i32
  }
  func.func @transform_2(%arg0: i32, %arg1: i32) -> (i32, i32) {
    %c0_i32 = arith.constant 0 : i32
    %c0_i32_0 = arith.constant 0 : i32
    %c0_i32_1 = arith.constant 0 : i32
    return %c0_i32, %c0_i32_0 : i32, i32
  }
  func.func @transform_3(%arg0: i32, %arg1: i32) -> (i32, i32) {
    %c0_i32 = arith.constant 0 : i32
    %c0_i32_0 = arith.constant 0 : i32
    %c0_i32_1 = arith.constant 0 : i32
    return %c0_i32, %c0_i32_0 : i32, i32
  }
  func.func @transform_4(%arg0: i32, %arg1: i32) -> (i32, i32) {
    %c0_i32 = arith.constant 0 : i32
    %c0_i32_0 = arith.constant 0 : i32
    %c0_i32_1 = arith.constant 0 : i32
    return %c0_i32, %c0_i32_0 : i32, i32
  }
  func.func @transform_5(%arg0: i32, %arg1: i32) -> (i32, i32) {
    %c0_i32 = arith.constant 0 : i32
    %c0_i32_0 = arith.constant 0 : i32
    %c0_i32_1 = arith.constant 0 : i32
    return %c0_i32, %c0_i32_0 : i32, i32
  }
  func.func @transform_6(%arg0: i32, %arg1: i32) -> (i32, i32) {
    %c0_i32 = arith.constant 0 : i32
    %c0_i32_0 = arith.constant 0 : i32
    %c0_i32_1 = arith.constant 0 : i32
    return %c0_i32, %c0_i32_0 : i32, i32
  }
  func.func @transform_7(%arg0: i32, %arg1: i32) -> (i32, i32, i32) {
    %c0_i32 = arith.constant 0 : i32
    %c0_i32_0 = arith.constant 0 : i32
    %c0_i32_1 = arith.constant 0 : i32
    return %arg0, %c0_i32, %c0_i32_0 : i32, i32, i32
  }
}

module attributes {stable_mosaic.version = 11 : i64} {
  func.func @_fc_head_kernel(%arg0: i32, %arg1: memref<8x256xf32, #tpu.memory_space<vmem>>, %arg2: memref<256x128xbf16, #tpu.memory_space<vmem>>, %arg3: memref<1x128xf32, #tpu.memory_space<vmem>>, %arg4: memref<128x128xbf16, #tpu.memory_space<vmem>>, %arg5: memref<1x128xf32, #tpu.memory_space<vmem>>, %arg6: memref<8x128xf32, #tpu.memory_space<vmem>>) attributes {dimension_semantics = [#tpu.dimension_semantics<parallel>], iteration_bounds = array<i64: 1>, scalar_prefetch = 0 : i64, scratch_operands = 0 : i64, tpu.core_type = #tpu.core_type<tc>, window_params = [{transform_indices = @transform_0, window_bounds = array<i64: 8, 256>}, {pipeline_mode = #tpu.pipeline_mode<synchronous>, transform_indices = @transform_1, window_bounds = array<i64: 256, 128>}, {pipeline_mode = #tpu.pipeline_mode<synchronous>, transform_indices = @transform_2, window_bounds = array<i64: 1, 128>}, {pipeline_mode = #tpu.pipeline_mode<synchronous>, transform_indices = @transform_3, window_bounds = array<i64: 128, 128>}, {pipeline_mode = #tpu.pipeline_mode<synchronous>, transform_indices = @transform_4, window_bounds = array<i64: 1, 128>}, {transform_indices = @transform_5, window_bounds = array<i64: 8, 128>}]} {
    %c0 = arith.constant 0 : index
    %c0_0 = arith.constant 0 : index
    %0 = vector.load %arg1[%c0, %c0_0] : memref<8x256xf32, #tpu.memory_space<vmem>>, vector<8x256xf32>
    %1 = arith.truncf %0 : vector<8x256xf32> to vector<8x256xbf16>
    %c0_1 = arith.constant 0 : index
    %c0_2 = arith.constant 0 : index
    %2 = vector.load %arg2[%c0_1, %c0_2] : memref<256x128xbf16, #tpu.memory_space<vmem>>, vector<256x128xbf16>
    %cst = arith.constant dense<0.000000e+00> : vector<8x128xf32>
    %3 = tpu.matmul %1, %2, %cst {dimension_numbers = #tpu.dot_dimension_numbers<[1], [0], [0], [1], [0, 0, 1, 1], [], []>} : vector<8x256xbf16>, vector<256x128xbf16>, vector<8x128xf32> -> vector<8x128xf32>
    %c0_3 = arith.constant 0 : index
    %c0_4 = arith.constant 0 : index
    %4 = vector.load %arg3[%c0_3, %c0_4] : memref<1x128xf32, #tpu.memory_space<vmem>>, vector<1x128xf32>
    %5 = vector.broadcast %4 : vector<1x128xf32> to vector<8x128xf32>
    %6 = arith.addf %3, %5 : vector<8x128xf32>
    %cst_5 = arith.constant 0.000000e+00 : f32
    %7 = vector.broadcast %cst_5 : f32 to vector<8x128xf32>
    %8 = arith.maximumf %6, %7 : vector<8x128xf32>
    %9 = arith.truncf %8 : vector<8x128xf32> to vector<8x128xbf16>
    %c0_6 = arith.constant 0 : index
    %c0_7 = arith.constant 0 : index
    %10 = vector.load %arg4[%c0_6, %c0_7] : memref<128x128xbf16, #tpu.memory_space<vmem>>, vector<128x128xbf16>
    %cst_8 = arith.constant dense<0.000000e+00> : vector<8x128xf32>
    %11 = tpu.matmul %9, %10, %cst_8 {dimension_numbers = #tpu.dot_dimension_numbers<[1], [0], [0], [1], [0, 0, 1, 1], [], []>} : vector<8x128xbf16>, vector<128x128xbf16>, vector<8x128xf32> -> vector<8x128xf32>
    %c0_9 = arith.constant 0 : index
    %c0_10 = arith.constant 0 : index
    %12 = vector.load %arg5[%c0_9, %c0_10] : memref<1x128xf32, #tpu.memory_space<vmem>>, vector<1x128xf32>
    %13 = vector.broadcast %12 : vector<1x128xf32> to vector<8x128xf32>
    %14 = arith.addf %11, %13 : vector<8x128xf32>
    %c0_11 = arith.constant 0 : index
    %c0_12 = arith.constant 0 : index
    %15 = vector.load %arg6[%c0_11, %c0_12] : memref<8x128xf32, #tpu.memory_space<vmem>>, vector<8x128xf32>
    tpu.vector_store %arg6[%c0_11, %c0_12], %14 {strides = array<i32>} : memref<8x128xf32, #tpu.memory_space<vmem>>, vector<8x128xf32>,
    return
  }
  func.func @transform_0(%arg0: i32) -> (i32, i32) {
    %c0_i32 = arith.constant 0 : i32
    %c0_i32_0 = arith.constant 0 : i32
    return %arg0, %c0_i32 : i32, i32
  }
  func.func @transform_1(%arg0: i32) -> (i32, i32) {
    %c0_i32 = arith.constant 0 : i32
    %c0_i32_0 = arith.constant 0 : i32
    %c0_i32_1 = arith.constant 0 : i32
    return %c0_i32, %c0_i32_0 : i32, i32
  }
  func.func @transform_2(%arg0: i32) -> (i32, i32) {
    %c0_i32 = arith.constant 0 : i32
    %c0_i32_0 = arith.constant 0 : i32
    %c0_i32_1 = arith.constant 0 : i32
    return %c0_i32, %c0_i32_0 : i32, i32
  }
  func.func @transform_3(%arg0: i32) -> (i32, i32) {
    %c0_i32 = arith.constant 0 : i32
    %c0_i32_0 = arith.constant 0 : i32
    %c0_i32_1 = arith.constant 0 : i32
    return %c0_i32, %c0_i32_0 : i32, i32
  }
  func.func @transform_4(%arg0: i32) -> (i32, i32) {
    %c0_i32 = arith.constant 0 : i32
    %c0_i32_0 = arith.constant 0 : i32
    %c0_i32_1 = arith.constant 0 : i32
    return %c0_i32, %c0_i32_0 : i32, i32
  }
  func.func @transform_5(%arg0: i32) -> (i32, i32) {
    %c0_i32 = arith.constant 0 : i32
    %c0_i32_0 = arith.constant 0 : i32
    return %arg0, %c0_i32 : i32, i32
  }
}

</mosaic_0001>

<bundles_post_ra>
// kernel: custom-call.57
= control target key start
LH: loop header
LB: loop body
LE: loop exit
PB: predicated region body
PF: predicated region fallthrough
CT: control target
= control target key end

     0   :  { %s651_s9 = smov 0   ;;  %s653_s10 = smov 0   ;;  %s801_s0 = inlined_call_operand.vmem [shape: f32[2,6,3], index: 0, kind: input, shape index: {}]   ;;  %s802_s1 = inlined_call_operand.vmem [shape: f32[2,6,3], index: 1, kind: output, shape index: {0}]   ;;  %s803_s2 = inlined_call_operand.vmem [shape: f32[2,3], index: 2, kind: output, shape index: {1}]  }
   0x1   :  { %s655_s11 = smov 0   ;;  %s657_s12 = smov 0  }
   0x2   :  { %s659_s13 = smov 0  }
   0x3 LB: > { %s28_s14 = sadd.s32 1, %s624_s12  ;;  %s506_s15 = sadd.s32 4294967295, %s628_s13   ;;  %s628_s13 = sphi %s659_s13, %s9_s13   ;;  %s624_s12 = sphi %s657_s12, %s810_s12   ;;  %s620_s11 = sphi %s655_s11, %s809_s11   ;;  %s616_s10 = sphi %s653_s10, %s808_s10   ;;  %s612_s9 = sphi %s651_s9, %s807_s9  }
   0x4   : > { %p30_p0 = scmp.ge.s32.totalorder %s28_s14, 2  ;;  %s33_s16 = ssub.s32 0, %s624_s12 }
   0x5   : > { %s508_s17 = smin.u32 %s624_s12, %s33_s16  ;;  %p57_p1 = scmp.ne.s32.totalorder %s616_s10, %s612_s9 }
   0x6   : > { %s812_s14 = smov (%p30_p0, %s28_s14), 0  ;;  %s35_s18 = sshrl.u32 %s508_s17, 3 }
   0x7   : > { %s39_s19 = ssub.s32 0, %s812_s14  ;;  %p58_p2 = scmp.eq.s32.totalorder %s506_s15, 1 }
   0x8   : > { %s509_s20 = smin.u32 %s39_s19, %s812_s14  ;;  %s47_s24 = sadd.s32 1, %s616_s10 }
   0x9   : > { %s41_s21 = sshrl.u32 %s509_s20, 3  ;;  %p686_p3 = por %p58_p2, %p57_p1 }
   0xa   : > { %s44_s23 = ssub.s32 %s35_s18, %s41_s21  ;;  %p511_p5 = scmp.ge.s32.totalorder %s628_s13, 2 }
   0xb   : > { %p45_p4 = scmp.eq.s32.totalorder %s44_s23, 0  ;;  %s82_s26 = sand.u32 (!%p511_p5), 1, %s628_s13  }
   0xc   : > { %80 = sbr.rel (%p511_p5) target bundleno = 19 (0x13), region = 16  ;;  %s513_s27 = sshll.u32 (!%p511_p5), %s624_s12, 3 }
   0xd   : > { %s692_s25 = scalar_select %p45_p4, %s616_s10, %s47_s24  }
   0xe   : > { %s512_s28 = sshll.u32 (!%p511_p5), %s82_s26, 3  ;;  %s88_s3 = scalar_lea.vmem (!%p511_p5), %s801_s0, %s513_s27 }
   0xf   : > { %s84_s4 = scalar_lea.vmem (!%p511_p5), [#allocation0], %s512_s28 }
  0x11   : > { %v117_v0 = vld [vmem:[%s88_s3] sm:$0xff] }
  0x12   : > { %118 = vst [vmem:[%s84_s4] sm:$0xff] %v117_v0 }
  0x13 PF: > { %p514_p6 = scmp.ge.s32.totalorder %s628_s13, 1  ;;  %p123_p7 = scmp.lt.s32.totalorder %s628_s13, 3 }
  0x15   : > { %p124_p8 = pnand %p514_p6, %p123_p7 }
  0x17   : > { %127 = sbr.rel (%p124_p8) target bundleno = 336 (0x150), region = 54 }
  0x1c   : > { %s130_s5 = sand.u32 1, %s506_s15   ;;  %s144_s6 = sand.u32 1, %s612_s9   ;;  %v634_v2 = vmov 0.0  }
  0x1d   : > { %s515_s7 = sshll.u32 %s130_s5, 3  ;;  %s703_s8 = sshll.u32 %s144_s6, 1 }
  0x1e   : > { %s153_s16 = sand.u32 7, %s620_s11   ;;  %s132_s17 = scalar_lea.vmem [#allocation0], %s515_s7 }
  0x1f   : > { %v155_v1 = vld [vmem:[%s132_s17] sm:$0xff]  ;;  %s706_s18 = scalar_lea.vmem [#allocation1], %s515_s7  ;;  %s709_s19 = scalar_lea.vmem [#allocation2], %s153_s16 }
  0x20   : > { %156 = vst [vmem:[%s706_s18] sm:$0xff] %v155_v1  ;;  %157 = vst [vmem:[%s709_s19] sm:$0x1] %v634_v2  ;;  %s146_s15 = scalar_lea.vmem [#allocation3], %s703_s8  ;;  %s713_s20 = smov 0  }
  0x21 LB: >> { %v165_v3 = vlaneseq  ;;  %v722_v5 = vstv %s632_s20  ;;  %s192_s9 = scalar_lea.vmem %s706_s18, %s632_s20 [#allocation1]  ;;  %s250_s21 = scalar_lea.vmem [#allocation4], %s632_s20  ;;  %v635_v59 = vmov 1.0   ;;  %s632_s20 = sphi %s713_s20, %s163_s20  }
  0x22   : >> { %s267_s23 = smov [#allocation4] }
  0x23   : >> { %v719_v4 = vshrl.u32 %v165_v3, 7  ;;  %v244_v48 = vand.u32 127, %v165_v3 }
  0x25   : >> { %vm169_vm0 = vcmp.gt.s32.totalorder %v719_v4, %v722_v5  ;;  %vm170_vm1 = vcmp.lt.s32.totalorder %v719_v4, 6  ;;  %v231_v4 = vmov %v719_v4  ;;  %vm740_vm12 = vcmp.eq.s32.totalorder %v244_v48, %v722_v5 }
  0x26   : >> { %vm171_vm2 = vmand %vm169_vm0, %vm170_vm1  ;;  %vm235_vm9 = vcmp.gt.s32.totalorder %v231_v4, %v722_v5  ;;  %vm236_vm10 = vcmp.lt.s32.totalorder %v231_v4, 6  ;;  %v270_v4 = vmov %v719_v4  ;;  %vm296_vm15 = vcmp.gt.s32.totalorder %v244_v48, %v722_v5 }
  0x27   : >> { %v164_v6 = vld [vmem:[%s706_s18] sm:$0xff]  ;;  %v193_v15 = vld [vmem:[%s192_s9] ss:$0 sm:$0xff]  ;;  %s228_s18 = smov %s706_s18  ;;  %vm237_vm11 = vmand %vm235_vm9, %vm236_vm10  ;;  %vm275_vm13 = vcmp.lt.s32.totalorder %v270_v4, 6  ;;  %v287_v4 = vmov %v719_v4 }
  0x28   : >> { %v172_v7 = vsel %vm171_vm2, %v164_v6, 0.0  ;;  %v194_v16 = vand.u32 2147483647, %v193_v15  ;;  %vm219_vm8 = vcmp.lt.f32.partialorder %v193_v15, 0.0  ;;  %v232_v45 = vld [vmem:[%s228_s18] sm:$0xff]  ;;  %s266_s18 = smov %s706_s18  ;;  %vm304_vm14 = vcmp.ge.s32.totalorder %v287_v4, %v722_v5 }
  0x29   : >> { %v173_v8 = vmul.f32 %v172_v7, %v172_v7  ;;  %v238_v49 = vsel %vm237_vm11, %v232_v45, 0.0  ;;  %v263_v60 = vld [vmem:[%s709_s19] ss:$0 sm:$0xff]  ;;  %vm305_vm0 = vmand %vm740_vm12, %vm304_vm14 }
  0x2a   : >> { %v195_v21 = vmax.f32 %v194_v16, 0.0  ;;  %v273_v63 = vld [vmem:[%s266_s18] sm:$0xff]  ;;  %s283_s18 = smov %s266_s18 }
  0x2b   : >> { %v174_v9 = vrot.slane %v173_v8, 4  ;;  %s308_s24 = scalar_lea.vmem %s283_s18, %s632_s20  ;;  %s163_s20 = sadd.s32 1, %s632_s20  }
  0x2c   : >> { %p160_p9 = scmp.ge.s32.totalorder %s163_s20, 3  }
  0x2d   : >> { %v175_v10 = vadd.f32 %v174_v9, %v173_v8  ;;  %s521_s26 = sshll.u32 (%p160_p9), %s620_s11, 3 }
  0x2e   : > { %s335_s29 = scalar_lea.vmem (%p160_p9), %s802_s1, %s521_s26 }
  0x2f   : >> { %v176_v11 = vrot.slane %v175_v10, 2 }
  0x31   : >> { %v177_v12 = vadd.f32 %v176_v11, %v175_v10 }
  0x33   : >> { %v178_v13 = vrot.slane %v177_v12, 1 }
  0x35   : >> { %v179_v14 = vadd.f32 %v178_v13, %v177_v12  ;;  %v294_v13 = vld [vmem:[%s283_s18] sm:$0xff] }
  0x37   : >> { %576 = vrsqrt.f32 %v179_v14  ;;  %vm182_vm3 = vcmp.eq.f32.partialorder %v179_v14, inf  ;;  %v185_v18 = vand.u32 2147483648, %v179_v14  ;;  %vm184_vm4 = vcmp.eq.f32.partialorder %v179_v14, 0.0 }
  0x44   : >> { %v577_v17 = vpop.eup %576 }
  0x45   : >> { %v181_v19 = vmul.f32 %v577_v17, %v179_v14 }
  0x47   : >> { %v183_v20 = vsel %vm182_vm3, %v179_v14, %v181_v19 }
  0x48   : >> { %v186_v22 = vsel %vm184_vm4, %v185_v18, %v183_v20 }
  0x49   : >> { %v196_v23 = vand.u32 2147483647, %v186_v22 }
  0x4b   : >> { %v197_v24 = vmax.f32 %v195_v21, %v196_v23 }
  0x4d   : >> { %578 = vrcp.f32 %v197_v24  ;;  %vm209_vm7 = vcmp.eq.f32.partialorder %v197_v24, 0.0 }
  0x5a   : >> { %v579_v25 = vpop.eup %578 }
  0x5b   : >> { %v199_v26 = vmul.f32 %v579_v25, %v194_v16  ;;  %v202_v27 = vmul.f32 0.0, %v579_v25  ;;  %v206_v28 = vmul.f32 %v579_v25, %v196_v23 }
  0x5d   : >> { %v200_v29 = vmul.f32 %v199_v26, %v199_v26  ;;  %v203_v30 = vmul.f32 %v202_v27, %v202_v27  ;;  %v207_v31 = vmul.f32 %v206_v28, %v206_v28 }
  0x5f   : >> { %v204_v32 = vadd.f32 %v203_v30, %v200_v29 }
  0x61   : >> { %v208_v33 = vadd.f32 %v207_v31, %v204_v32 }
  0x63   : >> { %580 = vrsqrt.f32 %v208_v33  ;;  %vm212_vm5 = vcmp.eq.f32.partialorder %v208_v33, inf  ;;  %v215_v35 = vand.u32 2147483648, %v208_v33  ;;  %vm214_vm6 = vcmp.eq.f32.partialorder %v208_v33, 0.0 }
  0x70   : >> { %v581_v34 = vpop.eup %580 }
  0x71   : >> { %v211_v36 = vmul.f32 %v581_v34, %v208_v33 }
  0x73   : >> { %v213_v37 = vsel %vm212_vm5, %v208_v33, %v211_v36 }
  0x74   : >> { %v216_v38 = vsel %vm214_vm6, %v215_v35, %v213_v37 }
  0x75   : >> { %v217_v39 = vmul.f32 %v216_v38, %v197_v24 }
  0x77   : >> { %v218_v40 = vsel %vm209_vm7, 0.0, %v217_v39 }
  0x78   : >> { %v220_v41 = vxor.u32 2147483648, %v218_v40 }
  0x7a   : >> { %v221_v42 = vsel %vm219_vm8, %v218_v40, %v220_v41 }
  0x7b   : >> { %v732_v43 = vsel %vm184_vm4, %v193_v15, %v221_v42  ;;  %582 = vrcp.f32 %v221_v42  ;;  %v222_v46 = vsub.f32 %v221_v42, %v193_v15 }
  0x7c   : >> { %v227_v44 = vsub.f32 %v193_v15, %v732_v43 }
  0x7e   : >> { %584 = vrcp.f32 %v227_v44 }
  0x88   : >> { %v583_v47 = vpop.eup %582 }
  0x89   : >> { %v224_v50 = vmul.f32 %v583_v47, %v222_v46 }
  0x8b   : >> { %v585_v51 = vpop.eup %584  ;;  %v226_v55 = vsel %vm184_vm4, 0.0, %v224_v50 }
  0x8c   : >> { %v240_v52 = vmul.f32 %v585_v51, %v238_v49  ;;  %v256_v57 = vsel %vm740_vm12, %v226_v55, 0.0 }
  0x8e   : >> { %v241_v54 = vsel %vm184_vm4, 0.0, %v240_v52 }
  0x8f   : >> { %v246_v56 = vsel %vm740_vm12, %v241_v54, 0.0 }
  0x90   : >> { %247 = vadd.xlane.f32.xlu0 %v246_v56 }
  0x94   : >> { %257 = vadd.xlane.f32.xlu0 %v256_v57 }
 0x119   : >> { %v248_v58 = vpop.xlane.xlu0 %247 }
 0x11a   : >> { %249 = vst [vmem:[#allocation4] sm:$0xff] %v248_v58 }
 0x11b   : >> { %251 = vst [vmem:[%s250_s21] sm:$0x1] %v635_v59 }
 0x11d   : >> { %v258_v61 = vpop.xlane.xlu0 %257 }
 0x11e   : >> { %v264_v62 = vsel %vm740_vm12, %v258_v61, %v263_v60 }
 0x11f   : >> { %265 = vst [vmem:[%s709_s19] sm:$0x1] %v264_v62 }
 0x122   : >> { %v272_v0 = vld [vmem:[%s267_s23] sm:$0xff]  ;;  %s284_s23 = smov %s267_s23 }
 0x123   : >> { %v274_v1 = vmul.f32 %v273_v63, %v272_v0  ;;  %v292_v12 = vld [vmem:[%s284_s23] sm:$0xff] }
 0x125   : >> { %v276_v2 = vsel %vm275_vm13, %v274_v1, 0.0 }
 0x126   : >> { %v277_v3 = vrot.slane %v276_v2, 4  ;;  %v320_v4 = vld [vmem:[#allocation2] sm:$0x3] (%p160_p9) }
 0x127   : > { %323 = vst [vmem:[%s146_s15] sm:$0x3] (%p160_p9), %v320_v4 }
 0x128   : >> { %v278_v6 = vadd.f32 %v277_v3, %v276_v2 }
 0x12a   : >> { %v279_v7 = vrot.slane %v278_v6, 2 }
 0x12c   : >> { %v280_v8 = vadd.f32 %v279_v7, %v278_v6 }
 0x12e   : >> { %v281_v9 = vrot.slane %v280_v8, 1 }
 0x130   : >> { %v282_v10 = vadd.f32 %v281_v9, %v280_v8 }
 0x132   : >> { %v288_v11 = vmul.f32 %v282_v10, %v258_v61 }
 0x134   : >> { %v293_v14 = vmul.f32 %v292_v12, %v288_v11 }
 0x136   : >> { %v297_v15 = vsub.f32 %v294_v13, %v293_v14 }
 0x138   : >> { %v298_v16 = vsel %vm296_vm15, %v297_v15, %v294_v13 }
 0x139   : >> { %v306_v17 = vsel %vm305_vm0, %v292_v12, %v298_v16 }
 0x13a   : >> { %307 = vst [vmem:[%s283_s18] sm:$0xff] %v306_v17 }
 0x13f   : > { %162 = sbr.rel (!%p160_p9) target bundleno = 33 (0x21), region = 175 }
 0x141   : >> { %v309_v18 = vld [vmem:[%s308_s24] ss:$0 sm:$0xff] }
 0x142   : >> { %v314_v19 = vsel %vm740_vm12, %v732_v43, %v309_v18 }
 0x143   : >> { %315 = vst [vmem:[%s308_s24] sm:$0x1] %v314_v19 }
 0x144   : > { %p372_p10 = scmp.lt.s32.totalorder (%p686_p3), %s620_s11, 0  ;;  %s373_s30 = ssub.s32 (%p686_p3), 0, %s620_s11  ;;  %v396_v20 = vld [vmem:[%s146_s15] sm:$0x3] (%p686_p3) }
 0x145   : > { %s522_s3 = smin.u32 (%p686_p3), %s620_s11, %s373_s30 }
 0x146   : > { %s375_s4 = sshrl.u32 (%p686_p3), %s522_s3, 3 }
 0x147   : > { %371 = sbr.rel (!%p686_p3) target bundleno = 336 (0x150), region = 99  ;;  %s376_s5 = ssub.s32 (%p686_p3), 0, %s375_s4 }
 0x14a   : > { %v364_v5 = vld [vmem:[%s706_s18] sm:$0xff] }
 0x14b   : > { %365 = vst [vmem:[%s335_s29] sm:$0xff] %v364_v5 }
 0x14c   : > { %s814_s5 = smov (!%p372_p10, %s376_s5), %s375_s4 }
 0x14d   : > { %s523_s6 = sshll.u32 %s814_s5, 1 }
 0x14e   : > { %s379_s17 = scalar_lea.vmem %s803_s2, %s523_s6 }
 0x14f   : > { %397 = vst [vmem:[%s379_s17] sm:$0x3] %v396_v20 }
 0x150 PF: > { %s9_s13 = sadd.s32 1, %s628_s13   ;;  %s807_s9 = smov %s616_s10 }
 0x151   : > { %p6_p11 = scmp.ge.s32.totalorder %s9_s13, 4   ;;  %s808_s10 = smov %s692_s25 }
 0x152   : > { %s809_s11 = smov %s624_s12  ;;  %s810_s12 = smov %s812_s14 }
 0x153   :  { %8 = sbr.rel (!%p6_p11) target bundleno = 3 (0x3), region = 186 }

// kernel: custom-call.58
= control target key start
LH: loop header
LB: loop body
LE: loop exit
PB: predicated region body
PF: predicated region fallthrough
CT: control target
= control target key end

     0   :  { %s243_s6 = smov 0   ;;  %s270_s0 = inlined_call_operand.vmem [shape: f32[2,3,3], index: 0, kind: input, shape index: {}]   ;;  %s271_s1 = inlined_call_operand.vmem [shape: f32[2,3,3], index: 1, kind: output, shape index: {}]  }
   0x1 LB: > { %s205_s7 = sadd.s32 4294967295, %s231_s6   ;;  %p207_p0 = scmp.ge.s32.totalorder %s231_s6, 2  ;;  %s231_s6 = sphi %s243_s6, %s7_s6  }
   0x2   : > { %s23_s8 = sand.u32 (!%p207_p0), 1, %s231_s6   ;;  %s209_s9 = sshll.u32 (!%p207_p0), %s231_s6, 2 }
   0x3   : > { %21 = sbr.rel (%p207_p0) target bundleno = 10 (0xa), region = 16  ;;  %s208_s10 = sshll.u32 (!%p207_p0), %s23_s8, 2 }
   0x4   : > { %s27_s13 = scalar_lea.vmem (!%p207_p0), %s270_s0, %s209_s9  ;;  %s25_s14 = scalar_lea.vmem (!%p207_p0), [#allocation1], %s208_s10 }
   0x8   : > { %v44_v0 = vld [vmem:[%s27_s13] sm:$0xf] }
   0x9   : > { %45 = vst [vmem:[%s25_s14] sm:$0xf] %v44_v0 }
   0xa PF: > { %p210_p1 = scmp.ge.s32.totalorder %s231_s6, 1  ;;  %p62_p2 = scmp.lt.s32.totalorder %s231_s6, 3 }
   0xc   : > { %p63_p3 = pnand %p210_p1, %p62_p2 }
   0xd   : > { %s259_s15 = sand.u32 (!%p63_p3), 1, %s205_s7   ;;  %s214_s19 = sshll.u32 (!%p63_p3), %s205_s7, 2 }
   0xe   : > { %66 = sbr.rel (%p63_p3) target bundleno = 329 (0x149), region = 50  ;;  %s211_s16 = sshll.u32 (!%p63_p3), %s259_s15, 2 }
   0xf   : > { %s75_s17 = scalar_lea.vmem (!%p63_p3), [#allocation1], %s211_s16  ;;  %s79_s18 = scalar_lea.vmem (!%p63_p3), [#allocation3], %s211_s16 }
  0x10   : > { %s133_s22 = scalar_lea.vmem (!%p63_p3), %s271_s1, %s214_s19 }
  0x13   : > { %v85_v1 = vlaneseq  ;;  %v83_v2 = vld [vmem:[%s75_s17] sm:$0xf]  ;;  %vm99_vm1 = vcmask 23552  }
  0x14   : > { %84 = vst [vmem:[#allocation0] sm:$0xf] %v83_v2 }
  0x15   : > { %v86_v3 = vand.u32 127, %v85_v1  ;;  %v88_v4 = vshrl.u32 %v85_v1, 7 }
  0x17   : > { %vm94_vm0 = vcmp.eq.s32.totalorder %v86_v3, 0  ;;  %vm90_vm2 = vcmp.eq.s32.totalorder %v86_v3, %v88_v4  ;;  %vm103_vm3 = vcmp.eq.s32.totalorder %v86_v3, 1  ;;  %vm114_vm4 = vcmp.eq.s32.totalorder %v86_v3, 2 }
  0x1b   : > { %v91_v5 = vld [vmem:[#allocation0] sm:$0xff] }
  0x1c   : > { %v98_v6 = vld [vmem:[#allocation0 + $0x1] ss:$0 sm:$0xff]  ;;  %v95_v7 = vsel %vm94_vm0, %v91_v5, 1.0  ;;  %v109_v11 = vld [vmem:[#allocation0 + $0x2] ss:$0 sm:$0xff] }
  0x1d   : > { %v100_v8 = vsel %vm99_vm1, %v98_v6, 0.0  ;;  %v96_v9 = vsel %vm90_vm2, %v95_v7, 0.0  ;;  %v111_v12 = vsel %vm99_vm1, %v109_v11, 0.0 }
  0x1e   : > { %v104_v10 = vmul.f32 %v100_v8, %v96_v9 }
  0x20   : > { %105 = vadd.xlane.f32.xlu0 %v104_v10 }
  0xa9   : > { %v106_v13 = vpop.xlane.xlu0 %105 }
  0xaa   : > { %v107_v14 = vsel %vm103_vm3, %v106_v13, %v96_v9 }
  0xab   : > { %v115_v15 = vmul.f32 %v111_v12, %v107_v14 }
  0xad   : > { %116 = vadd.xlane.f32.xlu0 %v115_v15 }
 0x136   : > { %v117_v16 = vpop.xlane.xlu0 %116 }
 0x137   : > { %v118_v17 = vsel %vm114_vm4, %v117_v16, %v107_v14 }
 0x138   : > { %119 = vst [vmem:[#allocation2] sm:$0xff] %v118_v17 }
 0x13f   : > { %v124_v18 = vld [vmem:[#allocation2] sm:$0xf] }
 0x140   : > { %127 = vst [vmem:[%s79_s18] sm:$0xf] %v124_v18 }
 0x147   : > { %v150_v19 = vld [vmem:[%s79_s18] sm:$0xf] }
 0x148   : > { %151 = vst [vmem:[%s133_s22] sm:$0xf] %v150_v19 }
 0x149 PF: > { %s7_s6 = sadd.s32 1, %s231_s6  }
 0x14a   : > { %p4_p4 = scmp.ge.s32.totalorder %s7_s6, 4  }
 0x14c   :  { %6 = sbr.rel (!%p4_p4) target bundleno = 1 (0x1), region = 112 }

// kernel: model_forward.3
= control target key start
LH: loop header
LB: loop body
LE: loop exit
PB: predicated region body
PF: predicated region fallthrough
CT: control target
= control target key end

     0   :  { %v421_v1 = vmov 0.0   ;;  %vm422_vm0 = vmmov 0   ;;  %s549_s1 = inlined_call_operand.vmem [shape: bf16[256,128], index: 1, kind: input, shape index: {}]   ;;  %s550_s0 = inlined_call_operand.vmem [shape: f32[8,256], index: 0, kind: input, shape index: {}]   ;;  %s551_s3 = inlined_call_operand.vmem [shape: bf16[128,128], index: 3, kind: input, shape index: {}]   ;;  %s552_s2 = inlined_call_operand.vmem [shape: f32[1,128], index: 2, kind: input, shape index: {}]   ;;  %s553_s4 = inlined_call_operand.vmem [shape: f32[1,128], index: 4, kind: input, shape index: {}]   ;;  %s554_s5 = inlined_call_operand.vmem [shape: f32[8,128], index: 5, kind: output, shape index: {}]  }
   0x1   :  { %v397_v0 = vld [vmem:[%s549_s1 + $0x78] sm:$0xff]   ;;  %375 = vmatprep.subr.bf16.mxu1 %v421_v1  ;;  %v399_v3 = vld [vmem:[%s549_s1 + $0x70] sm:$0xff]   ;;  %v401_v5 = vld [vmem:[%s549_s1 + $0x68] sm:$0xff]   ;;  %391 = vmatprep.mubr.msk.bf16.mxu1 %vm422_vm0, %v421_v1 }
   0x2   :  { %v398_v2 = vld [vmem:[%s549_s1 + $0x38] sm:$0xff]   ;;  %344 = vmatprep.subr.bf16.mxu0 %v397_v0  ;;  %v400_v4 = vld [vmem:[%s549_s1 + $0x30] sm:$0xff]   ;;  %v402_v6 = vld [vmem:[%s549_s1 + $0x28] sm:$0xff]  }
   0x3   :  { %345 = vmatpush3.bf16.msra.mxu0 %v398_v2  ;;  %v403_v7 = vld [vmem:[%s549_s1 + $0x60] sm:$0xff]   ;;  %v405_v9 = vld [vmem:[%s549_s1 + $0x58] sm:$0xff]   ;;  %v407_v11 = vld [vmem:[%s549_s1 + $0x50] sm:$0xff]  }
   0x4   :  { %346 = vmatprep.subr.bf16.mxu0 %v399_v3  ;;  %v404_v8 = vld [vmem:[%s549_s1 + $0x20] sm:$0xff]   ;;  %v406_v10 = vld [vmem:[%s549_s1 + $0x18] sm:$0xff]   ;;  %v22_v12 = vld [vmem:[%s550_s0 + $0x8] sm:$0xff] }
   0x5   :  { %v24_v13 = vpack.c.bf16 %v22_v12, %v22_v12  ;;  %v413_v14 = vld [vmem:[%s551_s3 + $0x38] sm:$0xff]   ;;  %v408_v15 = vld [vmem:[%s549_s1 + $0x10] sm:$0xff]   ;;  %v409_v16 = vld [vmem:[%s549_s1 + $0x48] sm:$0xff]  }
   0x6   :  { %376 = vmatpush3.bf16.msra.mxu1 %v413_v14  ;;  %v414_v17 = vld [vmem:[%s551_s3 + $0x30] sm:$0xff]   ;;  %v410_v18 = vld [vmem:[%s549_s1 + $0x8] sm:$0xff]   ;;  %v411_v19 = vld [vmem:[%s549_s1 + $0x40] sm:$0xff]  }
   0x7   :  { %347 = vmatpush3.bf16.msra.mxu0 %v400_v4  ;;  %192 = vmatprep.mubr.bf16.mxu0 %v24_v13  ;;  %v415_v20 = vld [vmem:[%s551_s3 + $0x28] sm:$0xff]   ;;  %v412_v21 = vld [vmem:[%s549_s1] sm:$0xff]   ;;  %v417_v25 = vld [vmem:[%s551_s3 + $0x18] sm:$0xff]  }
   0x8   :  { %348 = vmatprep.subr.bf16.mxu0 %v401_v5  ;;  %377 = vmatprep.subr.bf16.mxu1 %v421_v1  ;;  %v21_v22 = vld [vmem:[%s550_s0] sm:$0xff]  ;;  %v418_v26 = vld [vmem:[%s551_s3 + $0x10] sm:$0xff]   ;;  %v419_v27 = vld [vmem:[%s551_s3 + $0x8] sm:$0xff]  }
   0x9   :  { %v416_v23 = vld [vmem:[%s551_s3 + $0x20] sm:$0xff]   ;;  %v23_v24 = vpack.c.bf16 %v21_v22, %v21_v22 }
   0xa   :  { %378 = vmatpush3.bf16.msra.mxu1 %v414_v17  ;;  %v420_v28 = vld [vmem:[%s551_s3] sm:$0xff]  }
   0xb   :  { %349 = vmatpush3.bf16.msra.mxu0 %v402_v6  ;;  %379 = vmatprep.subr.bf16.mxu1 %v421_v1  ;;  %v318_v30 = vld [vmem:[%s552_s2] ss:$0 sm:$0xff] }
   0xc   :  { %350 = vmatprep.subr.bf16.mxu0 %v403_v7  ;;  %v335_v38 = vld [vmem:[%s553_s4] ss:$0 sm:$0xff] }
   0xe   :  { %380 = vmatpush3.bf16.msra.mxu1 %v415_v20 }
   0xf   :  { %351 = vmatpush3.bf16.msra.mxu0 %v404_v8  ;;  %381 = vmatprep.subr.bf16.mxu1 %v421_v1 }
  0x10   :  { %352 = vmatprep.subr.bf16.mxu0 %v405_v9 }
  0x12   :  { %382 = vmatpush3.bf16.msra.mxu1 %v416_v23 }
  0x13   :  { %353 = vmatpush3.bf16.msra.mxu0 %v406_v10  ;;  %383 = vmatprep.subr.bf16.mxu1 %v421_v1 }
  0x14   :  { %354 = vmatprep.subr.bf16.mxu0 %v407_v11 }
  0x16   :  { %384 = vmatpush3.bf16.msra.mxu1 %v417_v25 }
  0x17   :  { %355 = vmatpush3.bf16.msra.mxu0 %v408_v15  ;;  %385 = vmatprep.subr.bf16.mxu1 %v421_v1 }
  0x18   :  { %356 = vmatprep.subr.bf16.mxu0 %v409_v16 }
  0x1a   :  { %386 = vmatpush3.bf16.msra.mxu1 %v418_v26 }
  0x1b   :  { %357 = vmatpush3.bf16.msra.mxu0 %v410_v18  ;;  %387 = vmatprep.subr.bf16.mxu1 %v421_v1 }
  0x1c   :  { %358 = vmatprep.subr.bf16.mxu0 %v411_v19 }
  0x1e   :  { %388 = vmatpush3.bf16.msra.mxu1 %v419_v27 }
  0x1f   :  { %359 = vmatpush3.bf16.msra.mxu0 %v412_v21  ;;  %389 = vmatprep.subr.bf16.mxu1 %v421_v1 }
  0x22   :  { %193 = vmatmul.mubr.bf16.vlgmr.msra.gmra.mxu0 %v23_v24  ;;  %390 = vmatpush3.bf16.msra.mxu1 %v420_v28 }
  0xe2   :  { %v360_v29 = vpop.f32.mrf.mxu0 }
  0xe4   :  { %v361_v31 = vpop.f32.mrf.mxu0 }
  0xe5   :  { %v362_v32 = vadd.f32 %v361_v31, %v360_v29 }
  0xe6   :  { %v363_v33 = vpop.f32.mrf.mxu0 }
  0xe7   :  { %v195_v34 = vadd.f32 %v362_v32, %v318_v30 }
  0xe8   :  { %v364_v35 = vpop.f32.mrf.mxu0 }
  0xe9   :  { %v200_v36 = vmax.f32 %v195_v34, 0.0 }
  0xeb   :  { %v201_v37 = vpack.c.bf16 %v200_v36, %v200_v36 }
  0xed   :  { %392 = vmatmul.mubr.bf16.vlgmr.msra.gmra.mxu1 %v201_v37 }
 0x1ad   :  { %v307_v39 = vpop.f32.mrf.mxu1 }
 0x1ae   :  { %v308_v40 = vadd.f32 %v335_v38, %v307_v39 }
 0x1af   :  { %v393_v41 = vpop.f32.mrf.mxu1 }
 0x1b0   :  { %313 = vst [vmem:[%s554_s5] sm:$0xff] %v308_v40 }
 0x1b1   :  { %v310_v42 = vpop.f32.mrf.mxu1 }
 0x1b3   :  { %v394_v43 = vpop.f32.mrf.mxu1 }

// kernel: custom-call.50
= control target key start
LH: loop header
LB: loop body
LE: loop exit
PB: predicated region body
PF: predicated region fallthrough
CT: control target
= control target key end

     0   :  { %s6_s0 = inlined_call_operand.hbm [shape: pred[2], index: 0, kind: output, shape index: {}]  }

// kernel: custom-call.55
= control target key start
LH: loop header
LB: loop body
LE: loop exit
PB: predicated region body
PF: predicated region fallthrough
CT: control target
= control target key end

     0   :  { %s350_s6 = smov 0   ;;  %s352_s7 = smov 0   ;;  %s397_s0 = inlined_call_operand.vmem [shape: f32[2,3,3], index: 0, kind: input, shape index: {}]   ;;  %s398_s1 = inlined_call_operand.vmem [shape: f32[2,3,3], index: 1, kind: output, shape index: {}]  }
   0x1   :  { %s354_s8 = smov 0  }
   0x2 LB: > { %s272_s9 = sadd.s32 4294967295, %s337_s8   ;;  %s26_s10 = sadd.s32 1, %s333_s7  ;;  %s337_s8 = sphi %s354_s8, %s7_s8   ;;  %s333_s7 = sphi %s352_s7, %s400_s7   ;;  %s329_s6 = sphi %s350_s6, %s399_s6  }
   0x3   : > { %p28_p0 = scmp.ge.s32.totalorder %s26_s10, 2  ;;  %p274_p1 = scmp.ge.s32.totalorder %s337_s8, 2 }
   0x4   : > { %s42_s11 = sand.u32 (!%p274_p1), 1, %s337_s8   ;;  %s276_s12 = sshll.u32 (!%p274_p1), %s333_s7, 2 }
   0x5   : > { %s402_s10 = smov (%p28_p0, %s26_s10), 0  ;;  %40 = sbr.rel (%p274_p1) target bundleno = 12 (0xc), region = 16 }
   0x6   : > { %s275_s13 = sshll.u32 (!%p274_p1), %s42_s11, 2  ;;  %s48_s16 = scalar_lea.vmem (!%p274_p1), %s397_s0, %s276_s12 }
   0x7   : > { %s44_s17 = scalar_lea.vmem (!%p274_p1), [#allocation1], %s275_s13 }
   0xa   : > { %v65_v0 = vld [vmem:[%s48_s16] sm:$0xf] }
   0xb   : > { %66 = vst [vmem:[%s44_s17] sm:$0xf] %v65_v0 }
   0xc PF: > { %p277_p2 = scmp.ge.s32.totalorder %s337_s8, 1  ;;  %p83_p3 = scmp.lt.s32.totalorder %s337_s8, 3 }
   0xe   : > { %p84_p4 = pnand %p277_p2, %p83_p3 }
   0xf   : > { %s377_s18 = sand.u32 (!%p84_p4), 1, %s272_s9   ;;  %s281_s22 = sshll.u32 (!%p84_p4), %s329_s6, 2 }
  0x10   : > { %87 = sbr.rel (%p84_p4) target bundleno = 544 (0x220), region = 50  ;;  %s278_s19 = sshll.u32 (!%p84_p4), %s377_s18, 2 }
  0x11   : > { %s96_s20 = scalar_lea.vmem (!%p84_p4), [#allocation1], %s278_s19  ;;  %s100_s21 = scalar_lea.vmem (!%p84_p4), [#allocation3], %s278_s19 }
  0x12   : > { %s184_s25 = scalar_lea.vmem (!%p84_p4), %s398_s1, %s281_s22 }
  0x15   : > { %v339_v1 = vmov 0.0   ;;  %v104_v5 = vld [vmem:[%s96_s20] sm:$0xf]  ;;  %vm107_vm0 = vcmask 7168   ;;  %vm125_vm1 = vcmask 15368   ;;  %vm142_vm2 = vcmask 1047553  }
  0x16   : > { %106 = vst [vmem:[#allocation2] sm:$0xff] %v339_v1  ;;  %105 = vst [vmem:[#allocation0] sm:$0xf] %v104_v5  ;;  %vm147_vm4 = vcmask 23568   ;;  %vm164_vm5 = vcmask 1047554  }
  0x17   : > { %vm143_vm3 = vmand %vm125_vm1, %vm142_vm2 }
  0x18   : > { %vm165_vm6 = vmand %vm147_vm4, %vm164_vm5 }
  0x1d   : > { %v108_v2 = vld [vmem:[#allocation2] ss:$0 sm:$0xff]  ;;  %v109_v6 = vld [vmem:[#allocation0] ss:$0 sm:$0xff]  ;;  %v129_v18 = vld [vmem:[#allocation0 + $0x1] ss:$0 sm:$0xff] }
  0x1e   : > { %v110_v3 = vmul.f32 %v108_v2, %v108_v2  ;;  %v117_v4 = vmul.f32 0.0, %v108_v2  ;;  %v115_v10 = vld [vmem:[#allocation0] sm:$0xff] }
  0x1f   : > { %v151_v30 = vld [vmem:[#allocation0 + $0x2] ss:$0 sm:$0xff] }
  0x20   : > { %111 = vadd.xlane.f32.xlu0 %v110_v3 }
  0x24   : > { %118 = vadd.xlane.f32.xlu0 %v117_v4 }
  0xa9   : > { %v112_v7 = vpop.xlane.xlu0 %111 }
  0xaa   : > { %v113_v8 = vsub.f32 %v109_v6, %v112_v7 }
  0xac   : > { %309 = vrsqrt.f32 %v113_v8 }
  0xad   : > { %v119_v9 = vpop.xlane.xlu0 %118 }
  0xae   : > { %v120_v11 = vsub.f32 %v115_v10, %v119_v9 }
  0xb9   : > { %v310_v12 = vpop.eup %309 }
  0xba   : > { %v121_v13 = vmul.f32 %v310_v12, %v120_v11 }
  0xbc   : > { %v122_v14 = vsel %vm107_vm0, %v121_v13, 0.0 }
  0xbd   : > { %124 = vst [vmem:[#allocation2] sm:$0xff] %v122_v14 }
  0xc4   : > { %v127_v15 = vld [vmem:[#allocation2 + $0x1] ss:$0 sm:$0xff] }
  0xc5   : > { %v130_v16 = vmul.f32 %v127_v15, %v127_v15  ;;  %v137_v17 = vmul.f32 %v127_v15, %v122_v14 }
  0xc7   : > { %131 = vadd.xlane.f32.xlu1 %v130_v16 }
  0xcb   : > { %138 = vadd.xlane.f32.xlu1 %v137_v17 }
 0x150   : > { %v132_v19 = vpop.xlane.xlu1 %131 }
 0x151   : > { %v133_v20 = vsub.f32 %v129_v18, %v132_v19 }
 0x153   : > { %311 = vrsqrt.f32 %v133_v20 }
 0x154   : > { %v139_v21 = vpop.xlane.xlu1 %138 }
 0x155   : > { %v140_v22 = vsub.f32 %v115_v10, %v139_v21 }
 0x160   : > { %v312_v23 = vpop.eup %311 }
 0x161   : > { %v141_v24 = vmul.f32 %v312_v23, %v140_v22 }
 0x163   : > { %v144_v25 = vsel %vm143_vm3, %v141_v24, 0.0 }
 0x164   : > { %v145_v26 = vadd.f32 %v144_v25, %v122_v14 }
 0x166   : > { %146 = vst [vmem:[#allocation2] sm:$0xff] %v145_v26 }
 0x16d   : > { %v149_v27 = vld [vmem:[#allocation2 + $0x2] ss:$0 sm:$0xff] }
 0x16e   : > { %v159_v28 = vmul.f32 %v149_v27, %v145_v26  ;;  %v152_v29 = vmul.f32 %v149_v27, %v149_v27 }
 0x170   : > { %160 = vadd.xlane.f32.xlu1 %v159_v28  ;;  %153 = vadd.xlane.f32.xlu0 %v152_v29 }
 0x1f9   : > { %v154_v31 = vpop.xlane.xlu0 %153  ;;  %v161_v33 = vpop.xlane.xlu1 %160 }
 0x1fa   : > { %v155_v32 = vsub.f32 %v151_v30, %v154_v31  ;;  %v162_v34 = vsub.f32 %v115_v10, %v161_v33 }
 0x1fc   : > { %313 = vrsqrt.f32 %v155_v32 }
 0x209   : > { %v314_v35 = vpop.eup %313 }
 0x20a   : > { %v163_v36 = vmul.f32 %v314_v35, %v162_v34 }
 0x20c   : > { %v166_v37 = vsel %vm165_vm6, %v163_v36, 0.0 }
 0x20d   : > { %v167_v38 = vadd.f32 %v166_v37, %v145_v26 }
 0x20f   : > { %168 = vst [vmem:[#allocation2] sm:$0xff] %v167_v38 }
 0x216   : > { %v173_v39 = vld [vmem:[#allocation2] sm:$0xf] }
 0x217   : > { %176 = vst [vmem:[%s100_s21] sm:$0xf] %v173_v39 }
 0x21e   : > { %v201_v40 = vld [vmem:[%s100_s21] sm:$0xf] }
 0x21f   : > { %202 = vst [vmem:[%s184_s25] sm:$0xf] %v201_v40 }
 0x220 PF: > { %s7_s8 = sadd.s32 1, %s337_s8   ;;  %s399_s6 = smov %s333_s7 }
 0x221   : > { %p4_p5 = scmp.ge.s32.totalorder %s7_s8, 4   ;;  %s400_s7 = smov %s402_s10 }
 0x223   :  { %6 = sbr.rel (!%p4_p5) target bundleno = 2 (0x2), region = 114 }

// kernel: custom-call.56
= control target key start
LH: loop header
LB: loop body
LE: loop exit
PB: predicated region body
PF: predicated region fallthrough
CT: control target
= control target key end

     0   :  { %s350_s6 = smov 0   ;;  %s352_s7 = smov 0   ;;  %s397_s0 = inlined_call_operand.vmem [shape: f32[2,1,3,3], index: 0, kind: input, shape index: {}]   ;;  %s398_s1 = inlined_call_operand.vmem [shape: f32[2,1,3,3], index: 1, kind: output, shape index: {}]  }
   0x1   :  { %s354_s8 = smov 0  }
   0x2 LB: > { %s276_s9 = sadd.s32 4294967295, %s337_s8   ;;  %s33_s10 = sadd.s32 1, %s333_s7  ;;  %s337_s8 = sphi %s354_s8, %s7_s8   ;;  %s333_s7 = sphi %s352_s7, %s400_s7   ;;  %s329_s6 = sphi %s350_s6, %s399_s6  }
   0x3   : > { %p35_p0 = scmp.ge.s32.totalorder %s33_s10, 2  ;;  %p278_p1 = scmp.ge.s32.totalorder %s337_s8, 2 }
   0x4   : > { %s49_s11 = sand.u32 (!%p278_p1), 1, %s337_s8   ;;  %s280_s12 = sshll.u32 (!%p278_p1), %s333_s7, 2 }
   0x5   : > { %s402_s10 = smov (%p35_p0, %s33_s10), 0  ;;  %47 = sbr.rel (%p278_p1) target bundleno = 12 (0xc), region = 16 }
   0x6   : > { %s279_s13 = sshll.u32 (!%p278_p1), %s49_s11, 2  ;;  %s56_s16 = scalar_lea.vmem (!%p278_p1), %s397_s0, %s280_s12 }
   0x7   : > { %s51_s17 = scalar_lea.vmem (!%p278_p1), [#allocation1], %s279_s13 }
   0xa   : > { %v73_v0 = vld [vmem:[%s56_s16] sm:$0xf] }
   0xb   : > { %74 = vst [vmem:[%s51_s17] sm:$0xf] %v73_v0 }
   0xc PF: > { %p281_p2 = scmp.ge.s32.totalorder %s337_s8, 1  ;;  %p91_p3 = scmp.lt.s32.totalorder %s337_s8, 3 }
   0xe   : > { %p92_p4 = pnand %p281_p2, %p91_p3 }
  0x10   : > { %95 = sbr.rel (%p92_p4) target bundleno = 500 (0x1f4), region = 50 }
  0x15   : > { %s377_s18 = sand.u32 1, %s276_s9   ;;  %v114_v1 = vlaneseq  ;;  %v339_v11 = vmov -1.0   ;;  %s285_s22 = sshll.u32 %s329_s6, 2 }
  0x16   : > { %s282_s19 = sshll.u32 %s377_s18, 2  ;;  %s183_s25 = scalar_lea.vmem %s398_s1, %s285_s22 }
  0x17   : > { %s104_s20 = scalar_lea.vmem [#allocation1], %s282_s19  ;;  %v115_v3 = vand.u32 127, %v114_v1  ;;  %v118_v4 = vshrl.u32 %v114_v1, 7  ;;  %s108_s21 = scalar_lea.vmem [#allocation3], %s282_s19 }
  0x18   : > { %v112_v2 = vld [vmem:[%s104_s20] sm:$0xf] }
  0x19   : > { %113 = vst [vmem:[#allocation0] sm:$0xf] %v112_v2  ;;  %vm116_vm0 = vcmp.lt.s32.totalorder %v115_v3, 3  ;;  %vm125_vm1 = vcmp.ge.s32.totalorder %v118_v4, %v115_v3  ;;  %vm120_vm2 = vcmp.eq.s32.totalorder %v118_v4, %v115_v3  ;;  %vm139_vm4 = vcmp.eq.s32.totalorder %v115_v3, 0 }
  0x1a   : > { %vm126_vm3 = vmand %vm125_vm1, %vm116_vm0  ;;  %vm136_vm5 = vcmp.eq.s32.totalorder %v115_v3, %v118_v4  ;;  %v140_v12 = vsel %vm139_vm4, 1.0, %v339_v11  ;;  %vm147_vm6 = vcmp.eq.s32.totalorder %v115_v3, 1  ;;  %vm157_vm7 = vcmp.eq.s32.totalorder %v115_v3, 2 }
  0x1b   : > { %v141_v13 = vsel %vm136_vm5, %v140_v12, 0.0 }
  0x20   : > { %v121_v5 = vld [vmem:[#allocation0] sm:$0xff] }
  0x21   : > { %v122_v6 = vsel %vm120_vm2, %v121_v5, 0.0  ;;  %v127_v7 = vsel %vm126_vm3, %v121_v5, 0.0 }
  0x22   : > { %123 = vadd.xlane.f32.xlu0 %v122_v6 }
  0xab   : > { %v124_v8 = vpop.xlane.xlu0 %123 }
  0xac   : > { %313 = vrcp.f32 %v124_v8  ;;  %vm164_vm8 = vweird.f32 %v124_v8 }
  0xb9   : > { %v314_v9 = vpop.eup %313 }
  0xba   : > { %v129_v10 = vmul.f32 %v314_v9, %v127_v7 }
  0xbc   : > { %130 = vst [vmem:[#allocation4] sm:$0xff] %v129_v10 }
  0xc3   : > { %v143_v14 = vld [vmem:[#allocation4 + $0x1] ss:$0 sm:$0xff]  ;;  %v153_v17 = vld [vmem:[#allocation4 + $0x2] ss:$0 sm:$0xff] }
  0xc4   : > { %v144_v15 = vxor.u32 2147483648, %v143_v14  ;;  %v154_v19 = vxor.u32 2147483648, %v153_v17 }
  0xc6   : > { %v148_v16 = vmul.f32 %v144_v15, %v141_v13 }
  0xc8   : > { %149 = vadd.xlane.f32.xlu0 %v148_v16 }
 0x151   : > { %v150_v18 = vpop.xlane.xlu0 %149 }
 0x152   : > { %v151_v20 = vsel %vm147_vm6, %v150_v18, %v141_v13 }
 0x153   : > { %v158_v21 = vmul.f32 %v154_v19, %v151_v20 }
 0x155   : > { %159 = vadd.xlane.f32.xlu1 %v158_v21 }
 0x1de   : > { %v160_v22 = vpop.xlane.xlu1 %159 }
 0x1df   : > { %v161_v23 = vsel %vm157_vm7, %v160_v22, %v151_v20 }
 0x1e0   : > { %v163_v24 = vmul.f32 %v314_v9, %v161_v23 }
 0x1e2   : > { %v165_v25 = vsel %vm164_vm8, %v161_v23, %v163_v24 }
 0x1e3   : > { %166 = vst [vmem:[#allocation2] sm:$0xff] %v165_v25 }
 0x1ea   : > { %v171_v26 = vld [vmem:[#allocation2] sm:$0xf] }
 0x1eb   : > { %174 = vst [vmem:[%s108_s21] sm:$0xf] %v171_v26 }
 0x1f2   : > { %v200_v27 = vld [vmem:[%s108_s21] sm:$0xf] }
 0x1f3   : > { %201 = vst [vmem:[%s183_s25] sm:$0xf] %v200_v27 }
 0x1f4 PF: > { %s7_s8 = sadd.s32 1, %s337_s8   ;;  %s399_s6 = smov %s333_s7 }
 0x1f5   : > { %p4_p5 = scmp.ge.s32.totalorder %s7_s8, 4   ;;  %s400_s7 = smov %s402_s10 }
 0x1f7   :  { %6 = sbr.rel (!%p4_p5) target bundleno = 2 (0x2), region = 112 }

// kernel: model_forward.2
= control target key start
LH: loop header
LB: loop body
LE: loop exit
PB: predicated region body
PF: predicated region fallthrough
CT: control target
= control target key end

     0   :  { %s1954_s24 = smov 0   ;;  %s1956_s25 = smov 0   ;;  %s2397_s0 = inlined_call_operand.vmem [shape: f32[2,8,128], index: 0, kind: input, shape index: {}]   ;;  %s2398_s1 = inlined_call_operand.vmem [shape: f32[64,8], index: 1, kind: input, shape index: {}]   ;;  %s2399_s2 = inlined_call_operand.vmem [shape: f32[64,1], index: 2, kind: input, shape index: {}]   ;;  %s2400_s3 = inlined_call_operand.vmem [shape: bf16[128,64], index: 3, kind: input, shape index: {}]   ;;  %s2401_s4 = inlined_call_operand.vmem [shape: f32[128,1], index: 4, kind: input, shape index: {}]   ;;  %s2402_s5 = inlined_call_operand.vmem [shape: bf16[256,128], index: 5, kind: input, shape index: {}]   ;;  %s2403_s6 = inlined_call_operand.vmem [shape: f32[256,1], index: 6, kind: input, shape index: {}]   ;;  %s2404_s7 = inlined_call_operand.vmem [shape: f32[2,256,1], index: 7, kind: output, shape index: {}]  }
   0x1   :  { %s1958_s26 = smov 0  }
   0x2 LB: > { %s29_s27 = sadd.s32 1, %s1907_s25  ;;  %p1644_p0 = scmp.ge.s32.totalorder %s1911_s26, 1  ;;  %s1911_s26 = sphi %s1958_s26, %s17_s26   ;;  %s1907_s25 = sphi %s1956_s25, %s2406_s25   ;;  %s1903_s24 = sphi %s1954_s24, %s2405_s24  }
   0x3   : > { %p31_p1 = scmp.ge.s32.totalorder %s29_s27, 2  ;;  %p253_p2 = scmp.lt.s32.totalorder %s1911_s26, 3 }
   0x5   : > { %s2408_s27 = smov (%p31_p1, %s29_s27), 0  ;;  %p254_p3 = pnand %p1644_p0, %p253_p2 }
   0x6   : > { %p287_p4 = scmp.lt.s32.totalorder (!%p254_p3), %s1903_s24, 1 }
   0x7   : > { %257 = sbr.rel (%p254_p3) target bundleno = 910 (0x38e), region = 48 }
   0xc   : > { %v351_v0 = vld [vmem:[%s2399_s2 + $0x30] sm:$0xff]  ;;  %v349_v1 = vld [vmem:[%s2399_s2 + $0x20] sm:$0xff]  ;;  %vm393_vm0 = vcmask 64512   ;;  %v1913_v2 = vmov 0   ;;  %s2410_s24 = smov (!%p287_p4, %s1903_s24), 1  ;;  %v352_v4 = vld [vmem:[%s2399_s2 + $0x38] sm:$0xff] }
   0xd   : > { %1864 = vset.pattern.permute.xlu1 %v1913_v2  ;;  %1863 = vset.pattern.permute.xlu0 %v1913_v2  ;;  %v337_v3 = vld [vmem:[%s2398_s1] sm:$0xff]  ;;  %v350_v5 = vld [vmem:[%s2399_s2 + $0x28] sm:$0xff]  ;;  %s1645_s15 = sshll.u32 %s2410_s24, 3  ;;  %v348_v8 = vld [vmem:[%s2399_s2 + $0x18] sm:$0xff]  ;;  %vm687_vm1 = vcmask 523264   ;;  %s1690_s14 = sshll.u32 %s2410_s24, 8 }
   0xe   : > { %385 = vperm.xlu0 %1863, %v351_v0   ;;  %375 = vperm.xlu1 %1864, %v349_v1   ;;  %s293_s18 = scalar_lea.vmem %s2397_s0, %s1645_s15  ;;  %v338_v7 = vld [vmem:[%s2398_s1 + $0x8] sm:$0xff]  ;;  %v347_v9 = vld [vmem:[%s2399_s2 + $0x10] sm:$0xff]  ;;  %v340_v11 = vld [vmem:[%s2398_s1 + $0x18] sm:$0xff]  ;;  %s2322_s17 = scalar_lea.vmem %s2404_s7, %s1690_s14  ;;  %vm1541_vm2 = vcmask 7168  }
   0xf   : > { %1738 = vmatprep.mubr.msk.f32.mxu0 %vm393_vm0, %v337_v3  ;;  %v336_v6 = vld [vmem:[%s293_s18] sm:$0xff]  ;;  %v339_v10 = vld [vmem:[%s2398_s1 + $0x10] sm:$0xff]  ;;  %v346_v12 = vld [vmem:[%s2399_s2 + $0x8] sm:$0xff] }
  0x10   : > { %1736 = vmatprep.subr.mxu0 %v336_v6  ;;  %v345_v13 = vld [vmem:[%s2399_s2] sm:$0xff]  ;;  %v342_v15 = vld [vmem:[%s2398_s1 + $0x28] sm:$0xff]  ;;  %v566_v16 = vld [vmem:[%s2401_s4 + $0x78] sm:$0xff] }
  0x11   : > { %1737 = vmatpush3.msra.mxu0 %v336_v6  ;;  %v341_v14 = vld [vmem:[%s2398_s1 + $0x20] sm:$0xff]  ;;  %v565_v17 = vld [vmem:[%s2401_s4 + $0x70] sm:$0xff]  ;;  %v344_v19 = vld [vmem:[%s2398_s1 + $0x38] sm:$0xff] }
  0x12   : > { %390 = vperm.xlu0 %1863, %v352_v4   ;;  %380 = vperm.xlu1 %1864, %v350_v5   ;;  %v343_v18 = vld [vmem:[%s2398_s1 + $0x30] sm:$0xff]  ;;  %v564_v20 = vld [vmem:[%s2401_s4 + $0x68] sm:$0xff]  ;;  %v563_v21 = vld [vmem:[%s2401_s4 + $0x60] sm:$0xff] }
  0x13   : > { %1739 = vmatmul.mubr.msk.f32.vlgmr.msra.gmra.mxu0 %vm393_vm0, %v338_v7  ;;  %v562_v22 = vld [vmem:[%s2401_s4 + $0x58] sm:$0xff]  ;;  %v561_v23 = vld [vmem:[%s2401_s4 + $0x50] sm:$0xff]  ;;  %v560_v24 = vld [vmem:[%s2401_s4 + $0x48] sm:$0xff] }
  0x14   : > { %1741 = vmatprep.mubr.msk.f32.mxu0 %vm393_vm0, %v339_v10  ;;  %v559_v25 = vld [vmem:[%s2401_s4 + $0x40] sm:$0xff]  ;;  %v558_v26 = vld [vmem:[%s2401_s4 + $0x38] sm:$0xff]  ;;  %v557_v27 = vld [vmem:[%s2401_s4 + $0x30] sm:$0xff] }
  0x15   : > { %v556_v28 = vld [vmem:[%s2401_s4 + $0x28] sm:$0xff]  ;;  %v555_v29 = vld [vmem:[%s2401_s4 + $0x20] sm:$0xff]  ;;  %v554_v30 = vld [vmem:[%s2401_s4 + $0x18] sm:$0xff] }
  0x16   : > { %370 = vperm.xlu1 %1864, %v348_v8   ;;  %365 = vperm.xlu0 %1863, %v347_v9   ;;  %v553_v31 = vld [vmem:[%s2401_s4 + $0x10] sm:$0xff]  ;;  %v552_v32 = vld [vmem:[%s2401_s4 + $0x8] sm:$0xff]  ;;  %v551_v33 = vld [vmem:[%s2401_s4] sm:$0xff] }
  0x17   : > { %1742 = vmatmul.mubr.msk.f32.gmra.mxu0 %vm393_vm0, %v340_v11  ;;  %v866_v34 = vld [vmem:[%s2403_s6 + $0x8] sm:$0xff]  ;;  %v865_v35 = vld [vmem:[%s2403_s6] sm:$0xff]  ;;  %v868_v36 = vld [vmem:[%s2403_s6 + $0x18] sm:$0xff] }
  0x18   : > { %1744 = vmatprep.mubr.msk.f32.mxu0 %vm393_vm0, %v341_v14  ;;  %v867_v37 = vld [vmem:[%s2403_s6 + $0x10] sm:$0xff]  ;;  %v870_v38 = vld [vmem:[%s2403_s6 + $0x28] sm:$0xff]  ;;  %v869_v39 = vld [vmem:[%s2403_s6 + $0x20] sm:$0xff] }
  0x19   : > { %v872_v40 = vld [vmem:[%s2403_s6 + $0x38] sm:$0xff]  ;;  %v871_v41 = vld [vmem:[%s2403_s6 + $0x30] sm:$0xff]  ;;  %v874_v42 = vld [vmem:[%s2403_s6 + $0x48] sm:$0xff] }
  0x1a   : > { %360 = vperm.xlu1 %1864, %v346_v12   ;;  %355 = vperm.xlu0 %1863, %v345_v13   ;;  %v873_v43 = vld [vmem:[%s2403_s6 + $0x40] sm:$0xff]  ;;  %v876_v44 = vld [vmem:[%s2403_s6 + $0x58] sm:$0xff]  ;;  %v875_v45 = vld [vmem:[%s2403_s6 + $0x50] sm:$0xff] }
  0x1b   : > { %1745 = vmatmul.mubr.msk.f32.gmra.mxu0 %vm393_vm0, %v342_v15  ;;  %v878_v46 = vld [vmem:[%s2403_s6 + $0x68] sm:$0xff]  ;;  %v877_v47 = vld [vmem:[%s2403_s6 + $0x60] sm:$0xff]  ;;  %v880_v48 = vld [vmem:[%s2403_s6 + $0x78] sm:$0xff] }
  0x1c   : > { %1747 = vmatprep.mubr.msk.f32.mxu0 %vm393_vm0, %v343_v18  ;;  %v879_v49 = vld [vmem:[%s2403_s6 + $0x70] sm:$0xff]  ;;  %v882_v50 = vld [vmem:[%s2403_s6 + $0x88] sm:$0xff]  ;;  %v881_v51 = vld [vmem:[%s2403_s6 + $0x80] sm:$0xff] }
  0x1d   : > { %v884_v52 = vld [vmem:[%s2403_s6 + $0x98] sm:$0xff]  ;;  %v883_v53 = vld [vmem:[%s2403_s6 + $0x90] sm:$0xff]  ;;  %v886_v54 = vld [vmem:[%s2403_s6 + $0xa8] sm:$0xff] }
  0x1e   : > { %644 = vperm.xlu1 %1864, %v566_v16   ;;  %639 = vperm.xlu0 %1863, %v565_v17   ;;  %v885_v55 = vld [vmem:[%s2403_s6 + $0xa0] sm:$0xff]  ;;  %v888_v56 = vld [vmem:[%s2403_s6 + $0xb8] sm:$0xff]  ;;  %v887_v57 = vld [vmem:[%s2403_s6 + $0xb0] sm:$0xff] }
  0x1f   : > { %1748 = vmatmul.mubr.msk.f32.gmra.mxu0 %vm393_vm0, %v344_v19  ;;  %v890_v58 = vld [vmem:[%s2403_s6 + $0xc8] sm:$0xff]  ;;  %v889_v59 = vld [vmem:[%s2403_s6 + $0xc0] sm:$0xff]  ;;  %v892_v60 = vld [vmem:[%s2403_s6 + $0xd8] sm:$0xff] }
  0x20   : > { %v891_v61 = vld [vmem:[%s2403_s6 + $0xd0] sm:$0xff]  ;;  %v894_v62 = vld [vmem:[%s2403_s6 + $0xe8] sm:$0xff]  ;;  %v893_v63 = vld [vmem:[%s2403_s6 + $0xe0] sm:$0xff] }
  0x21   : > { %v896_v0 = vld [vmem:[%s2403_s6 + $0xf8] sm:$0xff]  ;;  %v895_v1 = vld [vmem:[%s2403_s6 + $0xf0] sm:$0xff]  ;;  %v1865_v2 = vld [vmem:[%s2400_s3] sm:$0xff]  }
  0x22   : > { %634 = vperm.xlu1 %1864, %v564_v20   ;;  %629 = vperm.xlu0 %1863, %v563_v21  }
  0x23   : > { %1758 = vmatprep.mubr.msk.bf16.mxu1 %vm687_vm1, %v1865_v2 }
  0x26   : > { %624 = vperm.xlu1 %1864, %v562_v22   ;;  %619 = vperm.xlu0 %1863, %v561_v23  }
  0x2a   : > { %614 = vperm.xlu1 %1864, %v560_v24   ;;  %609 = vperm.xlu0 %1863, %v559_v25  }
  0x2e   : > { %604 = vperm.xlu1 %1864, %v558_v26   ;;  %599 = vperm.xlu0 %1863, %v557_v27  }
  0x32   : > { %594 = vperm.xlu1 %1864, %v556_v28   ;;  %589 = vperm.xlu0 %1863, %v555_v29  }
  0x36   : > { %584 = vperm.xlu1 %1864, %v554_v30   ;;  %579 = vperm.xlu0 %1863, %v553_v31  }
  0x3a   : > { %574 = vperm.xlu1 %1864, %v552_v32   ;;  %569 = vperm.xlu0 %1863, %v551_v33  }
  0x3e   : > { %904 = vperm.xlu1 %1864, %v866_v34   ;;  %899 = vperm.xlu0 %1863, %v865_v35  }
  0x42   : > { %914 = vperm.xlu1 %1864, %v868_v36   ;;  %909 = vperm.xlu0 %1863, %v867_v37  }
  0x46   : > { %924 = vperm.xlu1 %1864, %v870_v38   ;;  %919 = vperm.xlu0 %1863, %v869_v39   ;;  %v1866_v39 = vld [vmem:[%s2400_s3 + $0x8] sm:$0xff]  }
  0x4a   : > { %934 = vperm.xlu1 %1864, %v872_v40   ;;  %929 = vperm.xlu0 %1863, %v871_v41   ;;  %v1867_v40 = vld [vmem:[%s2400_s3 + $0x10] sm:$0xff]   ;;  %v1868_v41 = vld [vmem:[%s2400_s3 + $0x18] sm:$0xff]  }
  0x4e   : > { %944 = vperm.xlu1 %1864, %v874_v42   ;;  %939 = vperm.xlu0 %1863, %v873_v43   ;;  %v1869_v42 = vld [vmem:[%s2400_s3 + $0x20] sm:$0xff]   ;;  %v1870_v43 = vld [vmem:[%s2400_s3 + $0x28] sm:$0xff]  }
  0x52   : > { %954 = vperm.xlu1 %1864, %v876_v44   ;;  %949 = vperm.xlu0 %1863, %v875_v45   ;;  %v1871_v44 = vld [vmem:[%s2400_s3 + $0x30] sm:$0xff]   ;;  %v1872_v45 = vld [vmem:[%s2400_s3 + $0x38] sm:$0xff]  }
  0x56   : > { %964 = vperm.xlu1 %1864, %v878_v46   ;;  %959 = vperm.xlu0 %1863, %v877_v47   ;;  %v1873_v46 = vld [vmem:[%s2402_s5] sm:$0xff]   ;;  %v1874_v47 = vld [vmem:[%s2402_s5 + $0x50] sm:$0xff]  }
  0x57   : > { %1790 = vmatprep.mubr.bf16.mxu0 %v1873_v46 }
  0x5a   : > { %974 = vperm.xlu1 %1864, %v880_v48   ;;  %969 = vperm.xlu0 %1863, %v879_v49  }
  0x5e   : > { %984 = vperm.xlu1 %1864, %v882_v50   ;;  %979 = vperm.xlu0 %1863, %v881_v51  }
  0x62   : > { %994 = vperm.xlu1 %1864, %v884_v52   ;;  %989 = vperm.xlu0 %1863, %v883_v53  }
  0x66   : > { %1004 = vperm.xlu1 %1864, %v886_v54   ;;  %999 = vperm.xlu0 %1863, %v885_v55  }
  0x6a   : > { %1014 = vperm.xlu1 %1864, %v888_v56   ;;  %1009 = vperm.xlu0 %1863, %v887_v57  }
  0x6e   : > { %1024 = vperm.xlu1 %1864, %v890_v58   ;;  %1019 = vperm.xlu0 %1863, %v889_v59  }
  0x72   : > { %1034 = vperm.xlu1 %1864, %v892_v60   ;;  %1029 = vperm.xlu0 %1863, %v891_v61  }
  0x76   : > { %1044 = vperm.xlu1 %1864, %v894_v62   ;;  %1039 = vperm.xlu0 %1863, %v893_v63  }
  0x7a   : > { %1054 = vperm.xlu1 %1864, %v896_v0   ;;  %1049 = vperm.xlu0 %1863, %v895_v1  }
  0x89   : > { %v386_v4 = vpop.permute.xlu0 %385  ;;  %v376_v6 = vpop.permute.xlu1 %375 }
  0x8d   : > { %v391_v9 = vpop.permute.xlu0 %390  ;;  %v381_v11 = vpop.permute.xlu1 %380 }
  0x91   : > { %v366_v16 = vpop.permute.xlu0 %365  ;;  %v371_v20 = vpop.permute.xlu1 %370 }
  0x95   : > { %v356_v28 = vpop.permute.xlu0 %355  ;;  %v361_v32 = vpop.permute.xlu1 %360 }
  0x99   : > { %v645_v52 = vpop.permute.xlu1 %644  ;;  %v640_v54 = vpop.permute.xlu0 %639 }
  0x9d   : > { %v635_v57 = vpop.permute.xlu1 %634  ;;  %v630_v59 = vpop.permute.xlu0 %629 }
  0xa1   : > { %v625_v62 = vpop.permute.xlu1 %624  ;;  %v620_v0 = vpop.permute.xlu0 %619 }
  0xd3   : > { %v1740_v3 = vpop.f32.mrf.mxu0 }
  0xd4   : > { %v490_v33 = vadd.f32 %v1740_v3, %v361_v32  ;;  %v615_v3 = vpop.permute.xlu1 %614 }
  0xd5   : > { %v484_v5 = vpop.f32.mrf.mxu0 }
  0xd6   : > { %v485_v29 = vadd.f32 %v484_v5, %v356_v28  ;;  %v524_v37 = vmax.f32 %v490_v33, 0.0 }
  0xd7   : > { %v1743_v7 = vpop.f32.mrf.mxu0 }
  0xd8   : > { %v500_v25 = vadd.f32 %v1743_v7, %v371_v20  ;;  %v523_v35 = vmax.f32 %v485_v29, 0.0 }
  0xd9   : > { %v494_v8 = vpop.f32.mrf.mxu0 }
  0xda   : > { %v495_v21 = vadd.f32 %v494_v8, %v366_v16  ;;  %v526_v34 = vmax.f32 %v500_v25, 0.0  ;;  %v547_v38 = vpack.c.bf16 %v524_v37, %v523_v35 }
  0xdb   : > { %v1746_v10 = vpop.f32.mrf.mxu0 }
  0xdc   : > { %v510_v18 = vadd.f32 %v1746_v10, %v381_v11  ;;  %v525_v30 = vmax.f32 %v495_v21, 0.0 }
  0xdd   : > { %v504_v12 = vpop.f32.mrf.mxu0 }
  0xde   : > { %v505_v14 = vadd.f32 %v504_v12, %v376_v6  ;;  %v528_v26 = vmax.f32 %v510_v18, 0.0  ;;  %v548_v36 = vpack.c.bf16 %v526_v34, %v525_v30  ;;  %v610_v6 = vpop.permute.xlu0 %609 }
  0xdf   : > { %v1749_v13 = vpop.f32.mrf.mxu0 }
  0xe0   : > { %v520_v15 = vadd.f32 %v1749_v13, %v391_v9  ;;  %v527_v22 = vmax.f32 %v505_v14, 0.0 }
  0xe1   : > { %v514_v17 = vpop.f32.mrf.mxu0 }
  0xe2   : > { %v515_v19 = vadd.f32 %v514_v17, %v386_v4  ;;  %v530_v23 = vmax.f32 %v520_v15, 0.0  ;;  %v549_v31 = vpack.c.bf16 %v528_v26, %v527_v22  ;;  %v605_v15 = vpop.permute.xlu1 %604  ;;  %v600_v20 = vpop.permute.xlu0 %599 }
  0xe4   : > { %v529_v24 = vmax.f32 %v515_v19, 0.0 }
  0xe6   : > { %v550_v27 = vpack.c.bf16 %v530_v23, %v529_v24  ;;  %v595_v26 = vpop.permute.xlu1 %594  ;;  %v590_v30 = vpop.permute.xlu0 %589 }
  0xe8   : > { %1750 = vmatprep.subr.bf16.mxu1 %v550_v27 }
  0xe9   : > { %1751 = vmatpush3.bf16.msra.mxu1 %v550_v27 }
  0xea   : > { %1752 = vmatprep.subr.bf16.mxu1 %v549_v31 }
  0xed   : > { %1753 = vmatpush3.bf16.msra.mxu1 %v549_v31 }
  0xee   : > { %1754 = vmatprep.subr.bf16.mxu1 %v548_v36 }
  0xf1   : > { %1755 = vmatpush3.bf16.msra.mxu1 %v548_v36  ;;  %v585_v36 = vpop.permute.xlu1 %584 }
  0xf2   : > { %1756 = vmatprep.subr.bf16.mxu1 %v547_v38 }
  0xf5   : > { %1757 = vmatpush3.bf16.msra.mxu1 %v547_v38 }
  0xf8   : > { %1759 = vmatmul.mubr.msk.bf16.vlgmr.msra.gmra.mxu1 %vm687_vm1, %v1866_v39  ;;  %v580_v39 = vpop.permute.xlu0 %579 }
  0xf9   : > { %1762 = vmatprep.mubr.msk.bf16.mxu1 %vm687_vm1, %v1867_v40 }
 0x100   : > { %1763 = vmatmul.mubr.msk.bf16.gmra.mxu1 %vm687_vm1, %v1868_v41 }
 0x101   : > { %1766 = vmatprep.mubr.msk.bf16.mxu1 %vm687_vm1, %v1869_v42 }
 0x108   : > { %1767 = vmatmul.mubr.msk.bf16.gmra.mxu1 %vm687_vm1, %v1870_v43 }
 0x109   : > { %1770 = vmatprep.mubr.msk.bf16.mxu1 %vm687_vm1, %v1871_v44 }
 0x110   : > { %1771 = vmatmul.mubr.msk.bf16.gmra.mxu1 %vm687_vm1, %v1872_v45  ;;  %v575_v45 = vpop.permute.xlu1 %574 }
 0x111   : > { %1810 = vmatprep.mubr.bf16.mxu1 %v1874_v47 }
 0x1b8   : > { %v2216_v48 = vpop.f32.mrf.mxu1 }
 0x1b9   : > { %v755_v43 = vadd.f32 %v2216_v48, %v580_v39 }
 0x1ba   : > { %v2218_v49 = vpop.f32.mrf.mxu1 }
 0x1bc   : > { %v2220_v50 = vpop.f32.mrf.mxu1 }
 0x1bd   : > { %v758_v40 = vadd.f32 %v2220_v50, %v585_v36 }
 0x1be   : > { %v2222_v51 = vpop.f32.mrf.mxu1 }
 0x1bf   : > { %v812_v46 = vmax.f32 %v758_v40, 0.0  ;;  %v750_v47 = vadd.f32 %v2222_v51, %v575_v45  ;;  %v1875_v51 = vld [vmem:[%s2402_s5 + $0x8] sm:$0xff]  }
 0x1c0   : > { %v1764_v53 = vpop.f32.mrf.mxu1 }
 0x1c1   : > { %v771_v31 = vadd.f32 %v1764_v53, %v600_v20  ;;  %v570_v53 = vpop.permute.xlu0 %569 }
 0x1c2   : > { %v762_v55 = vpop.f32.mrf.mxu1  ;;  %v747_v50 = vadd.f32 %v2218_v49, %v570_v53  ;;  %v1876_v49 = vld [vmem:[%s2402_s5 + $0x58] sm:$0xff]  }
 0x1c3   : > { %v815_v37 = vmax.f32 %v771_v31, 0.0  ;;  %v763_v38 = vadd.f32 %v762_v55, %v590_v30 }
 0x1c4   : > { %v1765_v56 = vpop.f32.mrf.mxu1  ;;  %v809_v48 = vmax.f32 %v747_v50, 0.0 }
 0x1c5   : > { %v774_v27 = vadd.f32 %v1765_v56, %v605_v15  ;;  %v813_v44 = vmax.f32 %v763_v38, 0.0  ;;  %v810_v56 = vmax.f32 %v750_v47, 0.0 }
 0x1c6   : > { %v765_v58 = vpop.f32.mrf.mxu1 }
 0x1c7   : > { %v816_v33 = vmax.f32 %v774_v27, 0.0  ;;  %v766_v34 = vadd.f32 %v765_v58, %v595_v26  ;;  %v1877_v58 = vld [vmem:[%s2402_s5 + $0x10] sm:$0xff]  }
 0x1c8   : > { %v1768_v60 = vpop.f32.mrf.mxu1 }
 0x1c9   : > { %v787_v16 = vadd.f32 %v1768_v60, %v620_v0  ;;  %v860_v41 = vpack.c.bf16 %v816_v33, %v815_v37  ;;  %v814_v42 = vmax.f32 %v766_v34, 0.0  ;;  %v1879_v60 = vld [vmem:[%s2402_s5 + $0x18] sm:$0xff]   ;;  %v1883_v0 = vld [vmem:[%s2402_s5 + $0x28] sm:$0xff]  }
 0x1ca   : > { %v778_v61 = vpop.f32.mrf.mxu1 }
 0x1cb   : > { %v819_v24 = vmax.f32 %v787_v16, 0.0  ;;  %v779_v25 = vadd.f32 %v778_v61, %v610_v6  ;;  %v1880_v61 = vld [vmem:[%s2402_s5 + $0x68] sm:$0xff]   ;;  %v900_v6 = vpop.permute.xlu0 %899 }
 0x1cc   : > { %v1769_v63 = vpop.f32.mrf.mxu1 }
 0x1cd   : > { %v790_v11 = vadd.f32 %v1769_v63, %v625_v62  ;;  %v817_v32 = vmax.f32 %v779_v25, 0.0  ;;  %v1881_v62 = vld [vmem:[%s2402_s5 + $0x20] sm:$0xff]   ;;  %v1882_v63 = vld [vmem:[%s2402_s5 + $0x70] sm:$0xff]  }
 0x1ce   : > { %v781_v1 = vpop.f32.mrf.mxu1 }
 0x1cf   : > { %v820_v21 = vmax.f32 %v790_v11, 0.0  ;;  %v782_v22 = vadd.f32 %v781_v1, %v615_v3  ;;  %v1884_v1 = vld [vmem:[%s2402_s5 + $0x78] sm:$0xff]  }
 0x1d0   : > { %v1772_v2 = vpop.f32.mrf.mxu1  ;;  %v1886_v3 = vld [vmem:[%s2402_s5 + $0x38] sm:$0xff]  }
 0x1d1   : > { %v803_v5 = vadd.f32 %v1772_v2, %v640_v54  ;;  %v862_v28 = vpack.c.bf16 %v820_v21, %v819_v24  ;;  %v818_v29 = vmax.f32 %v782_v22, 0.0  ;;  %v811_v54 = vmax.f32 %v755_v43, 0.0  ;;  %v1885_v2 = vld [vmem:[%s2402_s5 + $0x30] sm:$0xff]  }
 0x1d2   : > { %v794_v4 = vpop.f32.mrf.mxu1 }
 0x1d3   : > { %v795_v8 = vadd.f32 %v794_v4, %v630_v59  ;;  %v823_v12 = vmax.f32 %v803_v5, 0.0  ;;  %v861_v35 = vpack.c.bf16 %v818_v29, %v817_v32  ;;  %v858_v55 = vpack.c.bf16 %v812_v46, %v811_v54  ;;  %v1878_v59 = vld [vmem:[%s2402_s5 + $0x60] sm:$0xff]   ;;  %v1888_v5 = vld [vmem:[%s2402_s5 + $0x48] sm:$0xff]  }
 0x1d4   : > { %v1773_v7 = vpop.f32.mrf.mxu1  ;;  %v1887_v4 = vld [vmem:[%s2402_s5 + $0x40] sm:$0xff]  }
 0x1d5   : > { %v806_v9 = vadd.f32 %v1773_v7, %v645_v52  ;;  %v821_v17 = vmax.f32 %v795_v8, 0.0  ;;  %v859_v52 = vpack.c.bf16 %v814_v42, %v813_v44  ;;  %v910_v7 = vpop.permute.xlu0 %909  ;;  %v905_v8 = vpop.permute.xlu1 %904 }
 0x1d6   : > { %v797_v10 = vpop.f32.mrf.mxu1 }
 0x1d7   : > { %v824_v13 = vmax.f32 %v806_v9, 0.0  ;;  %v798_v14 = vadd.f32 %v797_v10, %v635_v57  ;;  %v857_v57 = vpack.c.bf16 %v810_v56, %v809_v48 }
 0x1d9   : > { %v864_v18 = vpack.c.bf16 %v824_v13, %v823_v12  ;;  %v822_v19 = vmax.f32 %v798_v14, 0.0  ;;  %v2270_v9 = vpop.permute.xlu0 %919  ;;  %v915_v10 = vpop.permute.xlu1 %914 }
 0x1db   : > { %v863_v23 = vpack.c.bf16 %v822_v19, %v821_v17  ;;  %1774 = vmatprep.subr.bf16.mxu0 %v864_v18  ;;  %1822 = vmatprep.subr.bf16.mxu1 %v864_v18 }
 0x1dc   : > { %1775 = vmatpush3.bf16.msra.mxu0 %v864_v18  ;;  %1830 = vmatpush3.bf16.msra.mxu1 %v864_v18 }
 0x1dd   : > { %1776 = vmatprep.subr.bf16.mxu0 %v863_v23  ;;  %1823 = vmatprep.subr.bf16.mxu1 %v863_v23  ;;  %v930_v11 = vpop.permute.xlu0 %929  ;;  %v2272_v12 = vpop.permute.xlu1 %924 }
 0x1e0   : > { %1777 = vmatpush3.bf16.msra.mxu0 %v863_v23  ;;  %1831 = vmatpush3.bf16.msra.mxu1 %v863_v23 }
 0x1e1   : > { %1778 = vmatprep.subr.bf16.mxu0 %v862_v28  ;;  %1824 = vmatprep.subr.bf16.mxu1 %v862_v28  ;;  %v2274_v13 = vpop.permute.xlu0 %939  ;;  %v2276_v14 = vpop.permute.xlu1 %934 }
 0x1e4   : > { %1779 = vmatpush3.bf16.msra.mxu0 %v862_v28  ;;  %1832 = vmatpush3.bf16.msra.mxu1 %v862_v28 }
 0x1e5   : > { %1780 = vmatprep.subr.bf16.mxu0 %v861_v35  ;;  %1825 = vmatprep.subr.bf16.mxu1 %v861_v35  ;;  %v2278_v15 = vpop.permute.xlu0 %949  ;;  %v2280_v16 = vpop.permute.xlu1 %944 }
 0x1e8   : > { %1781 = vmatpush3.bf16.msra.mxu0 %v861_v35  ;;  %1833 = vmatpush3.bf16.msra.mxu1 %v861_v35 }
 0x1e9   : > { %1782 = vmatprep.subr.bf16.mxu0 %v860_v41  ;;  %1826 = vmatprep.subr.bf16.mxu1 %v860_v41  ;;  %v2282_v17 = vpop.permute.xlu0 %959  ;;  %v2284_v18 = vpop.permute.xlu1 %954 }
 0x1ec   : > { %1783 = vmatpush3.bf16.msra.mxu0 %v860_v41  ;;  %1834 = vmatpush3.bf16.msra.mxu1 %v860_v41 }
 0x1ed   : > { %1784 = vmatprep.subr.bf16.mxu0 %v859_v52  ;;  %1827 = vmatprep.subr.bf16.mxu1 %v859_v52  ;;  %v2286_v19 = vpop.permute.xlu0 %969  ;;  %v2288_v20 = vpop.permute.xlu1 %964 }
 0x1f0   : > { %1785 = vmatpush3.bf16.msra.mxu0 %v859_v52  ;;  %1835 = vmatpush3.bf16.msra.mxu1 %v859_v52 }
 0x1f1   : > { %1786 = vmatprep.subr.bf16.mxu0 %v858_v55  ;;  %1828 = vmatprep.subr.bf16.mxu1 %v858_v55  ;;  %v2290_v21 = vpop.permute.xlu0 %979  ;;  %v2292_v22 = vpop.permute.xlu1 %974 }
 0x1f4   : > { %1787 = vmatpush3.bf16.msra.mxu0 %v858_v55  ;;  %1836 = vmatpush3.bf16.msra.mxu1 %v858_v55 }
 0x1f5   : > { %1788 = vmatprep.subr.bf16.mxu0 %v857_v57  ;;  %1829 = vmatprep.subr.bf16.mxu1 %v857_v57  ;;  %v2294_v23 = vpop.permute.xlu0 %989  ;;  %v2296_v24 = vpop.permute.xlu1 %984 }
 0x1f8   : > { %1789 = vmatpush3.bf16.msra.mxu0 %v857_v57  ;;  %1837 = vmatpush3.bf16.msra.mxu1 %v857_v57 }
 0x1f9   : > { %v1000_v25 = vpop.permute.xlu0 %999  ;;  %v2298_v26 = vpop.permute.xlu1 %994 }
 0x1fb   : > { %1791 = vmatmul.mubr.bf16.vlgmr.msra.gmra.mxu0 %v1875_v51  ;;  %1811 = vmatmul.mubr.bf16.vlgmr.msra.gmra.mxu1 %v1876_v49 }
 0x1fc   : > { %1794 = vmatprep.mubr.bf16.mxu0 %v1877_v58  ;;  %1814 = vmatprep.mubr.bf16.mxu1 %v1878_v59 }
 0x1fd   : > { %v1010_v27 = vpop.permute.xlu0 %1009  ;;  %v1005_v30 = vpop.permute.xlu1 %1004 }
 0x201   : > { %v1015_v52 = vpop.permute.xlu1 %1014  ;;  %v1020_v53 = vpop.permute.xlu0 %1019 }
 0x203   : > { %1795 = vmatmul.mubr.bf16.gmra.mxu0 %v1879_v60  ;;  %1815 = vmatmul.mubr.bf16.gmra.mxu1 %v1880_v61 }
 0x204   : > { %1798 = vmatprep.mubr.bf16.mxu0 %v1881_v62  ;;  %1818 = vmatprep.mubr.bf16.mxu1 %v1882_v63 }
 0x205   : > { %v1025_v61 = vpop.permute.xlu1 %1024  ;;  %v1030_v62 = vpop.permute.xlu0 %1029 }
 0x20b   : > { %1799 = vmatmul.mubr.bf16.gmra.mxu0 %v1883_v0  ;;  %1819 = vmatmul.mubr.bf16.gmra.mxu1 %v1884_v1 }
 0x20c   : > { %1802 = vmatprep.mubr.bf16.mxu0 %v1885_v2 }
 0x213   : > { %1803 = vmatmul.mubr.bf16.gmra.mxu0 %v1886_v3 }
 0x214   : > { %1806 = vmatprep.mubr.bf16.mxu0 %v1887_v4 }
 0x21b   : > { %1807 = vmatmul.mubr.bf16.gmra.mxu0 %v1888_v5 }
 0x2bb   : > { %v1792_v28 = vpop.f32.mrf.mxu0  ;;  %v1812_v29 = vpop.f32.mrf.mxu1 }
 0x2bc   : > { %v1196_v31 = vadd.f32 %v1792_v28, %v910_v7  ;;  %v1276_v32 = vadd.f32 %v1812_v29, %v1010_v27 }
 0x2bd   : > { %v1187_v33 = vpop.f32.mrf.mxu0  ;;  %v1267_v34 = vpop.f32.mrf.mxu1 }
 0x2be   : > { %v1316_v35 = vmax.f32 %v1196_v31, 0.0  ;;  %v1336_v36 = vmax.f32 %v1276_v32, 0.0  ;;  %v1188_v37 = vadd.f32 %v1187_v33, %v900_v6  ;;  %v1268_v38 = vadd.f32 %v1267_v34, %v1000_v25 }
 0x2bf   : > { %v1793_v39 = vpop.f32.mrf.mxu0  ;;  %v1813_v40 = vpop.f32.mrf.mxu1 }
 0x2c0   : > { %v1199_v41 = vadd.f32 %v1793_v39, %v915_v10  ;;  %v1314_v42 = vmax.f32 %v1188_v37, 0.0  ;;  %v1334_v43 = vmax.f32 %v1268_v38, 0.0  ;;  %v1400_v46 = vmax.f32 %v1336_v36, 0.0 }
 0x2c1   : > { %v1190_v44 = vpop.f32.mrf.mxu0  ;;  %v1270_v45 = vpop.f32.mrf.mxu1  ;;  %v1380_v47 = vmax.f32 %v1316_v35, 0.0  ;;  %v1279_v56 = vadd.f32 %v1813_v40, %v1015_v52 }
 0x2c2   : > { %v1191_v54 = vadd.f32 %v1190_v44, %v905_v8  ;;  %1521 = vmax.xlane.f32.xlu1 %v1400_v46  ;;  %v1317_v55 = vmax.f32 %v1199_v41, 0.0  ;;  %v1398_v58 = vmax.f32 %v1334_v43, 0.0  ;;  %v1378_v59 = vmax.f32 %v1314_v42, 0.0 }
 0x2c3   : > { %1481 = vmax.xlane.f32.xlu0 %v1380_v47  ;;  %v1796_v50 = vpop.f32.mrf.mxu0  ;;  %v1816_v51 = vpop.f32.mrf.mxu1  ;;  %v1337_v63 = vmax.f32 %v1279_v56, 0.0  ;;  %v1271_v0 = vadd.f32 %v1270_v45, %v1005_v30 }
 0x2c4   : > { %v1315_v48 = vmax.f32 %v1191_v54, 0.0  ;;  %v1212_v57 = vadd.f32 %v1796_v50, %v930_v11  ;;  %v1292_v2 = vadd.f32 %v1816_v51, %v1030_v62  ;;  %v1381_v6 = vmax.f32 %v1317_v55, 0.0  ;;  %v1035_v30 = vpop.permute.xlu1 %1034 }
 0x2c5   : > { %v1203_v49 = vpop.f32.mrf.mxu0  ;;  %v1283_v3 = vpop.f32.mrf.mxu1  ;;  %v1335_v8 = vmax.f32 %v1271_v0, 0.0  ;;  %v1401_v10 = vmax.f32 %v1337_v63, 0.0 }
 0x2c6   : > { %1517 = vmax.xlane.f32.xlu1 %v1398_v58  ;;  %v1320_v1 = vmax.f32 %v1212_v57, 0.0  ;;  %v1379_v5 = vmax.f32 %v1315_v48, 0.0  ;;  %v1340_v11 = vmax.f32 %v1292_v2, 0.0  ;;  %v1204_v25 = vadd.f32 %v1203_v49, %v2270_v9  ;;  %v1040_v57 = vpop.permute.xlu0 %1039 }
 0x2c7   : > { %1477 = vmax.xlane.f32.xlu0 %v1378_v59  ;;  %v1797_v60 = vpop.f32.mrf.mxu0  ;;  %v1817_v28 = vpop.f32.mrf.mxu1  ;;  %v1284_v33 = vadd.f32 %v1283_v3, %v1020_v53  ;;  %v1399_v39 = vmax.f32 %v1335_v8, 0.0 }
 0x2c8   : > { %v1215_v27 = vadd.f32 %v1797_v60, %v2276_v14  ;;  %v1384_v31 = vmax.f32 %v1320_v1, 0.0  ;;  %v1295_v34 = vadd.f32 %v1817_v28, %v1035_v30  ;;  %v1318_v35 = vmax.f32 %v1204_v25, 0.0 }
 0x2c9   : > { %v1206_v4 = vpop.f32.mrf.mxu0  ;;  %v1286_v37 = vpop.f32.mrf.mxu1  ;;  %v1404_v38 = vmax.f32 %v1340_v11, 0.0  ;;  %v1338_v9 = vmax.f32 %v1284_v33, 0.0 }
 0x2ca   : > { %1479 = vmax.xlane.f32.xlu1 %v1379_v5  ;;  %v1321_v36 = vmax.f32 %v1215_v27, 0.0  ;;  %v1341_v41 = vmax.f32 %v1295_v34, 0.0  ;;  %v1207_v14 = vadd.f32 %v1206_v4, %v2272_v12  ;;  %v1382_v44 = vmax.f32 %v1318_v35, 0.0  ;;  %v1045_v5 = vpop.permute.xlu1 %1044 }
 0x2cb   : > { %1483 = vmax.xlane.f32.xlu0 %v1381_v6  ;;  %v1800_v7 = vpop.f32.mrf.mxu0  ;;  %v2304_v43 = vpop.f32.mrf.mxu1  ;;  %v1287_v47 = vadd.f32 %v1286_v37, %v1025_v61  ;;  %v1402_v52 = vmax.f32 %v1338_v9, 0.0 }
 0x2cc   : > { %v1228_v42 = vadd.f32 %v1800_v7, %v2278_v15  ;;  %v1385_v45 = vmax.f32 %v1321_v36, 0.0  ;;  %v1319_v53 = vmax.f32 %v1207_v14, 0.0  ;;  %v1405_v56 = vmax.f32 %v1341_v41, 0.0 }
 0x2cd   : > { %v1219_v29 = vpop.f32.mrf.mxu0  ;;  %v1299_v55 = vpop.f32.mrf.mxu1  ;;  %v1339_v12 = vmax.f32 %v1287_v47, 0.0 }
 0x2ce   : > { %1489 = vmax.xlane.f32.xlu1 %v1384_v31  ;;  %v1324_v54 = vmax.f32 %v1228_v42, 0.0  ;;  %v1220_v50 = vadd.f32 %v1219_v29, %v2274_v13  ;;  %v1300_v15 = vadd.f32 %v1299_v55, %v1040_v57  ;;  %v1383_v60 = vmax.f32 %v1319_v53, 0.0 }
 0x2cf   : > { %1523 = vmax.xlane.f32.xlu0 %v1401_v10  ;;  %v1801_v32 = vpop.f32.mrf.mxu0  ;;  %v1821_v58 = vpop.f32.mrf.mxu1  ;;  %v1403_v13 = vmax.f32 %v1339_v12, 0.0 }
 0x2d0   : > { %v1322_v51 = vmax.f32 %v1220_v50, 0.0  ;;  %v1231_v49 = vadd.f32 %v1801_v32, %v2284_v18  ;;  %v1388_v59 = vmax.f32 %v1324_v54, 0.0  ;;  %v1342_v63 = vmax.f32 %v1300_v15, 0.0 }
 0x2d1   : > { %v1222_v40 = vpop.f32.mrf.mxu0  ;;  %v1302_v1 = vpop.f32.mrf.mxu1 }
 0x2d2   : > { %1529 = vmax.xlane.f32.xlu1 %v1404_v38  ;;  %v1223_v62 = vadd.f32 %v1222_v40, %v2280_v16  ;;  %v1325_v0 = vmax.f32 %v1231_v49, 0.0  ;;  %v1386_v3 = vmax.f32 %v1322_v51, 0.0  ;;  %v1303_v6 = vadd.f32 %v1302_v1, %v1045_v5  ;;  %v1050_v38 = vpop.permute.xlu0 %1049 }
 0x2d3   : > { %1519 = vmax.xlane.f32.xlu0 %v1399_v39  ;;  %v1804_v46 = vpop.f32.mrf.mxu0  ;;  %v1406_v10 = vmax.f32 %v1342_v63, 0.0 }
 0x2d4   : > { %v1244_v2 = vadd.f32 %v1804_v46, %v2286_v19  ;;  %v1323_v18 = vmax.f32 %v1223_v62, 0.0  ;;  %v1389_v11 = vmax.f32 %v1325_v0, 0.0  ;;  %v1343_v16 = vmax.f32 %v1303_v6, 0.0  ;;  %v1055_v46 = vpop.permute.xlu1 %1054 }
 0x2d5   : > { %v1235_v48 = vpop.f32.mrf.mxu0 }
 0x2d6   : > { %1485 = vmax.xlane.f32.xlu1 %v1382_v44  ;;  %v1328_v7 = vmax.f32 %v1244_v2, 0.0  ;;  %v1236_v8 = vadd.f32 %v1235_v48, %v2282_v17  ;;  %v1387_v27 = vmax.f32 %v1323_v18, 0.0  ;;  %v1407_v33 = vmax.f32 %v1343_v16, 0.0 }
 0x2d7   : > { %1491 = vmax.xlane.f32.xlu0 %v1385_v45  ;;  %v1805_v61 = vpop.f32.mrf.mxu0 }
 0x2d8   : > { %v1326_v28 = vmax.f32 %v1236_v8, 0.0  ;;  %v1247_v19 = vadd.f32 %v1805_v61, %v2292_v22  ;;  %v1392_v31 = vmax.f32 %v1328_v7, 0.0  ;;  %v1308_v22 = vadd.f32 %v2304_v43, %v1050_v38 }
 0x2d9   : > { %v1238_v4 = vpop.f32.mrf.mxu0  ;;  %v1311_v43 = vadd.f32 %v1821_v58, %v1055_v46 }
 0x2da   : > { %1525 = vmax.xlane.f32.xlu1 %v1402_v52  ;;  %v1239_v32 = vadd.f32 %v1238_v4, %v2288_v20  ;;  %v1329_v17 = vmax.f32 %v1247_v19, 0.0  ;;  %v1390_v36 = vmax.f32 %v1326_v28, 0.0  ;;  %v1344_v20 = vmax.f32 %v1308_v22, 0.0 }
 0x2db   : > { %1531 = vmax.xlane.f32.xlu0 %v1405_v56  ;;  %v1808_v25 = vpop.f32.mrf.mxu0 }
 0x2dc   : > { %v1260_v29 = vadd.f32 %v1808_v25, %v2294_v23  ;;  %v1327_v39 = vmax.f32 %v1239_v32, 0.0  ;;  %v1393_v41 = vmax.f32 %v1329_v17, 0.0  ;;  %v1408_v52 = vmax.f32 %v1344_v20, 0.0 }
 0x2dd   : > { %v1251_v30 = vpop.f32.mrf.mxu0 }
 0x2de   : > { %1497 = vmax.xlane.f32.xlu1 %v1388_v59  ;;  %v1332_v34 = vmax.f32 %v1260_v29, 0.0  ;;  %v1252_v35 = vadd.f32 %v1251_v30, %v2290_v21  ;;  %v1391_v45 = vmax.f32 %v1327_v39, 0.0 }
 0x2df   : > { %1487 = vmax.xlane.f32.xlu0 %v1383_v60  ;;  %v1809_v37 = vpop.f32.mrf.mxu0 }
 0x2e0   : > { %v1330_v23 = vmax.f32 %v1252_v35, 0.0  ;;  %v1263_v40 = vadd.f32 %v1809_v37, %v2298_v26  ;;  %v1396_v9 = vmax.f32 %v1332_v34, 0.0  ;;  %v1345_v26 = vmax.f32 %v1311_v43, 0.0 }
 0x2e1   : > { %v1254_v14 = vpop.f32.mrf.mxu0 }
 0x2e2   : > { %1493 = vmax.xlane.f32.xlu1 %v1386_v3  ;;  %v1333_v42 = vmax.f32 %v1263_v40, 0.0  ;;  %v1255_v21 = vadd.f32 %v1254_v14, %v2296_v24  ;;  %v1394_v44 = vmax.f32 %v1330_v23, 0.0  ;;  %v1409_v50 = vmax.f32 %v1345_v26, 0.0 }
 0x2e3   : > { %1527 = vmax.xlane.f32.xlu0 %v1403_v13 }
 0x2e4   : > { %v1331_v47 = vmax.f32 %v1255_v21, 0.0  ;;  %v1397_v53 = vmax.f32 %v1333_v42, 0.0 }
 0x2e6   : > { %1533 = vmax.xlane.f32.xlu1 %v1406_v10  ;;  %v1395_v54 = vmax.f32 %v1331_v47, 0.0 }
 0x2e7   : > { %1499 = vmax.xlane.f32.xlu0 %v1389_v11 }
 0x2ea   : > { %1505 = vmax.xlane.f32.xlu1 %v1392_v31 }
 0x2eb   : > { %1495 = vmax.xlane.f32.xlu0 %v1387_v27 }
 0x2ee   : > { %1501 = vmax.xlane.f32.xlu1 %v1390_v36 }
 0x2ef   : > { %1535 = vmax.xlane.f32.xlu0 %v1407_v33 }
 0x2f2   : > { %1513 = vmax.xlane.f32.xlu1 %v1396_v9 }
 0x2f3   : > { %1507 = vmax.xlane.f32.xlu0 %v1393_v41 }
 0x2f6   : > { %1509 = vmax.xlane.f32.xlu1 %v1394_v44 }
 0x2f7   : > { %1503 = vmax.xlane.f32.xlu0 %v1391_v45 }
 0x2fa   : > { %1537 = vmax.xlane.f32.xlu1 %v1408_v52 }
 0x2fb   : > { %1515 = vmax.xlane.f32.xlu0 %v1397_v53 }
 0x2ff   : > { %1511 = vmax.xlane.f32.xlu0 %v1395_v54 }
 0x303   : > { %1539 = vmax.xlane.f32.xlu0 %v1409_v50 }
 0x34b   : > { %v1522_v24 = vpop.xlane.xlu1 %1521 }
 0x34c   : > { %v1482_v55 = vpop.xlane.xlu0 %1481  ;;  %1564 = vst.msk [vmem:[%s2322_s17 + $0xb0] sm:$0xff] %vm1541_vm2, %v1522_v24 }
 0x34d   : > { %1544 = vst.msk [vmem:[%s2322_s17 + $0x10] sm:$0xff] %vm1541_vm2, %v1482_v55 }
 0x34f   : > { %v1518_v56 = vpop.xlane.xlu1 %1517 }
 0x350   : > { %v1478_v48 = vpop.xlane.xlu0 %1477  ;;  %1562 = vst.msk [vmem:[%s2322_s17 + $0xa0] sm:$0xff] %vm1541_vm2, %v1518_v56 }
 0x351   : > { %1542 = vst.msk [vmem:[%s2322_s17] sm:$0xff] %vm1541_vm2, %v1478_v48 }
 0x353   : > { %v1480_v57 = vpop.xlane.xlu1 %1479 }
 0x354   : > { %v1484_v12 = vpop.xlane.xlu0 %1483  ;;  %1543 = vst.msk [vmem:[%s2322_s17 + $0x8] sm:$0xff] %vm1541_vm2, %v1480_v57 }
 0x355   : > { %1545 = vst.msk [vmem:[%s2322_s17 + $0x18] sm:$0xff] %vm1541_vm2, %v1484_v12 }
 0x357   : > { %v1490_v15 = vpop.xlane.xlu1 %1489 }
 0x358   : > { %v1524_v51 = vpop.xlane.xlu0 %1523  ;;  %1548 = vst.msk [vmem:[%s2322_s17 + $0x30] sm:$0xff] %vm1541_vm2, %v1490_v15 }
 0x359   : > { %1565 = vst.msk [vmem:[%s2322_s17 + $0xb8] sm:$0xff] %vm1541_vm2, %v1524_v51 }
 0x35b   : > { %v1530_v49 = vpop.xlane.xlu1 %1529 }
 0x35c   : > { %v1520_v58 = vpop.xlane.xlu0 %1519  ;;  %1568 = vst.msk [vmem:[%s2322_s17 + $0xd0] sm:$0xff] %vm1541_vm2, %v1530_v49 }
 0x35d   : > { %1563 = vst.msk [vmem:[%s2322_s17 + $0xa8] sm:$0xff] %vm1541_vm2, %v1520_v58 }
 0x35f   : > { %v1486_v59 = vpop.xlane.xlu1 %1485 }
 0x360   : > { %v1492_v60 = vpop.xlane.xlu0 %1491  ;;  %1546 = vst.msk [vmem:[%s2322_s17 + $0x20] sm:$0xff] %vm1541_vm2, %v1486_v59 }
 0x361   : > { %1549 = vst.msk [vmem:[%s2322_s17 + $0x38] sm:$0xff] %vm1541_vm2, %v1492_v60 }
 0x363   : > { %v1526_v61 = vpop.xlane.xlu1 %1525 }
 0x364   : > { %v1532_v62 = vpop.xlane.xlu0 %1531  ;;  %1566 = vst.msk [vmem:[%s2322_s17 + $0xc0] sm:$0xff] %vm1541_vm2, %v1526_v61 }
 0x365   : > { %1569 = vst.msk [vmem:[%s2322_s17 + $0xd8] sm:$0xff] %vm1541_vm2, %v1532_v62 }
 0x367   : > { %v1498_v13 = vpop.xlane.xlu1 %1497 }
 0x368   : > { %v1488_v63 = vpop.xlane.xlu0 %1487  ;;  %1552 = vst.msk [vmem:[%s2322_s17 + $0x50] sm:$0xff] %vm1541_vm2, %v1498_v13 }
 0x369   : > { %1547 = vst.msk [vmem:[%s2322_s17 + $0x28] sm:$0xff] %vm1541_vm2, %v1488_v63 }
 0x36b   : > { %v1494_v0 = vpop.xlane.xlu1 %1493 }
 0x36c   : > { %v1528_v1 = vpop.xlane.xlu0 %1527  ;;  %1550 = vst.msk [vmem:[%s2322_s17 + $0x40] sm:$0xff] %vm1541_vm2, %v1494_v0 }
 0x36d   : > { %1567 = vst.msk [vmem:[%s2322_s17 + $0xc8] sm:$0xff] %vm1541_vm2, %v1528_v1 }
 0x36f   : > { %v1534_v2 = vpop.xlane.xlu1 %1533 }
 0x370   : > { %v1500_v3 = vpop.xlane.xlu0 %1499  ;;  %1570 = vst.msk [vmem:[%s2322_s17 + $0xe0] sm:$0xff] %vm1541_vm2, %v1534_v2 }
 0x371   : > { %1553 = vst.msk [vmem:[%s2322_s17 + $0x58] sm:$0xff] %vm1541_vm2, %v1500_v3 }
 0x373   : > { %v1506_v4 = vpop.xlane.xlu1 %1505 }
 0x374   : > { %v1496_v5 = vpop.xlane.xlu0 %1495  ;;  %1556 = vst.msk [vmem:[%s2322_s17 + $0x70] sm:$0xff] %vm1541_vm2, %v1506_v4 }
 0x375   : > { %1551 = vst.msk [vmem:[%s2322_s17 + $0x48] sm:$0xff] %vm1541_vm2, %v1496_v5 }
 0x377   : > { %v1502_v18 = vpop.xlane.xlu1 %1501 }
 0x378   : > { %v1536_v6 = vpop.xlane.xlu0 %1535  ;;  %1554 = vst.msk [vmem:[%s2322_s17 + $0x60] sm:$0xff] %vm1541_vm2, %v1502_v18 }
 0x379   : > { %1571 = vst.msk [vmem:[%s2322_s17 + $0xe8] sm:$0xff] %vm1541_vm2, %v1536_v6 }
 0x37b   : > { %v1514_v7 = vpop.xlane.xlu1 %1513 }
 0x37c   : > { %v1508_v8 = vpop.xlane.xlu0 %1507  ;;  %1560 = vst.msk [vmem:[%s2322_s17 + $0x90] sm:$0xff] %vm1541_vm2, %v1514_v7 }
 0x37d   : > { %1557 = vst.msk [vmem:[%s2322_s17 + $0x78] sm:$0xff] %vm1541_vm2, %v1508_v8 }
 0x37f   : > { %v1510_v10 = vpop.xlane.xlu1 %1509 }
 0x380   : > { %v1504_v11 = vpop.xlane.xlu0 %1503  ;;  %1558 = vst.msk [vmem:[%s2322_s17 + $0x80] sm:$0xff] %vm1541_vm2, %v1510_v10 }
 0x381   : > { %1555 = vst.msk [vmem:[%s2322_s17 + $0x68] sm:$0xff] %vm1541_vm2, %v1504_v11 }
 0x383   : > { %v1538_v25 = vpop.xlane.xlu1 %1537 }
 0x384   : > { %v1516_v16 = vpop.xlane.xlu0 %1515  ;;  %1572 = vst.msk [vmem:[%s2322_s17 + $0xf0] sm:$0xff] %vm1541_vm2, %v1538_v25 }
 0x385   : > { %1561 = vst.msk [vmem:[%s2322_s17 + $0x98] sm:$0xff] %vm1541_vm2, %v1516_v16 }
 0x388   : > { %v1512_v27 = vpop.xlane.xlu0 %1511 }
 0x389   : > { %1559 = vst.msk [vmem:[%s2322_s17 + $0x88] sm:$0xff] %vm1541_vm2, %v1512_v27 }
 0x38c   : > { %v1540_v28 = vpop.xlane.xlu0 %1539 }
 0x38d   : > { %1573 = vst.msk [vmem:[%s2322_s17 + $0xf8] sm:$0xff] %vm1541_vm2, %v1540_v28 }
 0x38e PF: > { %s17_s26 = sadd.s32 1, %s1911_s26   ;;  %s2405_s24 = smov %s1907_s25 }
 0x38f   : > { %p14_p5 = scmp.ge.s32.totalorder %s17_s26, 4   ;;  %s2406_s25 = smov %s2408_s27 }
 0x391   :  { %16 = sbr.rel (!%p14_p5) target bundleno = 2 (0x2), region = 86 }

// kernel: custom-call.22
= control target key start
LH: loop header
LB: loop body
LE: loop exit
PB: predicated region body
PF: predicated region fallthrough
CT: control target
= control target key end

     0   :  { %s1740_s30 = smov 0   ;;  %s1742_s10 = smov 0   ;;  %s2066_s0 = inlined_call_operand.vmem [shape: f32[2,2,2], index: 0, kind: input, shape index: {}]   ;;  %s2067_s1 = inlined_call_operand.vmem [shape: f32[2,2,2], index: 1, kind: input, shape index: {}]   ;;  %s2068_s2 = inlined_call_operand.vmem [shape: f32[2,2,2], index: 2, kind: input, shape index: {}]   ;;  %s2069_s3 = inlined_call_operand.vmem [shape: f32[2,2,2], index: 3, kind: input, shape index: {}]   ;;  %s2070_s4 = inlined_call_operand.vmem [shape: f32[2,2], index: 4, kind: output, shape index: {0}]   ;;  %s2071_s5 = inlined_call_operand.vmem [shape: f32[2,2], index: 5, kind: output, shape index: {1}]   ;;  %s2072_s6 = inlined_call_operand.vmem [shape: f32[2,2,2], index: 6, kind: output, shape index: {2}]   ;;  %s2073_s7 = inlined_call_operand.vmem [shape: f32[2,2,2], index: 7, kind: output, shape index: {3}]   ;;  %s2074_s8 = inlined_call_operand.vmem [shape: f32[2,2,2], index: 8, kind: output, shape index: {4}]   ;;  %s2075_s9 = inlined_call_operand.vmem [shape: f32[2,2,2], index: 9, kind: output, shape index: {5}]  }
   0x1   :  { %s1744_s11 = smov 0  }
   0x2 LB: > { %s1756_s12 = sadd.s32 4294967295, %s1677_s11   ;;  %s1759_s13 = sadd.s32 1, %s1677_s11   ;;  %s1677_s11 = sphi %s1744_s11, %s2094_s11   ;;  %s1673_s10 = sphi %s1742_s10, %s2093_s10   ;;  %s1669_s30 = sphi %s1740_s30, %s2092_s30  }
   0x3   : > { %s20_s14 = sshrl.u32 %s1677_s11, 3  ;;  %s21_s15 = sshrl.u32 %s1759_s13, 3 }
   0x4   : > { %s22_s16 = ssub.s32 %s20_s14, %s21_s15  ;;  %s25_s17 = sadd.s32 1, %s1673_s10 }
   0x5   : > { %p23_p0 = scmp.eq.s32.totalorder %s22_s16, 0  ;;  %p35_p1 = scmp.ne.s32.totalorder %s1673_s10, %s1669_s30 }
   0x6   : > { %p36_p2 = scmp.eq.s32.totalorder %s1756_s12, 1  ;;  %p1538_p4 = scmp.ge.s32.totalorder %s1677_s11, 2 }
   0x7   : > { %s1768_s18 = scalar_select %p23_p0, %s1673_s10, %s25_s17  }
   0x8   : > { %p1770_p3 = por %p36_p2, %p35_p1  ;;  %86 = sbr.rel (%p1538_p4) target bundleno = 18 (0x12), region = 16 }
   0x9   : > { %2076 = sst [smem:[#allocation33_spill]] %s1768_s18  ;;  %s88_s20 = sand.u32 (!%p1538_p4), 1, %s1677_s11  }
   0xa   : > { %s1540_s21 = sshll.u32 (!%p1538_p4), %s1677_s11, 1  ;;  %s1539_s22 = sshll.u32 (!%p1538_p4), %s88_s20, 1 }
   0xb   : > { %s92_s25 = scalar_lea.vmem (!%p1538_p4), %s2066_s0, %s1540_s21  ;;  %s90_s26 = scalar_lea.vmem (!%p1538_p4), [#allocation1], %s1539_s22 }
   0xc   : > { %s131_s29 = scalar_lea.vmem (!%p1538_p4), %s2067_s1, %s1540_s21  ;;  %s170_s16 = scalar_lea.vmem (!%p1538_p4), %s2068_s2, %s1540_s21 }
   0xd   : > { %v109_v0 = vld [vmem:[%s92_s25] sm:$0x3]  ;;  %s129_s17 = scalar_lea.vmem [#allocation3], %s1539_s22  ;;  %s209_s23 = scalar_lea.vmem %s2069_s3, %s1540_s21 }
   0xe   : > { %110 = vst [vmem:[%s90_s26] sm:$0x3] %v109_v0  ;;  %v148_v1 = vld [vmem:[%s131_s29] sm:$0x3]  ;;  %s168_s24 = scalar_lea.vmem [#allocation5], %s1539_s22  ;;  %s207_s25 = scalar_lea.vmem [#allocation7], %s1539_s22 }
   0xf   : > { %149 = vst [vmem:[%s129_s17] sm:$0x3] %v148_v1  ;;  %v187_v2 = vld [vmem:[%s170_s16] sm:$0x3] }
  0x10   : > { %188 = vst [vmem:[%s168_s24] sm:$0x3] %v187_v2  ;;  %v226_v3 = vld [vmem:[%s209_s23] sm:$0x3] }
  0x11   : > { %227 = vst [vmem:[%s207_s25] sm:$0x3] %v226_v3 }
  0x12 PF: > { %p1547_p5 = scmp.ge.s32.totalorder %s1677_s11, 1  ;;  %p244_p6 = scmp.lt.s32.totalorder %s1677_s11, 3 }
  0x14   : > { %p245_p7 = pnand %p1547_p5, %p244_p6 }
  0x16   : > { %248 = sbr.rel (%p245_p7) target bundleno = 994 (0x3e2), region = 140 }
  0x1b   : > { %s267_s26 = sand.u32 1, %s1756_s12   ;;  %s285_s27 = sand.u32 1, %s1669_s30   ;;  %v349_v4 = vlaneseq  ;;  %v1687_v5 = vmov 0.0  }
  0x1c   : > { %s1793_s28 = sshll.u32 %s267_s26, 1  ;;  %s1795_s18 = sshll.u32 %s285_s27, 1  ;;  %344 = vst [vmem:[#allocation12] sm:$0xff] %v1687_v5  ;;  %345 = vst [vmem:[#allocation14] sm:$0xff] %v1687_v5 }
  0x1d   : > { %346 = vst [vmem:[#allocation16] sm:$0xff] %v1687_v5  ;;  %347 = vst [vmem:[#allocation18] sm:$0xff] %v1687_v5  ;;  %v1797_v6 = vand.u32 127, %v349_v4  ;;  %v1799_v7 = vshrl.u32 %v349_v4, 7  ;;  %s269_s11 = scalar_lea.vmem [#allocation1], %s1793_s28  ;;  %s273_s30 = scalar_lea.vmem [#allocation3], %s1793_s28 }
  0x1e   : > { %v313_v8 = vld [vmem:[%s269_s11] sm:$0x3]  ;;  %v318_v9 = vld [vmem:[%s273_s30] sm:$0x3]  ;;  %s277_s21 = scalar_lea.vmem [#allocation5], %s1793_s28  ;;  %s281_s22 = scalar_lea.vmem [#allocation7], %s1793_s28 }
  0x1f   : > { %314 = vst [vmem:[#allocation0] sm:$0x3] %v313_v8  ;;  %319 = vst [vmem:[#allocation2] sm:$0x3] %v318_v9  ;;  %v323_v10 = vld [vmem:[%s277_s21] sm:$0x3]  ;;  %v351_v6 = vmov %v1797_v6  ;;  %v354_v7 = vmov %v1799_v7 }
  0x20   : > { %v328_v11 = vld [vmem:[%s281_s22] sm:$0x3]  ;;  %324 = vst [vmem:[#allocation4] sm:$0x3] %v323_v10  ;;  %v364_v6 = vmov %v1797_v6  ;;  %v367_v7 = vmov %v1799_v7  ;;  %s332_s29 = smov [#allocation20]  ;;  %s335_s14 = smov [#allocation21]  ;;  %vm358_vm0 = vcmp.eq.s32.totalorder %v354_v7, %v351_v6 }
  0x21   : > { %329 = vst [vmem:[#allocation6] sm:$0x3] %v328_v11  ;;  %vm371_vm1 = vcmp.eq.s32.totalorder %v367_v7, %v364_v6  ;;  %s348_s15 = smov [#allocation12]  ;;  %s361_s16 = smov [#allocation18]  ;;  %vm1427_vm2 = vcmp.lt.s32.totalorder %v1797_v6, 2  ;;  %v1419_v6 = vmov %v1797_v6  ;;  %v1422_v7 = vmov %v1799_v7 }
  0x22   : > { %s338_s17 = smov [#allocation22]  ;;  %s341_s20 = smov [#allocation23]  ;;  %vm1432_vm3 = vcmp.eq.s32.totalorder %v1422_v7, %v1419_v6  ;;  %v1470_v6 = vmov %v1797_v6  ;;  %v1439_v7 = vmov %v1799_v7 }
  0x23   : > { %v355_v12 = vld [vmem:[%s348_s15] sm:$0x3]  ;;  %s1423_s30 = smov [#allocation20]  ;;  %s1440_s21 = smov [#allocation21]  ;;  %v1436_v6 = vmov %v1797_v6  ;;  %v1473_v7 = vmov %v1799_v7 }
  0x24   : > { %v368_v13 = vld [vmem:[%s361_s16] sm:$0x3]  ;;  %v359_v16 = vsel %vm358_vm0, 1.0, %v355_v12  ;;  %s1457_s22 = smov [#allocation22]  ;;  %v1453_v6 = vmov %v1797_v6  ;;  %v1456_v7 = vmov %v1799_v7  ;;  %vm1483_vm4 = vcmp.eq.s32.totalorder %v1473_v7, %v1470_v6 }
  0x25   : > { %v372_v17 = vsel %vm371_vm1, 1.0, %v368_v13  ;;  %360 = vst [vmem:[%s348_s15] sm:$0x3] %v359_v16 }
  0x26   : > { %v333_v14 = vld [vmem:[#allocation0] sm:$0xff]  ;;  %v336_v15 = vld [vmem:[#allocation2] sm:$0xff]  ;;  %373 = vst [vmem:[%s361_s16] sm:$0x3] %v372_v17 }
  0x27   : > { %334 = vst [vmem:[%s332_s29] sm:$0xff] %v333_v14  ;;  %337 = vst [vmem:[%s335_s14] sm:$0xff] %v336_v15  ;;  %v339_v18 = vld [vmem:[#allocation4] sm:$0xff]  ;;  %s1474_s29 = smov [#allocation23] }
  0x28   : > { %v342_v19 = vld [vmem:[#allocation6] sm:$0xff]  ;;  %340 = vst [vmem:[%s338_s17] sm:$0xff] %v339_v18 }
  0x29   : > { %343 = vst [vmem:[%s341_s20] sm:$0xff] %v342_v19 }
  0x2e   : > { %v1429_v20 = vld [vmem:[%s1423_s30] sm:$0x3] }
  0x2f   : > { %v1446_v21 = vld [vmem:[%s1440_s21] sm:$0x3]  ;;  %v1430_v22 = vsel %vm1427_vm2, %v1429_v20, 0.0 }
  0x30   : > { %v1447_v23 = vsel %vm1427_vm2, %v1446_v21, 0.0  ;;  %v1463_v24 = vld [vmem:[%s1457_s22] sm:$0x3]  ;;  %v1431_v26 = vmul.f32 %v1430_v22, %v1430_v22 }
  0x31   : > { %v1480_v25 = vld [vmem:[%s1474_s29] sm:$0x3]  ;;  %v1448_v27 = vmul.f32 %v1447_v23, %v1447_v23  ;;  %v1464_v28 = vsel %vm1427_vm2, %v1463_v24, 0.0 }
  0x32   : > { %v1481_v29 = vsel %vm1427_vm2, %v1480_v25, 0.0  ;;  %v1465_v30 = vmul.f32 %v1464_v28, %v1464_v28  ;;  %v1433_v33 = vsel %vm1432_vm3, 0.0, %v1431_v26 }
  0x33   : > { %v1450_v31 = vadd.f32 %v1448_v27, %v1431_v26  ;;  %v1482_v32 = vmul.f32 %v1481_v29, %v1481_v29  ;;  %v1449_v34 = vadd.f32 %v1448_v27, %v1433_v33 }
  0x35   : > { %v1467_v35 = vadd.f32 %v1465_v30, %v1450_v31  ;;  %v1466_v36 = vadd.f32 %v1465_v30, %v1449_v34  ;;  %v1484_v37 = vsel %vm1483_vm4, 0.0, %v1482_v32 }
  0x37   : > { %v1486_v38 = vadd.f32 %v1482_v32, %v1467_v35  ;;  %v1485_v39 = vadd.f32 %v1484_v37, %v1466_v36 }
  0x39   : > { %1487 = vadd.xlane.f32.xlu0 %v1486_v38 }
  0x3d   : > { %1495 = vadd.xlane.f32.xlu0 %v1485_v39 }
  0xc2   : > { %v1488_v40 = vpop.xlane.xlu0 %1487 }
  0xc3   : > { %v1489_v41 = vrot.slane %v1488_v40, 4 }
  0xc5   : > { %v1490_v42 = vadd.f32 %v1489_v41, %v1488_v40 }
  0xc6   : > { %v1496_v43 = vpop.xlane.xlu0 %1495 }
  0xc7   : > { %v1491_v44 = vrot.slane %v1490_v42, 2  ;;  %v1497_v45 = vrot.slane %v1496_v43, 4 }
  0xc9   : > { %v1498_v46 = vadd.f32 %v1497_v45, %v1496_v43  ;;  %v1492_v47 = vadd.f32 %v1491_v44, %v1490_v42 }
  0xcb   : > { %v1499_v48 = vrot.slane %v1498_v46, 2  ;;  %v1493_v50 = vrot.slane %v1492_v47, 1 }
  0xcd   : > { %v1500_v49 = vadd.f32 %v1499_v48, %v1498_v46  ;;  %v1494_v53 = vadd.f32 %v1493_v50, %v1492_v47 }
  0xcf   : > { %v1501_v51 = vrot.slane %v1500_v49, 1 }
  0xd1   : > { %v1502_v52 = vadd.f32 %v1501_v51, %v1500_v49 }
  0xd3   : > { %1588 = vpush %v1502_v52 }
  0xd4   : > { %1590 = vpush %v1494_v53 }
 0x104   : > { %s1589_s14 = spop %1588 }
 0x105   : > { %s1591_s15 = spop %1590 }
 0x106   : > { %s1505_s16 = smul.f32 1e-10, %s1591_s15 }
 0x108   : > { %p1506_p8 = scmp.le.f32.partialorder %s1589_s14, %s1505_s16 }
 0x109   : > { %s1833_s17 = smov (!%p1506_p8), 0  }
 0x10a   : > { %1509 = sbr.rel (%p1506_p8) target bundleno = 948 (0x3b4), region = 467 }
 0x10f LB: >> { %s1838_s20 = smov 0   ;;  %s1681_s17 = sphi %s1833_s17, %s2078_s17  }
 0x110 LB: >>> { %s478_s30 = smov [#allocation20]  ;;  %v482_v6 = vmov %v1797_v6  ;;  %v485_v7 = vmov %v1799_v7  ;;  %s498_s21 = smov [#allocation21]  ;;  %vm801_vm14 = vcmp.eq.s32.totalorder %v1799_v7, 0  ;;  %vm813_vm15 = vcmp.eq.s32.totalorder %v1799_v7, 1  ;;  %s1685_s20 = sphi %s1838_s20, %s477_s20  }
 0x111   : >>> { %v502_v6 = vmov %v1797_v6  ;;  %v505_v7 = vmov %v1799_v7  ;;  %v486_v54 = vld [vmem:[%s478_s30] sm:$0x3]  ;;  %vm489_vm5 = vcmp.eq.s32.totalorder %v485_v7, %v482_v6  ;;  %s518_s22 = smov [#allocation23]  ;;  %s479_s29 = smov [#allocation24] }
 0x112   : >>> { %vm509_vm6 = vcmp.eq.s32.totalorder %v505_v7, %v502_v6  ;;  %v522_v6 = vmov %v1797_v6  ;;  %v525_v7 = vmov %v1799_v7  ;;  %v490_v55 = vsel %vm489_vm5, %v486_v54, 0.0  ;;  %v506_v56 = vld [vmem:[%s498_s21] sm:$0x3]  ;;  %s499_s14 = smov [#allocation25]  ;;  %s519_s15 = smov [#allocation26] }
 0x113   : >>> { %vm529_vm7 = vcmp.eq.s32.totalorder %v525_v7, %v522_v6  ;;  %v491_v57 = vrot.slane %v490_v55, 4  ;;  %v510_v58 = vsel %vm509_vm6, %v506_v56, 0.0  ;;  %v526_v59 = vld [vmem:[%s518_s22] sm:$0x3]  ;;  %s542_s16 = smov [#allocation25]  ;;  %s540_s30 = smov [#allocation24]  ;;  %v591_v6 = vmov %v1797_v6 }
 0x114   : >>> { %v511_v60 = vrot.slane %v510_v58, 4  ;;  %v530_v61 = vsel %vm529_vm7, %v526_v59, 0.0  ;;  %s544_s21 = smov [#allocation26]  ;;  %s579_s22 = smov [#allocation27]  ;;  %v594_v7 = vmov %v1799_v7  ;;  %v606_v6 = vmov %v1797_v6 }
 0x115   : >>> { %v492_v62 = vadd.f32 %v491_v57, %v490_v55  ;;  %v531_v63 = vrot.slane %v530_v61, 4  ;;  %v609_v7 = vmov %v1799_v7  ;;  %vm596_vm12 = vcmp.eq.s32.totalorder %v594_v7, %v591_v6  ;;  %s1857_s24 = smov [#allocation22]  ;;  %s1863_s23 = smov [#allocation14] }
 0x116   : >>> { %v512_v0 = vadd.f32 %v511_v60, %v510_v58  ;;  %vm611_vm13 = vcmp.eq.s32.totalorder %v609_v7, %v606_v6  ;;  %s841_s11 = smov [#allocation31]  ;;  %s1869_s27 = smov [#allocation18]  ;;  %v627_v55 = vld [vmem:[%s1857_s24] sm:$0x3]  ;;  %v704_v6 = vmov %v1797_v6  ;;  %v707_v7 = vmov %v1799_v7 }
 0x117   : >>> { %v493_v1 = vrot.slane %v492_v62, 2  ;;  %v532_v2 = vadd.f32 %v531_v63, %v530_v61  ;;  %v850_v58 = vld [vmem:[%s1863_s23] sm:$0x3]  ;;  %s619_s26 = smov [#allocation32]  ;;  %s843_s25 = smov [#allocation32]  ;;  %v718_v6 = vmov %v1797_v6  ;;  %v721_v7 = vmov %v1799_v7 }
 0x118   : >>> { %v513_v3 = vrot.slane %v512_v0, 2  ;;  %v852_v61 = vld [vmem:[%s1869_s27] sm:$0x3]  ;;  %vm711_vm0 = vcmp.eq.s32.totalorder %v707_v7, %v704_v6  ;;  %v677_v6 = vmov %v1797_v6  ;;  %v680_v7 = vmov %v1799_v7  ;;  %s477_s20 = sadd.s32 1, %s1685_s20  }
 0x119   : >>> { %v494_v4 = vadd.f32 %v493_v1, %v492_v62  ;;  %v533_v5 = vrot.slane %v532_v2, 2  ;;  %v691_v6 = vmov %v1797_v6  ;;  %v694_v7 = vmov %v1799_v7  ;;  %p474_p9 = scmp.ge.s32.totalorder %s477_s20, 3  }
 0x11a   : >>> { %v514_v8 = vadd.f32 %v513_v3, %v512_v0  ;;  %vm726_vm1 = vcmp.eq.s32.totalorder %v721_v7, %v718_v6  ;;  %vm685_vm3 = vcmp.eq.s32.totalorder %v680_v7, %v677_v6  ;;  %vm698_vm4 = vcmp.eq.s32.totalorder %v694_v7, %v691_v6 }
 0x11b   : >>> { %v495_v9 = vrot.slane %v494_v4, 1  ;;  %v534_v10 = vadd.f32 %v533_v5, %v532_v2  ;;  %vm740_vm5 = vcmp.eq.s32.totalorder %v1797_v6, 0  ;;  %vm744_vm6 = vcmp.eq.s32.totalorder %v1797_v6, 1 }
 0x11c   : >>> { %v515_v11 = vrot.slane %v514_v8, 1  ;;  %v378_v6 = vmov (%p474_p9), %v1797_v6  ;;  %v381_v7 = vmov (%p474_p9), %v1799_v7 }
 0x11d   : >>> { %v496_v12 = vadd.f32 %v495_v9, %v494_v4  ;;  %v535_v13 = vrot.slane %v534_v10, 1  ;;  %v431_v6 = vmov (%p474_p9), %v1797_v6  ;;  %vm393_vm7 = vcmp.eq.s32.totalorder (%p474_p9), %v381_v7, %v378_v6 }
 0x11e   : >>> { %v516_v14 = vadd.f32 %v515_v11, %v514_v8  ;;  %v434_v7 = vmov (%p474_p9), %v1799_v7  ;;  %v397_v6 = vmov (%p474_p9), %v1797_v6 }
 0x11f   : >>> { %497 = vst [vmem:[%s479_s29] sm:$0x1] %v496_v12  ;;  %v536_v15 = vadd.f32 %v535_v13, %v534_v10  ;;  %s581_s29 = smov [#allocation28]  ;;  %v400_v7 = vmov (%p474_p9), %v1799_v7  ;;  %v414_v6 = vmov (%p474_p9), %v1797_v6 }
 0x120   : >>> { %517 = vst [vmem:[%s499_s14] sm:$0x1] %v516_v14  ;;  %s538_s14 = smov [#allocation29]  ;;  %v417_v7 = vmov (%p474_p9), %v1799_v7 }
 0x121   : >>> { %537 = vst [vmem:[%s519_s15] sm:$0x1] %v536_v15  ;;  %s539_s15 = smov [#allocation30]  ;;  %s583_s14 = smov %s538_s14 }
 0x122   : >>> { %s585_s15 = smov %s539_s15 }
 0x126   : >>> { %v541_v18 = vld [vmem:[%s540_s30] sm:$0xff]  ;;  %s602_s30 = smov [#allocation30] }
 0x127   : >>> { %v543_v16 = vld [vmem:[%s542_s16] sm:$0xff]  ;;  %v564_v33 = vand.u32 2147483647, %v541_v18  ;;  %s587_s16 = smov [#allocation29] }
 0x128   : >>> { %v547_v17 = vmul.f32 2.0, %v543_v16  ;;  %v545_v19 = vld [vmem:[%s544_s21] sm:$0xff]  ;;  %v565_v36 = vand.u32 2147483647, %v543_v16  ;;  %s600_s21 = smov [#allocation31] }
 0x129   : >>> { %v546_v20 = vsub.f32 %v545_v19, %v541_v18  ;;  %v566_v34 = vand.u32 2147483647, %v545_v19 }
 0x12a   : >>> { %1639 = vrcp.f32 %v547_v17 }
 0x12b   : >>> { %v567_v35 = vmin.f32 %v564_v33, %v566_v34 }
 0x12d   : >>> { %v568_v37 = vmul.f32 1.1920929e-08, %v567_v35 }
 0x12f   : >>> { %vm569_vm11 = vcmp.le.f32.partialorder %v565_v36, %v568_v37 }
 0x137   : >>> { %v1640_v21 = vpop.eup %1639 }
 0x138   : >>> { %v549_v22 = vmul.f32 %v1640_v21, %v546_v20 }
 0x13a   : >>> { %v551_v23 = vmul.f32 %v549_v22, %v549_v22  ;;  %vm550_vm10 = vcmp.ge.f32.partialorder %v549_v22, 0.0 }
 0x13c   : >>> { %v552_v24 = vadd.f32 1.0, %v551_v23 }
 0x13e   : >>> { %1641 = vrsqrt.f32 %v552_v24  ;;  %vm555_vm8 = vcmp.eq.f32.partialorder %v552_v24, inf  ;;  %v558_v26 = vand.u32 2147483648, %v552_v24  ;;  %vm557_vm9 = vcmp.eq.f32.partialorder %v552_v24, 0.0 }
 0x14b   : >>> { %v1642_v25 = vpop.eup %1641 }
 0x14c   : >>> { %v554_v27 = vmul.f32 %v1642_v25, %v552_v24 }
 0x14e   : >>> { %v556_v28 = vsel %vm555_vm8, %v552_v24, %v554_v27  ;;  %vm446_vm8 = vcmp.eq.s32.totalorder (%p474_p9), %v434_v7, %v431_v6 }
 0x14f   : >>> { %v559_v29 = vsel %vm557_vm9, %v558_v26, %v556_v28 }
 0x150   : >>> { %v560_v30 = vxor.u32 2147483648, %v559_v29 }
 0x152   : >>> { %v561_v31 = vsel %vm550_vm10, %v559_v29, %v560_v30 }
 0x153   : >>> { %v562_v32 = vadd.f32 %v561_v31, %v549_v22 }
 0x155   : >>> { %1643 = vrcp.f32 %v562_v32 }
 0x162   : >>> { %v1644_v38 = vpop.eup %1643 }
 0x163   : >>> { %v570_v39 = vsel %vm569_vm11, 0.0, %v1644_v38 }
 0x164   : >>> { %v571_v40 = vmul.f32 %v570_v39, %v570_v39  ;;  %v575_v41 = vmul.f32 %v570_v39, %v543_v16 }
 0x166   : >>> { %v572_v42 = vadd.f32 1.0, %v571_v40  ;;  %v576_v43 = vsub.f32 %v541_v18, %v575_v41  ;;  %v578_v44 = vadd.f32 %v575_v41, %v545_v19 }
 0x168   : >>> { %1645 = vrsqrt.f32 %v572_v42  ;;  %580 = vst [vmem:[%s579_s22] sm:$0xff] %v576_v43  ;;  %582 = vst [vmem:[%s581_s29] sm:$0xff] %v578_v44  ;;  %s617_s22 = smov [#allocation31]  ;;  %s1853_s29 = smov [#allocation20] }
 0x169   : >>> { %v625_v53 = vld [vmem:[%s1853_s29] sm:$0x3] }
 0x175   : >>> { %v1646_v45 = vpop.eup %1645 }
 0x176   : >>> { %584 = vst [vmem:[%s583_s14] sm:$0xff] %v1646_v45  ;;  %v574_v46 = vmul.f32 %v1646_v45, %v570_v39  ;;  %s615_s14 = smov [#allocation32] }
 0x178   : >>> { %586 = vst [vmem:[%s585_s15] sm:$0xff] %v574_v46  ;;  %s1855_s15 = smov [#allocation21] }
 0x179   : >>> { %v626_v54 = vld [vmem:[%s1855_s15] sm:$0x3] }
 0x17d   : >>> { %v588_v47 = vld [vmem:[%s587_s16] ss:$0 sm:$0xff]  ;;  %s1859_s16 = smov [#allocation23] }
 0x17e   : >>> { %v597_v48 = vsel %vm596_vm12, %v588_v47, 0.0  ;;  %v628_v56 = vld [vmem:[%s1859_s16] sm:$0x3] }
 0x17f   : >>> { %598 = vadd.xlane.f32.xlu0 %v597_v48  ;;  %v603_v49 = vld [vmem:[%s602_s30] ss:$0 sm:$0xff]  ;;  %s1861_s30 = smov [#allocation12] }
 0x180   : >>> { %v612_v50 = vsel %vm611_vm13, %v603_v49, 0.0  ;;  %v849_v57 = vld [vmem:[%s1861_s30] sm:$0x3] }
 0x183   : >>> { %613 = vadd.xlane.f32.xlu0 %v612_v50 }
 0x208   : >>> { %v599_v51 = vpop.xlane.xlu0 %598 }
 0x209   : >>> { %601 = vst [vmem:[%s600_s21] sm:$0xff] %v599_v51  ;;  %s1865_s21 = smov [#allocation16] }
 0x20a   : >>> { %v851_v59 = vld [vmem:[%s1865_s21] sm:$0x3] }
 0x20c   : >>> { %v614_v52 = vpop.xlane.xlu0 %613 }
 0x20d   : >>> { %616 = vst [vmem:[%s615_s14] sm:$0xff] %v614_v52  ;;  %s1889_s14 = smov [#allocation23] }
 0x210   : >>> { %v618_v60 = vld [vmem:[%s617_s22] sm:$0xff]  ;;  %s1887_s22 = smov [#allocation22] }
 0x211   : >>> { %v842_v62 = vld [vmem:[%s841_s11] sm:$0xff]  ;;  %v629_v63 = vmul.f32 %v625_v53, %v618_v60  ;;  %v632_v0 = vmul.f32 %v626_v54, %v618_v60  ;;  %v636_v1 = vmul.f32 %v627_v55, %v618_v60  ;;  %v639_v2 = vmul.f32 %v628_v56, %v618_v60  ;;  %s1885_s11 = smov [#allocation12] }
 0x212   : >>> { %v853_v3 = vmul.f32 %v849_v57, %v842_v62  ;;  %v856_v4 = vmul.f32 %v850_v58, %v842_v62  ;;  %v860_v5 = vmul.f32 %v851_v59, %v842_v62  ;;  %v863_v8 = vmul.f32 %v852_v61, %v842_v62 }
 0x214   : >>> { %v620_v9 = vld [vmem:[%s619_s26] sm:$0xff]  ;;  %s647_s26 = smov [#allocation30] }
 0x215   : >>> { %v844_v10 = vld [vmem:[%s843_s25] sm:$0xff]  ;;  %v630_v11 = vmul.f32 %v627_v55, %v620_v9  ;;  %v633_v12 = vmul.f32 %v628_v56, %v620_v9  ;;  %v635_v13 = vmul.f32 %v625_v53, %v620_v9  ;;  %v638_v14 = vmul.f32 %v626_v54, %v620_v9  ;;  %s645_s25 = smov [#allocation29] }
 0x216   : >>> { %v854_v15 = vmul.f32 %v851_v59, %v844_v10  ;;  %v857_v16 = vmul.f32 %v852_v61, %v844_v10  ;;  %v859_v17 = vmul.f32 %v849_v57, %v844_v10  ;;  %v862_v18 = vmul.f32 %v850_v58, %v844_v10  ;;  %v646_v27 = vld [vmem:[%s645_s25] ss:$0 sm:$0xff]  ;;  %s674_s25 = smov [#allocation27] }
 0x217   : >>> { %v631_v19 = vsub.f32 %v629_v63, %v630_v11  ;;  %v634_v20 = vsub.f32 %v632_v0, %v633_v12  ;;  %v637_v21 = vadd.f32 %v636_v1, %v635_v13  ;;  %v640_v22 = vadd.f32 %v639_v2, %v638_v14  ;;  %v648_v28 = vld [vmem:[%s647_s26] ss:$0 sm:$0xff]  ;;  %s673_s26 = smov [#allocation20] }
 0x218   : >>> { %v855_v23 = vsub.f32 %v853_v3, %v854_v15  ;;  %v858_v24 = vsub.f32 %v856_v4, %v857_v16  ;;  %v861_v25 = vadd.f32 %v860_v5, %v859_v17  ;;  %v864_v26 = vadd.f32 %v863_v8, %v862_v18  ;;  %v681_v63 = vld [vmem:[%s674_s25] ss:$0 sm:$0xff]  ;;  %s917_s25 = sadd.s32 (%p474_p9), 1, %s1681_s17  }
 0x219   : >>> { %642 = vst [vmem:[%s1855_s15] sm:$0x3] %v634_v20  ;;  %644 = vst [vmem:[%s1859_s16] sm:$0x3] %v640_v22  ;;  %s1891_s15 = smov [#allocation20]  ;;  %s715_s16 = smov [#allocation28] }
 0x21a   : >>> { %641 = vst [vmem:[%s1853_s29] sm:$0x3] %v631_v19  ;;  %643 = vst [vmem:[%s1857_s24] sm:$0x3] %v637_v21  ;;  %s1893_s24 = smov [#allocation16]  ;;  %s1901_s29 = smov [#allocation21]  ;;  %v722_v59 = vld [vmem:[%s715_s16] ss:$0 sm:$0xff] }
 0x21b   : >>> { %865 = vst [vmem:[%s1861_s30] sm:$0x3] %v855_v23  ;;  %866 = vst [vmem:[%s1863_s23] sm:$0x3] %v858_v24  ;;  %s1895_s23 = smov [#allocation14]  ;;  %s701_s30 = smov [#allocation22] }
 0x21c   : >>> { %867 = vst [vmem:[%s1865_s21] sm:$0x3] %v861_v25  ;;  %868 = vst [vmem:[%s1869_s27] sm:$0x3] %v864_v26  ;;  %s1899_s27 = smov [#allocation18]  ;;  %s714_s21 = smov [#allocation23] }
 0x21d   : >>> { %s817_s16 = smov [#allocation21]  ;;  %p470_p10 = scmp.ge.s32.totalorder (%p474_p9), %s917_s25, 15 }
 0x21e   : >> { %s2078_s17 = smov (%p474_p9), %s917_s25 }
 0x220   : >>> { %v656_v30 = vld [vmem:[%s1889_s14] sm:$0x3] }
 0x221   : >>> { %v655_v29 = vld [vmem:[%s1887_s22] sm:$0x3]  ;;  %v664_v36 = vmul.f32 %v656_v30, %v648_v28  ;;  %v667_v42 = vmul.f32 %v656_v30, %v646_v27 }
 0x222   : >>> { %v653_v31 = vld [vmem:[%s1891_s15] sm:$0x3]  ;;  %v663_v35 = vmul.f32 %v655_v29, %v646_v27  ;;  %v666_v37 = vmul.f32 %v655_v29, %v648_v28 }
 0x223   : >>> { %v871_v32 = vld [vmem:[%s1885_s11] ss:$0 sm:$0xff]  ;;  %v1567_v34 = vld [vmem:[%s1885_s11 + $0x1] ss:$0 sm:$0xff]  ;;  %v657_v48 = vmul.f32 %v653_v31, %v646_v27  ;;  %v660_v49 = vmul.f32 %v653_v31, %v648_v28 }
 0x224   : >>> { %v1566_v33 = vld [vmem:[%s1885_s11 - $0x1] sm:$0x2]  ;;  %v1569_v40 = vld [vmem:[%s1893_s24 + $0x1] sm:$0x1]  ;;  %v665_v47 = vsub.f32 %v663_v35, %v664_v36  ;;  %v668_v53 = vadd.f32 %v667_v42, %v666_v37 }
 0x225   : >>> { %v878_v38 = vsel %vm801_vm14, %v871_v32, %v1566_v33  ;;  %v882_v39 = vld [vmem:[%s1893_s24] ss:$0 sm:$0xff]  ;;  %v890_v43 = vsel %vm813_vm15, %v1567_v34, %v1569_v40  ;;  %v1571_v45 = vld [vmem:[%s1895_s23 + $0x1] ss:$0 sm:$0xff] }
 0x226   : >>> { %v895_v41 = vld [vmem:[%s1895_s23] ss:$0 sm:$0xff]  ;;  %881 = vst [vmem:[%s1885_s11] sm:$0x3] %v878_v38  ;;  %892 = vst [vmem:[%s1893_s24] sm:$0x3] %v890_v43  ;;  %v1573_v51 = vld [vmem:[%s1899_s27 + $0x1] sm:$0x1] }
 0x227   : >>> { %v1570_v44 = vld [vmem:[%s1895_s23 - $0x1] sm:$0x2]  ;;  %1568 = vst [vmem:[%s1885_s11 + $0x1] sm:$0x1] %v882_v39  ;;  %v914_v54 = vsel %vm813_vm15, %v1571_v45, %v1573_v51  ;;  %671 = vst [vmem:[%s1887_s22] sm:$0x3] %v665_v47  ;;  %s688_s11 = smov [#allocation21] }
 0x228   : >>> { %v906_v46 = vld [vmem:[%s1899_s27] ss:$0 sm:$0xff]  ;;  %v902_v50 = vsel %vm801_vm14, %v895_v41, %v1570_v44  ;;  %672 = vst [vmem:[%s1889_s14] sm:$0x3] %v668_v53  ;;  %s1943_s22 = smov [#allocation22]  ;;  %s1688_s14 = smov 1  }
 0x229   : >>> { %v654_v52 = vld [vmem:[%s1901_s29] sm:$0x3]  ;;  %905 = vst [vmem:[%s1895_s23] sm:$0x3] %v902_v50  ;;  %916 = vst [vmem:[%s1899_s27] sm:$0x3] %v914_v54  ;;  %s730_s24 = smov [#allocation21]  ;;  %s1946_s27 = smov [#allocation23] }
 0x22a   : >>> { %v658_v55 = vmul.f32 %v654_v52, %v648_v28  ;;  %v661_v56 = vmul.f32 %v654_v52, %v646_v27  ;;  %1572 = vst [vmem:[%s1895_s23 + $0x1] sm:$0x1] %v906_v46  ;;  %s1689_s23 = smov 127  }
 0x22c   : >>> { %v659_v57 = vsub.f32 %v657_v48, %v658_v55  ;;  %v662_v58 = vadd.f32 %v661_v56, %v660_v49 }
 0x22e   : >>> { %669 = vst [vmem:[%s1891_s15] sm:$0x3] %v659_v57  ;;  %670 = vst [vmem:[%s1901_s29] sm:$0x3] %v662_v58  ;;  %v708_v60 = vld [vmem:[%s701_s30] sm:$0x3]  ;;  %s729_s15 = smov [#allocation20]  ;;  %s793_s29 = smov [#allocation20] }
 0x22f   : >>> { %v712_v61 = vsel %vm711_vm0, 0.0, %v708_v60  ;;  %v723_v62 = vld [vmem:[%s714_s21] sm:$0x3] }
 0x230   : >>> { %713 = vst [vmem:[%s701_s30] sm:$0x3] %v712_v61  ;;  %v727_v0 = vsel %vm726_vm1, %v722_v59, %v723_v62  ;;  %s794_s30 = smov [#allocation22] }
 0x231   : >>> { %728 = vst [vmem:[%s714_s21] sm:$0x3] %v727_v0  ;;  %s818_s21 = smov [#allocation23] }
 0x235   : >>> { %v682_v1 = vld [vmem:[%s673_s26] sm:$0x3] }
 0x236   : >>> { %v695_v2 = vld [vmem:[%s688_s11] sm:$0x3]  ;;  %v686_v3 = vsel %vm685_vm3, %v681_v63, %v682_v1 }
 0x237   : >>> { %v699_v4 = vsel %vm698_vm4, 0.0, %v695_v2  ;;  %687 = vst [vmem:[%s673_s26] sm:$0x3] %v686_v3  ;;  %v767_v5 = vld [vmem:[%s1943_s22] sm:$0x3]  ;;  %s382_s26 = smov (%p474_p9), [#allocation20] }
 0x238   : >>> { %700 = vst [vmem:[%s688_s11] sm:$0x3] %v699_v4  ;;  %768 = vrot.lane.b32.xlu0 %v767_v5, %s1688_s14  ;;  %v763_v11 = vld [vmem:[%s1946_s27] sm:$0x3]  ;;  %s401_s11 = smov (%p474_p9), [#allocation21] }
 0x239   : >>> { %v784_v12 = vld [vmem:[%s1946_s27] sm:$0x3] }
 0x23a   : >>> { %v766_v30 = vld [vmem:[%s1943_s22] sm:$0x3] }
 0x23e   : >>> { %v735_v8 = vld [vmem:[%s729_s15] sm:$0x3] }
 0x23f   : >>> { %736 = vrot.lane.b32.xlu1 %v735_v8, %s1688_s14  ;;  %v731_v9 = vld [vmem:[%s730_s24] sm:$0x3] }
 0x240   : >>> { %v752_v10 = vld [vmem:[%s730_s24] sm:$0x3] }
 0x241   : >>> { %v734_v18 = vld [vmem:[%s729_s15] sm:$0x3] }
 0x243   : >>> { %732 = vrot.lane.b32.xlu1 %v731_v9, %s1688_s14 }
 0x247   : >>> { %753 = vrot.lane.b32.xlu1 %v752_v10, %s1689_s23 }
 0x24b   : >>> { %764 = vrot.lane.b32.xlu1 %v763_v11, %s1688_s14  ;;  %s435_s14 = smov (%p474_p9), [#allocation23] }
 0x24f   : >>> { %785 = vrot.lane.b32.xlu1 %v784_v12, %s1689_s23 }
 0x2aa   : >>> { %v769_v20 = vpop.permute.xlu0 %768 }
 0x2ab   : >>> { %v773_v22 = vsel %vm740_vm5, %v767_v5, %v769_v20 }
 0x2b1   : >>> { %v737_v13 = vpop.permute.xlu1 %736 }
 0x2b2   : >>> { %v741_v14 = vsel %vm740_vm5, %v735_v8, %v737_v13 }
 0x2b5   : >>> { %v733_v15 = vpop.permute.xlu1 %732 }
 0x2b6   : >>> { %v745_v16 = vsel %vm744_vm6, %v733_v15, %v741_v14 }
 0x2b7   : >>> { %v751_v17 = vsel %vm1427_vm2, %v745_v16, 0.0 }
 0x2b8   : >>> { %759 = vst [vmem:[%s729_s15] sm:$0x3] %v751_v17 }
 0x2b9   : >>> { %v754_v19 = vpop.permute.xlu1 %753 }
 0x2ba   : >>> { %v758_v21 = vsel %vm744_vm6, %v734_v18, %v754_v19 }
 0x2bb   : >>> { %760 = vst [vmem:[%s730_s24] sm:$0x3] %v758_v21 }
 0x2bd   : >>> { %v765_v23 = vpop.permute.xlu1 %764 }
 0x2be   : >>> { %v777_v24 = vsel %vm744_vm6, %v765_v23, %v773_v22 }
 0x2bf   : >>> { %v795_v25 = vld [vmem:[%s793_s29] ss:$0 sm:$0xff]  ;;  %v1559_v27 = vld [vmem:[%s793_s29 + $0x1] ss:$0 sm:$0xff]  ;;  %v783_v29 = vsel %vm1427_vm2, %v777_v24, 0.0 }
 0x2c0   : >>> { %v1558_v26 = vld [vmem:[%s793_s29 - $0x1] sm:$0x2]  ;;  %791 = vst [vmem:[%s1943_s22] sm:$0x3] %v783_v29  ;;  %s418_s22 = smov (%p474_p9), [#allocation22] }
 0x2c1   : >>> { %v802_v28 = vsel %vm801_vm14, %v795_v25, %v1558_v26  ;;  %v786_v31 = vpop.permute.xlu1 %785 }
 0x2c2   : >>> { %805 = vst [vmem:[%s793_s29] sm:$0x3] %v802_v28  ;;  %v819_v32 = vld [vmem:[%s817_s16] ss:$0 sm:$0xff]  ;;  %v1563_v34 = vld [vmem:[%s817_s16 + $0x1] ss:$0 sm:$0xff]  ;;  %v790_v35 = vsel %vm744_vm6, %v766_v30, %v786_v31 }
 0x2c3   : >>> { %v1562_v33 = vld [vmem:[%s817_s16 - $0x1] sm:$0x2]  ;;  %792 = vst [vmem:[%s1946_s27] sm:$0x3] %v790_v35 }
 0x2c4   : >>> { %v826_v36 = vsel %vm801_vm14, %v819_v32, %v1562_v33 }
 0x2c5   : >>> { %829 = vst [vmem:[%s817_s16] sm:$0x3] %v826_v36 }
 0x2c7   : >>> { %v806_v37 = vld [vmem:[%s794_s30] ss:$0 sm:$0xff]  ;;  %v1561_v38 = vld [vmem:[%s794_s30 + $0x1] sm:$0x1] }
 0x2c8   : >>> { %1560 = vst [vmem:[%s793_s29 + $0x1] sm:$0x1] %v806_v37  ;;  %v814_v39 = vsel %vm813_vm15, %v1559_v27, %v1561_v38 }
 0x2c9   : >>> { %816 = vst [vmem:[%s794_s30] sm:$0x3] %v814_v39 }
 0x2ca   : >>> { %v830_v40 = vld [vmem:[%s818_s21] ss:$0 sm:$0xff]  ;;  %v1565_v41 = vld [vmem:[%s818_s21 + $0x1] sm:$0x1] }
 0x2cb   : >>> { %1564 = vst [vmem:[%s817_s16 + $0x1] sm:$0x1] %v830_v40  ;;  %v838_v42 = vsel %vm813_vm15, %v1563_v34, %v1565_v41 }
 0x2cc   : >>> { %840 = vst [vmem:[%s818_s21] sm:$0x3] %v838_v42  ;;  %476 = sbr.rel (!%p474_p9) target bundleno = 272 (0x110), region = 462 }
 0x2cf   : >> { %v388_v43 = vld [vmem:[%s382_s26] sm:$0x3] (%p474_p9) }
 0x2d0   : >> { %v389_v45 = vsel (%p474_p9), %vm1427_vm2, %v388_v43, 0.0  ;;  %v424_v47 = vld [vmem:[%s418_s22] sm:$0x3] (%p474_p9) }
 0x2d1   : >> { %v390_v49 = vmul.f32 %v389_v45, %v389_v45  ;;  %v425_v51 = vsel %vm1427_vm2, %v424_v47, 0.0 }
 0x2d2   : >> { %v407_v44 = vld [vmem:[%s401_s11] sm:$0x3]  ;;  %v426_v53 = vmul.f32 %v425_v51, %v425_v51 }
 0x2d3   : >> { %v408_v46 = vsel %vm1427_vm2, %v407_v44, 0.0  ;;  %v441_v48 = vld [vmem:[%s435_s14] sm:$0x3]  ;;  %v394_v56 = vsel %vm393_vm7, 0.0, %v390_v49 }
 0x2d4   : >> { %v409_v50 = vmul.f32 %v408_v46, %v408_v46  ;;  %v442_v52 = vsel %vm1427_vm2, %v441_v48, 0.0 }
 0x2d5   : >> { %v443_v55 = vmul.f32 %v442_v52, %v442_v52 }
 0x2d6   : >> { %v411_v54 = vadd.f32 %v409_v50, %v390_v49  ;;  %v410_v57 = vadd.f32 %v409_v50, %v394_v56 }
 0x2d7   : >> { %v447_v60 = vsel %vm446_vm8, 0.0, %v443_v55 }
 0x2d8   : >> { %v428_v58 = vadd.f32 %v426_v53, %v411_v54  ;;  %v427_v59 = vadd.f32 %v426_v53, %v410_v57 }
 0x2da   : >> { %v449_v61 = vadd.f32 %v443_v55, %v428_v58  ;;  %v448_v62 = vadd.f32 %v447_v60, %v427_v59 }
 0x2dc   : >> { %450 = vadd.xlane.f32.xlu0 %v449_v61 }
 0x2e0   : >> { %458 = vadd.xlane.f32.xlu0 %v448_v62 }
 0x365   : >> { %v451_v63 = vpop.xlane.xlu0 %450 }
 0x366   : >> { %v452_v0 = vrot.slane %v451_v63, 4 }
 0x368   : >> { %v453_v1 = vadd.f32 %v452_v0, %v451_v63 }
 0x369   : >> { %v459_v2 = vpop.xlane.xlu0 %458 }
 0x36a   : >> { %v454_v3 = vrot.slane %v453_v1, 2  ;;  %v460_v4 = vrot.slane %v459_v2, 4 }
 0x36c   : >> { %v461_v5 = vadd.f32 %v460_v4, %v459_v2  ;;  %v455_v8 = vadd.f32 %v454_v3, %v453_v1 }
 0x36e   : >> { %v462_v9 = vrot.slane %v461_v5, 2  ;;  %v456_v11 = vrot.slane %v455_v8, 1 }
 0x370   : >> { %v463_v10 = vadd.f32 %v462_v9, %v461_v5  ;;  %v457_v14 = vadd.f32 %v456_v11, %v455_v8 }
 0x372   : >> { %v464_v12 = vrot.slane %v463_v10, 1 }
 0x374   : >> { %v465_v13 = vadd.f32 %v464_v12, %v463_v10 }
 0x376   : >> { %1592 = vpush %v465_v13 }
 0x377   : >> { %1594 = vpush %v457_v14 }
 0x3a7   : >> { %s1593_s20 = spop %1592 }
 0x3a8   : >> { %s1595_s15 = spop %1594 }
 0x3a9   : >> { %s468_s24 = smul.f32 1e-10, %s1595_s15 }
 0x3ab   : >> { %p469_p11 = scmp.le.f32.partialorder %s1593_s20, %s468_s24 }
 0x3ad   : >> { %p471_p12 = por %p470_p10, %p469_p11 }
 0x3af   : > { %919 = sbr.rel (!%p471_p12) target bundleno = 271 (0x10f), region = 473 }
 0x3b4 PF: > { %s924_s23 = smov [#allocation20]  ;;  %v928_v6 = vmov %v1797_v6  ;;  %v931_v7 = vmov %v1799_v7  ;;  %v984_v15 = vld [vmem:[#allocation12] sm:$0x3]  ;;  %v992_v16 = vld [vmem:[#allocation14] sm:$0x3]  ;;  %s2079_s17 = scalar_lea.vmem [#allocation13], %s1793_s28 }
 0x3b5   : > { %v948_v6 = vmov %v1797_v6  ;;  %v951_v7 = vmov %v1799_v7  ;;  %v932_v17 = vld [vmem:[%s924_s23] sm:$0x3]  ;;  %vm935_vm9 = vcmp.eq.s32.totalorder %v931_v7, %v928_v6  ;;  %987 = vst [vmem:[%s2079_s17] sm:$0x3] %v984_v15  ;;  %s2080_s27 = scalar_lea.vmem [#allocation15], %s1793_s28  ;;  %s944_s29 = smov [#allocation23] }
 0x3b6   : > { %vm955_vm10 = vcmp.eq.s32.totalorder %v951_v7, %v948_v6  ;;  %995 = vst [vmem:[%s2080_s27] sm:$0x3] %v992_v16  ;;  %v1000_v18 = vld [vmem:[#allocation16] sm:$0x3]  ;;  %v936_v19 = vsel %vm935_vm9, %v932_v17, 0.0  ;;  %s2081_s16 = scalar_lea.vmem [#allocation17], %s1793_s28  ;;  %s2082_s30 = scalar_lea.vmem [#allocation19], %s1793_s28 }
 0x3b7   : > { %1003 = vst [vmem:[%s2081_s16] sm:$0x3] %v1000_v18  ;;  %v1008_v20 = vld [vmem:[#allocation18] sm:$0x3]  ;;  %v937_v21 = vrot.slane %v936_v19, 4  ;;  %v952_v22 = vld [vmem:[%s944_s29] sm:$0x3] }
 0x3b8   : > { %1011 = vst [vmem:[%s2082_s30] sm:$0x3] %v1008_v20  ;;  %v956_v23 = vsel %vm955_vm10, %v952_v22, 0.0  ;;  %s920_s21 = sand.u32 7, %s1756_s12   ;;  %s2083_s11 = scalar_lea.vmem [#allocation9], %s1795_s18 }
 0x3b9   : > { %v938_v24 = vadd.f32 %v937_v21, %v936_v19  ;;  %v957_v25 = vrot.slane %v956_v23, 4  ;;  %s921_s25 = scalar_lea.vmem [#allocation8], %s920_s21  ;;  %s923_s26 = scalar_lea.vmem [#allocation10], %s920_s21 }
 0x3ba   : > { %s925_s25 = smov %s921_s25  ;;  %s945_s26 = smov %s923_s26 }
 0x3bb   : > { %v939_v26 = vrot.slane %v938_v24, 2  ;;  %v958_v6 = vadd.f32 %v957_v25, %v956_v23  ;;  %s2084_s22 = scalar_lea.vmem [#allocation11], %s1795_s18  ;;  %s1039_s14 = sshrl.u32 (%p1770_p3), %s1756_s12, 3 }
 0x3bc   : > { %s2085_s20 = scalar_lea.vmem (%p1770_p3), [#allocation9], %s1795_s18  ;;  %s1580_s15 = sshll.u32 (%p1770_p3), %s1039_s14, 1 }
 0x3bd   : > { %v940_v7 = vadd.f32 %v939_v26, %v938_v24  ;;  %v959_v27 = vrot.slane %v958_v6, 2  ;;  %s1041_s17 = scalar_lea.vmem (%p1770_p3), %s2070_s4, %s1580_s15 }
 0x3bf   : > { %v941_v28 = vrot.slane %v940_v7, 1  ;;  %v960_v29 = vadd.f32 %v959_v27, %v958_v6 }
 0x3c1   : > { %v942_v30 = vadd.f32 %v941_v28, %v940_v7  ;;  %v961_v31 = vrot.slane %v960_v29, 1 }
 0x3c3   : > { %943 = vst [vmem:[%s925_s25] sm:$0x1] %v942_v30  ;;  %v962_v32 = vadd.f32 %v961_v31, %v960_v29 }
 0x3c5   : > { %963 = vst [vmem:[%s945_s26] sm:$0x1] %v962_v32 }
 0x3c9   : > { %1038 = sbr.rel (!%p1770_p3) target bundleno = 980 (0x3d4), region = 158 }
 0x3ca   : > { %v968_v33 = vld [vmem:[#allocation8] sm:$0x3] }
 0x3cb   : > { %971 = vst [vmem:[%s2083_s11] sm:$0x3] %v968_v33 }
 0x3cc   : > { %v976_v34 = vld [vmem:[#allocation10] sm:$0x3] }
 0x3cd   : > { %979 = vst [vmem:[%s2084_s22] sm:$0x3] %v976_v34 }
 0x3d2   : > { %v1058_v35 = vld [vmem:[%s2085_s20] sm:$0x3] }
 0x3d3   : > { %1059 = vst [vmem:[%s1041_s17] sm:$0x3] %v1058_v35 }
 0x3d4 PF: > { %1077 = sbr.rel (!%p1770_p3) target bundleno = 988 (0x3dc), region = 192  ;;  %s1078_s27 = sshrl.u32 (%p1770_p3), %s1756_s12, 3 }
 0x3d5   : > { %s2086_s29 = scalar_lea.vmem (%p1770_p3), [#allocation11], %s1795_s18  ;;  %s1581_s16 = sshll.u32 (%p1770_p3), %s1078_s27, 1 }
 0x3d6   : > { %s1080_s25 = scalar_lea.vmem (%p1770_p3), %s2071_s5, %s1581_s16 }
 0x3da   : > { %v1097_v36 = vld [vmem:[%s2086_s29] sm:$0x3] }
 0x3db   : > { %1098 = vst [vmem:[%s1080_s25] sm:$0x3] %v1097_v36 }
 0x3dc PF: > { %s1582_s26 = sshll.u32 %s1756_s12, 1  ;;  %s2087_s19 = scalar_lea.vmem [#allocation13], %s1793_s28 }
 0x3dd   : > { %v1132_v37 = vld [vmem:[%s2087_s19] sm:$0x3]  ;;  %s2088_s11 = scalar_lea.vmem [#allocation15], %s1793_s28  ;;  %s1115_s14 = scalar_lea.vmem %s2072_s6, %s1582_s26 }
 0x3de   : > { %v1167_v38 = vld [vmem:[%s2088_s11] sm:$0x3]  ;;  %s1150_s24 = scalar_lea.vmem %s2073_s7, %s1582_s26  ;;  %s2089_s23 = scalar_lea.vmem [#allocation17], %s1793_s28  ;;  %1133 = vst [vmem:[%s1115_s14] sm:$0x3] %v1132_v37 }
 0x3df   : > { %v1202_v39 = vld [vmem:[%s2089_s23] sm:$0x3]  ;;  %s2090_s17 = scalar_lea.vmem [#allocation19], %s1793_s28  ;;  %1168 = vst [vmem:[%s1150_s24] sm:$0x3] %v1167_v38  ;;  %s1185_s29 = scalar_lea.vmem %s2074_s8, %s1582_s26 }
 0x3e0   : > { %v1237_v40 = vld [vmem:[%s2090_s17] sm:$0x3]  ;;  %s1220_s21 = scalar_lea.vmem %s2075_s9, %s1582_s26  ;;  %1203 = vst [vmem:[%s1185_s29] sm:$0x3] %v1202_v39 }
 0x3e1   : > { %1238 = vst [vmem:[%s1220_s21] sm:$0x3] %v1237_v40 }
 0x3e2 PF: > { %s2091_s25 = sld [smem:[#allocation33_spill]]  ;;  %p13_p13 = scmp.ge.s32.totalorder %s1759_s13, 4  }
 0x3e3   : > { %s2092_s30 = smov %s1673_s10  ;;  %s2094_s11 = smov %s1759_s13 }
 0x3e4   :  { %15 = sbr.rel (!%p13_p13) target bundleno = 2 (0x2), region = 484 }
 0x3e8   : > { %s2093_s10 = smov %s2091_s25 }

// kernel: reverse
= control target key start
LH: loop header
LB: loop body
LE: loop exit
PB: predicated region body
PF: predicated region fallthrough
CT: control target
= control target key end

     0   :  { %v2_v0 = vlaneseq  ;;  %s112_s0 = inlined_call_operand.vmem [shape: f32[2,3], index: 0, kind: input, shape index: {}]   ;;  %s113_s1 = inlined_call_operand.vmem [shape: f32[2,3], index: 1, kind: output, shape index: {}]  }
   0x2   :  { %v3_v1 = vsub.s32 2, %v2_v0 }
   0x4   :  { %4 = vset.pattern.permute.xlu0 %v3_v1 }
   0x5   :  { %v21_v2 = vld [vmem:[%s112_s0] sm:$0x3] }
   0x6   :  { %22 = vst [vmem:[#allocation1] sm:$0x3] %v21_v2 }
   0xd   :  { %v41_v3 = vld [vmem:[#allocation1] sm:$0x3] }
   0xe   :  { %42 = vst [vmem:[#allocation0] sm:$0x3] %v41_v3 }
  0x15   :  { %v43_v4 = vld [vmem:[#allocation0] sm:$0xff] }
  0x16   :  { %44 = vperm.xlu0 %4, %v43_v4  }
  0x91   :  { %v45_v5 = vpop.permute.xlu0 %44 }
  0x92   :  { %46 = vst [vmem:[#allocation2] sm:$0xff] %v45_v5 }
  0x99   :  { %v51_v6 = vld [vmem:[#allocation2] sm:$0x3] }
  0x9a   :  { %54 = vst [vmem:[#allocation3] sm:$0x3] %v51_v6 }
  0xa1   :  { %v71_v7 = vld [vmem:[#allocation3] sm:$0x3] }
  0xa2   :  { %72 = vst [vmem:[%s113_s1] sm:$0x3] %v71_v7 }

// kernel: custom-call.16
= control target key start
LH: loop header
LB: loop body
LE: loop exit
PB: predicated region body
PF: predicated region fallthrough
CT: control target
= control target key end

     0   :  { %s664_s9 = smov 0   ;;  %s666_s10 = smov 0   ;;  %s810_s0 = inlined_call_operand.vmem [shape: f32[2,3,3], index: 0, kind: input, shape index: {}]   ;;  %s811_s1 = inlined_call_operand.vmem [shape: f32[2,3,3], index: 1, kind: output, shape index: {0}]   ;;  %s812_s2 = inlined_call_operand.vmem [shape: f32[2,3], index: 2, kind: output, shape index: {1}]  }
   0x1   :  { %s668_s11 = smov 0   ;;  %s670_s12 = smov 0  }
   0x2   :  { %s672_s13 = smov 0  }
   0x3 LB: > { %s28_s14 = sadd.s32 1, %s637_s12  ;;  %s519_s15 = sadd.s32 4294967295, %s641_s13   ;;  %s641_s13 = sphi %s672_s13, %s9_s13   ;;  %s637_s12 = sphi %s670_s12, %s819_s12   ;;  %s633_s11 = sphi %s668_s11, %s818_s11   ;;  %s629_s10 = sphi %s666_s10, %s817_s10   ;;  %s625_s9 = sphi %s664_s9, %s816_s9  }
   0x4   : > { %p30_p0 = scmp.ge.s32.totalorder %s28_s14, 2  ;;  %s33_s16 = ssub.s32 0, %s637_s12 }
   0x5   : > { %s521_s17 = smin.u32 %s637_s12, %s33_s16  ;;  %p57_p1 = scmp.ne.s32.totalorder %s629_s10, %s625_s9 }
   0x6   : > { %s821_s14 = smov (%p30_p0, %s28_s14), 0  ;;  %s35_s18 = sshrl.u32 %s521_s17, 3 }
   0x7   : > { %s39_s19 = ssub.s32 0, %s821_s14  ;;  %p58_p2 = scmp.eq.s32.totalorder %s519_s15, 1 }
   0x8   : > { %s522_s20 = smin.u32 %s39_s19, %s821_s14  ;;  %s47_s24 = sadd.s32 1, %s629_s10 }
   0x9   : > { %s41_s21 = sshrl.u32 %s522_s20, 3  ;;  %p699_p3 = por %p58_p2, %p57_p1 }
   0xa   : > { %s44_s23 = ssub.s32 %s35_s18, %s41_s21  ;;  %p524_p5 = scmp.ge.s32.totalorder %s641_s13, 2 }
   0xb   : > { %p45_p4 = scmp.eq.s32.totalorder %s44_s23, 0  ;;  %s82_s26 = sand.u32 (!%p524_p5), 1, %s641_s13  }
   0xc   : > { %80 = sbr.rel (%p524_p5) target bundleno = 19 (0x13), region = 16  ;;  %s526_s27 = sshll.u32 (!%p524_p5), %s637_s12, 2 }
   0xd   : > { %s705_s25 = scalar_select %p45_p4, %s629_s10, %s47_s24  }
   0xe   : > { %s525_s28 = sshll.u32 (!%p524_p5), %s82_s26, 2  ;;  %s88_s3 = scalar_lea.vmem (!%p524_p5), %s810_s0, %s526_s27 }
   0xf   : > { %s84_s4 = scalar_lea.vmem (!%p524_p5), [#allocation1], %s525_s28 }
  0x11   : > { %v105_v0 = vld [vmem:[%s88_s3] sm:$0xf] }
  0x12   : > { %106 = vst [vmem:[%s84_s4] sm:$0xf] %v105_v0 }
  0x13 PF: > { %p527_p6 = scmp.ge.s32.totalorder %s641_s13, 1  ;;  %p123_p7 = scmp.lt.s32.totalorder %s641_s13, 3 }
  0x15   : > { %p124_p8 = pnand %p527_p6, %p123_p7 }
  0x17   : > { %127 = sbr.rel (%p124_p8) target bundleno = 352 (0x160), region = 50 }
  0x1c   : > { %s134_s5 = sand.u32 1, %s519_s15   ;;  %s144_s6 = sand.u32 1, %s625_s9   ;;  %v647_v2 = vmov 0.0  }
  0x1d   : > { %s528_s7 = sshll.u32 %s134_s5, 2  ;;  %s716_s8 = sshll.u32 %s144_s6, 1 }
  0x1e   : > { %s136_s16 = scalar_lea.vmem [#allocation1], %s528_s7  ;;  %s158_s17 = sand.u32 7, %s633_s11  }
  0x1f   : > { %v150_v1 = vld [vmem:[%s136_s16] sm:$0xf]  ;;  %s719_s18 = scalar_lea.vmem [#allocation4], %s158_s17  ;;  %s722_s19 = scalar_lea.vmem [#allocation3], %s528_s7 }
  0x20   : > { %151 = vst [vmem:[#allocation0] sm:$0xf] %v150_v1  ;;  %162 = vst [vmem:[%s719_s18] sm:$0x1] %v647_v2  ;;  %s146_s15 = scalar_lea.vmem [#allocation5], %s716_s8  ;;  %s725_s20 = smov 0  }
  0x27   : > { %v160_v3 = vld [vmem:[#allocation0] sm:$0xff] }
  0x28   : > { %161 = vst [vmem:[#allocation2] sm:$0xff] %v160_v3 }
  0x29 LB: >> { %v170_v4 = vlaneseq  ;;  %v734_v6 = vstv %s645_s20  ;;  %s197_s9 = scalar_lea.vmem [#allocation2], %s645_s20  ;;  %s233_s21 = smov [#allocation2]  ;;  %v648_v60 = vmov 1.0   ;;  %v268_v61 = vld [vmem:[%s719_s18] ss:$0 sm:$0xff]  ;;  %s645_s20 = sphi %s725_s20, %s168_s20  }
  0x2a   : >> { %s255_s23 = scalar_lea.vmem [#allocation6], %s645_s20  ;;  %s271_s24 = smov [#allocation2] }
  0x2b   : >> { %v731_v5 = vshrl.u32 %v170_v4, 7  ;;  %v249_v49 = vand.u32 127, %v170_v4  ;;  %s272_s26 = smov [#allocation6] }
  0x2d   : >> { %vm174_vm0 = vcmp.gt.s32.totalorder %v731_v5, %v734_v6  ;;  %vm175_vm1 = vcmp.lt.s32.totalorder %v731_v5, 3  ;;  %v236_v5 = vmov %v731_v5  ;;  %vm749_vm12 = vcmp.eq.s32.totalorder %v249_v49, %v734_v6 }
  0x2e   : >> { %vm176_vm2 = vmand %vm174_vm0, %vm175_vm1  ;;  %vm240_vm9 = vcmp.gt.s32.totalorder %v236_v5, %v734_v6  ;;  %vm241_vm10 = vcmp.lt.s32.totalorder %v236_v5, 3  ;;  %v275_v5 = vmov %v731_v5  ;;  %vm301_vm15 = vcmp.gt.s32.totalorder %v249_v49, %v734_v6 }
  0x2f   : >> { %v169_v7 = vld [vmem:[#allocation2] sm:$0xff]  ;;  %v198_v16 = vld [vmem:[%s197_s9] ss:$0 sm:$0xff]  ;;  %vm242_vm11 = vmand %vm240_vm9, %vm241_vm10  ;;  %vm280_vm13 = vcmp.lt.s32.totalorder %v275_v5, 3  ;;  %v292_v5 = vmov %v731_v5 }
  0x30   : >> { %v177_v8 = vsel %vm176_vm2, %v169_v7, 0.0  ;;  %v199_v17 = vand.u32 2147483647, %v198_v16  ;;  %vm224_vm8 = vcmp.lt.f32.partialorder %v198_v16, 0.0  ;;  %v237_v46 = vld [vmem:[%s233_s21] sm:$0xff]  ;;  %vm309_vm14 = vcmp.ge.s32.totalorder %v292_v5, %v734_v6 }
  0x31   : >> { %v178_v9 = vmul.f32 %v177_v8, %v177_v8  ;;  %v243_v50 = vsel %vm242_vm11, %v237_v46, 0.0  ;;  %v278_v0 = vld [vmem:[%s271_s24] sm:$0xff]  ;;  %s288_s24 = smov %s271_s24  ;;  %vm310_vm0 = vmand %vm749_vm12, %vm309_vm14 }
  0x32   : >> { %v200_v22 = vmax.f32 %v199_v17, 0.0  ;;  %s313_s27 = scalar_lea.vmem %s288_s24, %s645_s20  ;;  %s168_s20 = sadd.s32 1, %s645_s20  }
  0x33   : >> { %v179_v10 = vrot.slane %v178_v9, 4  ;;  %p165_p9 = scmp.ge.s32.totalorder %s168_s20, 3  }
  0x34   : > { %s534_s28 = sshll.u32 (%p165_p9), %s633_s11, 2 }
  0x35   : >> { %v180_v11 = vadd.f32 %v179_v10, %v178_v9  ;;  %s348_s3 = scalar_lea.vmem (%p165_p9), %s811_s1, %s534_s28 }
  0x37   : >> { %v181_v12 = vrot.slane %v180_v11, 2 }
  0x39   : >> { %v182_v13 = vadd.f32 %v181_v12, %v180_v11 }
  0x3b   : >> { %v183_v14 = vrot.slane %v182_v13, 1 }
  0x3d   : >> { %v184_v15 = vadd.f32 %v183_v14, %v182_v13  ;;  %v299_v14 = vld [vmem:[%s288_s24] sm:$0xff] }
  0x3f   : >> { %589 = vrsqrt.f32 %v184_v15  ;;  %vm187_vm3 = vcmp.eq.f32.partialorder %v184_v15, inf  ;;  %v190_v19 = vand.u32 2147483648, %v184_v15  ;;  %vm189_vm4 = vcmp.eq.f32.partialorder %v184_v15, 0.0 }
  0x4c   : >> { %v590_v18 = vpop.eup %589 }
  0x4d   : >> { %v186_v20 = vmul.f32 %v590_v18, %v184_v15 }
  0x4f   : >> { %v188_v21 = vsel %vm187_vm3, %v184_v15, %v186_v20 }
  0x50   : >> { %v191_v23 = vsel %vm189_vm4, %v190_v19, %v188_v21 }
  0x51   : >> { %v201_v24 = vand.u32 2147483647, %v191_v23 }
  0x53   : >> { %v202_v25 = vmax.f32 %v200_v22, %v201_v24 }
  0x55   : >> { %591 = vrcp.f32 %v202_v25  ;;  %vm214_vm7 = vcmp.eq.f32.partialorder %v202_v25, 0.0 }
  0x62   : >> { %v592_v26 = vpop.eup %591 }
  0x63   : >> { %v204_v27 = vmul.f32 %v592_v26, %v199_v17  ;;  %v207_v28 = vmul.f32 0.0, %v592_v26  ;;  %v211_v29 = vmul.f32 %v592_v26, %v201_v24 }
  0x65   : >> { %v205_v30 = vmul.f32 %v204_v27, %v204_v27  ;;  %v208_v31 = vmul.f32 %v207_v28, %v207_v28  ;;  %v212_v32 = vmul.f32 %v211_v29, %v211_v29 }
  0x67   : >> { %v209_v33 = vadd.f32 %v208_v31, %v205_v30 }
  0x69   : >> { %v213_v34 = vadd.f32 %v212_v32, %v209_v33 }
  0x6b   : >> { %593 = vrsqrt.f32 %v213_v34  ;;  %vm217_vm5 = vcmp.eq.f32.partialorder %v213_v34, inf  ;;  %v220_v36 = vand.u32 2147483648, %v213_v34  ;;  %vm219_vm6 = vcmp.eq.f32.partialorder %v213_v34, 0.0 }
  0x78   : >> { %v594_v35 = vpop.eup %593 }
  0x79   : >> { %v216_v37 = vmul.f32 %v594_v35, %v213_v34 }
  0x7b   : >> { %v218_v38 = vsel %vm217_vm5, %v213_v34, %v216_v37 }
  0x7c   : >> { %v221_v39 = vsel %vm219_vm6, %v220_v36, %v218_v38 }
  0x7d   : >> { %v222_v40 = vmul.f32 %v221_v39, %v202_v25 }
  0x7f   : >> { %v223_v41 = vsel %vm214_vm7, 0.0, %v222_v40 }
  0x80   : >> { %v225_v42 = vxor.u32 2147483648, %v223_v41 }
  0x82   : >> { %v226_v43 = vsel %vm224_vm8, %v223_v41, %v225_v42 }
  0x83   : >> { %v742_v44 = vsel %vm189_vm4, %v198_v16, %v226_v43  ;;  %595 = vrcp.f32 %v226_v43  ;;  %v227_v47 = vsub.f32 %v226_v43, %v198_v16 }
  0x84   : >> { %v232_v45 = vsub.f32 %v198_v16, %v742_v44 }
  0x86   : >> { %597 = vrcp.f32 %v232_v45 }
  0x90   : >> { %v596_v48 = vpop.eup %595 }
  0x91   : >> { %v229_v51 = vmul.f32 %v596_v48, %v227_v47 }
  0x93   : >> { %v598_v52 = vpop.eup %597  ;;  %v231_v56 = vsel %vm189_vm4, 0.0, %v229_v51 }
  0x94   : >> { %v245_v53 = vmul.f32 %v598_v52, %v243_v50  ;;  %v261_v58 = vsel %vm749_vm12, %v231_v56, 0.0 }
  0x96   : >> { %v246_v55 = vsel %vm189_vm4, 0.0, %v245_v53 }
  0x97   : >> { %v251_v57 = vsel %vm749_vm12, %v246_v55, 0.0 }
  0x98   : >> { %252 = vadd.xlane.f32.xlu0 %v251_v57 }
  0x9c   : >> { %262 = vadd.xlane.f32.xlu0 %v261_v58 }
 0x121   : >> { %v253_v59 = vpop.xlane.xlu0 %252 }
 0x122   : >> { %254 = vst [vmem:[#allocation6] sm:$0xff] %v253_v59 }
 0x123   : >> { %256 = vst [vmem:[%s255_s23] sm:$0x1] %v648_v60 }
 0x125   : >> { %v263_v62 = vpop.xlane.xlu0 %262 }
 0x126   : >> { %v269_v63 = vsel %vm749_vm12, %v263_v62, %v268_v61 }
 0x127   : >> { %270 = vst [vmem:[%s719_s18] sm:$0x1] %v269_v63 }
 0x12a   : >> { %v277_v1 = vld [vmem:[%s272_s26] sm:$0xff]  ;;  %s289_s26 = smov %s272_s26 }
 0x12b   : >> { %v279_v2 = vmul.f32 %v278_v0, %v277_v1  ;;  %v297_v13 = vld [vmem:[%s289_s26] sm:$0xff] }
 0x12d   : >> { %v281_v3 = vsel %vm280_vm13, %v279_v2, 0.0 }
 0x12e   : >> { %v282_v4 = vrot.slane %v281_v3, 4  ;;  %v333_v6 = vld [vmem:[#allocation4] sm:$0x3] (%p165_p9) }
 0x12f   : > { %336 = vst [vmem:[%s146_s15] sm:$0x3] (%p165_p9), %v333_v6 }
 0x130   : >> { %v283_v7 = vadd.f32 %v282_v4, %v281_v3 }
 0x132   : >> { %v284_v8 = vrot.slane %v283_v7, 2 }
 0x134   : >> { %v285_v9 = vadd.f32 %v284_v8, %v283_v7 }
 0x136   : >> { %v286_v10 = vrot.slane %v285_v9, 1 }
 0x138   : >> { %v287_v11 = vadd.f32 %v286_v10, %v285_v9 }
 0x13a   : >> { %v293_v12 = vmul.f32 %v287_v11, %v263_v62 }
 0x13c   : >> { %v298_v15 = vmul.f32 %v297_v13, %v293_v12 }
 0x13e   : >> { %v302_v16 = vsub.f32 %v299_v14, %v298_v15 }
 0x140   : >> { %v303_v17 = vsel %vm301_vm15, %v302_v16, %v299_v14 }
 0x141   : >> { %v311_v18 = vsel %vm310_vm0, %v297_v13, %v303_v17 }
 0x142   : >> { %312 = vst [vmem:[%s288_s24] sm:$0xff] %v311_v18 }
 0x147   : > { %167 = sbr.rel (!%p165_p9) target bundleno = 41 (0x29), region = 167 }
 0x149   : >> { %v314_v19 = vld [vmem:[%s313_s27] ss:$0 sm:$0xff] }
 0x14a   : >> { %v319_v20 = vsel %vm749_vm12, %v742_v44, %v314_v19 }
 0x14b   : >> { %320 = vst [vmem:[%s313_s27] sm:$0x1] %v319_v20 }
 0x14c   : > { %p385_p10 = scmp.lt.s32.totalorder (%p699_p3), %s633_s11, 0  ;;  %s386_s4 = ssub.s32 (%p699_p3), 0, %s633_s11  ;;  %v409_v22 = vld [vmem:[%s146_s15] sm:$0x3] (%p699_p3) }
 0x14d   : > { %s535_s5 = smin.u32 (%p699_p3), %s633_s11, %s386_s4 }
 0x14e   : > { %s388_s6 = sshrl.u32 (%p699_p3), %s535_s5, 3 }
 0x14f   : > { %s389_s7 = ssub.s32 (%p699_p3), 0, %s388_s6 }
 0x152   : > { %v325_v5 = vld [vmem:[#allocation2] sm:$0xf] }
 0x153   : > { %328 = vst [vmem:[%s722_s19] sm:$0xf] %v325_v5 }
 0x157   : > { %384 = sbr.rel (!%p699_p3) target bundleno = 352 (0x160), region = 91 }
 0x15a   : > { %v365_v21 = vld [vmem:[%s722_s19] sm:$0xf] }
 0x15b   : > { %366 = vst [vmem:[%s348_s3] sm:$0xf] %v365_v21 }
 0x15c   : > { %s823_s7 = smov (!%p385_p10, %s389_s7), %s388_s6 }
 0x15d   : > { %s536_s16 = sshll.u32 %s823_s7, 1 }
 0x15e   : > { %s392_s19 = scalar_lea.vmem %s812_s2, %s536_s16 }
 0x15f   : > { %410 = vst [vmem:[%s392_s19] sm:$0x3] %v409_v22 }
 0x160 PF: > { %s9_s13 = sadd.s32 1, %s641_s13   ;;  %s816_s9 = smov %s629_s10 }
 0x161   : > { %p6_p11 = scmp.ge.s32.totalorder %s9_s13, 4   ;;  %s817_s10 = smov %s705_s25 }
 0x162   : > { %s818_s11 = smov %s637_s12  ;;  %s819_s12 = smov %s821_s14 }
 0x163   :  { %8 = sbr.rel (!%p6_p11) target bundleno = 3 (0x3), region = 178 }

</bundles_post_ra>
